<compile_context>
chip_gen: v5e
topology: v5e:2x2
jax: 0.10.0
libtpu: 0.0.40
codegen_flags: <defaults>
</compile_context>

<pallas_src>
import jax
import jax.numpy as jnp
from jax import lax
from jax.experimental import pallas as pl
from jax.experimental.pallas import tpu as pltpu


# Architecture constants implied by the PyTorch module.
K1, C1 = 4, 16          # conv1: 4x4, 1 -> 16
K2, C2 = 4, 32          # conv2: 4x4, 16 -> 32
K3, C3 = 21, 3          # conv3: 21x21, 32 -> 3


def constraint_detector_forward(x_nchw, params):
    """x_nchw: (N, 1, H, W) float32 (NCHW, like PyTorch). Returns torch.squeeze-like logits."""
    w1, b1, w2, b2, w3, b3 = params          # HWIO conv weights, 1-D biases
    N, cin, H, W = x_nchw.shape
    assert cin == 1
    H1, W1 = H - K1 + 1, W - K1 + 1          # conv1 output (92, 92)
    P1H, P1W = H1 // 2, W1 // 2              # pool1 output (46, 46)
    H2, W2 = P1H - K2 + 1, P1W - K2 + 1      # conv2 output (43, 43)
    P2H, P2W = H2 // 2, W2 // 2              # pool2 output (21, 21)
    assert (P2H, P2W) == (K3, K3), "final 21x21 conv must produce a 1x1 map (use 95x95 input)"

    # ---- weight-only layout prep (tiny; activations never leave the kernel) ----
    x = x_nchw[:, 0]                                                            # (N, H, W)
    w1m = jnp.transpose(w1[:, :, 0, :], (2, 1, 0)).reshape(C1, K1 * K1)         # [c, j*K1 + i]
    w2m = jnp.transpose(w2, (3, 1, 0, 2)).reshape(C2, K2 * K2 * C1)             # [co, j*K2*C1 + i*C1 + ci]
    w2m = w2m.astype(jnp.bfloat16)                                              # bf16 MXU operands (review)
    w3m = jnp.transpose(w3, (3, 0, 2, 1)).reshape(C3, K3 * C2, K3)              # [c, p*C2 + ci, q]
    b1c = b1.reshape(C1, 1)
    b2c = b2.reshape(C2, 1)
    b3r = b3.reshape(1, C3)

    def kernel(x_ref, w1_ref, b1_ref, w2_ref, b2_ref, w3_ref, b3_ref,
               out_ref, s1_ref, s2_ref):
        # ---- loop-invariant values (hoisted: broadcasts, weight slices, pooling selectors) ----
        w1v = w1_ref[...]                                         # (16, 16)  f32
        w2v = w2_ref[...]                                         # (32, 256) bf16
        b1b = jnp.broadcast_to(b1_ref[...], (C1, W1))             # (16, 92)
        b2b = jnp.broadcast_to(b2_ref[...], (C2, W2))             # (32, 43)
        w1s = [w1v[:, j * K1:(j + 1) * K1] for j in range(K1)]            # 4 x (16, 4)
        w2s = [w2v[:, j * K2 * C1:(j + 1) * K2 * C1] for j in range(K2)]  # 4 x (32, 64)
        # 0/1 "keep even columns" matrices: 2x2 pool = vertical max + shifted lane max + decimating matmul.
        dsel1 = (lax.broadcasted_iota(jnp.int32, (W1 - 1, P1W), 0)
                 == 2 * lax.broadcasted_iota(jnp.int32, (W1 - 1, P1W), 1)).astype(jnp.float32)
        dsel2 = (lax.broadcasted_iota(jnp.int32, (W2 - 1, P2W), 0)
                 == 2 * lax.broadcasted_iota(jnp.int32, (W2 - 1, P2W), 1)).astype(jnp.float32)

        # ---- stage 1: conv1 + ReLU + 2x2 max-pool (one pooled row per iteration) ----
        def stage1(h, carry):
            xs = x_ref[pl.ds(2 * h, K1 + 1), :]                   # input rows 2h .. 2h+4 -> (5, W)
            rows = []
            for r in range(2):                                    # the two conv rows pooled together
                acc = b1b
                for j in range(K1):
                    acc = acc + jnp.dot(w1s[j], xs[r:r + K1, j:j + W1],
                                        preferred_element_type=jnp.float32)
                rows.append(acc)                                  # (16, 92), channels on sublanes
            v = jnp.maximum(jnp.maximum(rows[0], rows[1]), 0.0)   # relu(vertical max)
            hmax = jnp.maximum(v[:, :W1 - 1], v[:, 1:])           # horizontal pair max (16, 91)
            pooled = jnp.dot(hmax, dsel1, preferred_element_type=jnp.float32)   # (16, 46)
            s1_ref[pl.ds(pl.multiple_of(h * C1, C1), C1), :] = pooled.astype(s1_ref.dtype)
            return carry

        lax.fori_loop(0, P1H, stage1, 0)

        # ---- stage 2: conv2 (MXU, bf16 operands, f32 accum) + ReLU + 2x2 max-pool ----
        def stage2(h, carry):
            slab = s1_ref[pl.ds(pl.multiple_of(h * 2 * C1, 2 * C1), (K2 + 1) * C1), :]  # (80, 46) bf16
            rows = []
            for r in range(2):
                acc = b2b
                for j in range(K2):
                    acc = acc + jnp.dot(w2s[j], slab[r * C1:(r + K2) * C1, j:j + W2],
                                        preferred_element_type=jnp.float32)
                rows.append(acc)                                  # (32, 43)
            v = jnp.maximum(jnp.maximum(rows[0], rows[1]), 0.0)
            hmax = jnp.maximum(v[:, :W2 - 1], v[:, 1:])           # (32, 42)
            pooled = jnp.dot(hmax, dsel2, preferred_element_type=jnp.float32)   # (32, 21)
            s2_ref[pl.ds(pl.multiple_of(h * C2, C2), C2), :] = pooled
            return carry

        lax.fori_loop(0, P2H, stage2, 0)

        # ---- stage 3: conv3 (21x21 valid conv == weighted full reduction; VPU, f32) ----
        s2v = s2_ref[...]                                         # (21*32, 21) f32
        b3v = b3_ref[...]                                         # (1, 3)
        for c in range(C3):
            prod = s2v * w3_ref[c]                                # (672, 21)
            s = jnp.sum(jnp.sum(prod, axis=1, keepdims=True), axis=0, keepdims=True)  # (1, 1)
            out_ref[:, c:c + 1] = s + b3v[:, c:c + 1]

    out = pl.pallas_call(
        kernel,
        out_shape=jax.ShapeDtypeStruct((N, 1, C3), jnp.float32),
        grid=(N,),
        in_specs=[
            pl.BlockSpec((None, H, W), lambda n: (n, 0, 0)),           # per-sample image
            pl.BlockSpec((C1, K1 * K1), lambda n: (0, 0)),             # w1  (resident)
            pl.BlockSpec((C1, 1), lambda n: (0, 0)),                   # b1
            pl.BlockSpec((C2, K2 * K2 * C1), lambda n: (0, 0)),        # w2 (bf16)
            pl.BlockSpec((C2, 1), lambda n: (0, 0)),                   # b2
            pl.BlockSpec((C3, K3 * C2, K3), lambda n: (0, 0, 0)),      # w3
            pl.BlockSpec((1, C3), lambda n: (0, 0)),                   # b3
        ],
        out_specs=pl.BlockSpec((None, 1, C3), lambda n: (n, 0, 0)),
        scratch_shapes=[
            pltpu.VMEM((P1H * C1, P1W), jnp.bfloat16),   # pooled conv1 map (46*16, 46)
            pltpu.VMEM((P2H * C2, P2W), jnp.float32),    # pooled conv2 map (21*32, 21)
        ],
        compiler_params=pltpu.CompilerParams(dimension_semantics=("parallel",)),
    )(x, w1m, b1c, w2m, b2c, w3m, b3r)

    return jnp.squeeze(out)                              # (N, 1, 3) -> torch.squeeze semantics


def init_params(key):
    ks = jax.random.split(key, 6)

    def conv_w(k, kh, kw, ci, co):
        fan_in = kh * kw * ci
        return jax.random.normal(k, (kh, kw, ci, co), jnp.float32) / jnp.sqrt(fan_in)

    w1 = conv_w(ks[0], K1, K1, 1, C1)
    b1 = 0.01 * jax.random.normal(ks[1], (C1,), jnp.float32)
    w2 = conv_w(ks[2], K2, K2, C1, C2)
    b2 = 0.01 * jax.random.normal(ks[3], (C2,), jnp.float32)
    w3 = conv_w(ks[4], K3, K3, C2, C3)
    b3 = 0.01 * jax.random.normal(ks[5], (C3,), jnp.float32)
    return (w1, b1, w2, b2, w3, b3)


# Pure-JAX f32 reference (NCHW, lax.conv) for the correctness check.
def _ref_forward(x_nchw, params):
    w1, b1, w2, b2, w3, b3 = params

    def conv(x, w, b):
        out = jax.lax.conv_general_dilated(
            x, w, (1, 1), "VALID",
            dimension_numbers=("NCHW", "HWIO", "NCHW"),
            precision=jax.lax.Precision.HIGHEST)
        return out + b[None, :, None, None]

    def pool(x):
        return jax.lax.reduce_window(x, -jnp.inf, jax.lax.max,
                                     (1, 1, 2, 2), (1, 1, 2, 2), "VALID")

    x = pool(jax.nn.relu(conv(x_nchw, w1, b1)))
    x = pool(jax.nn.relu(conv(x, w2, b2)))
    x = conv(x, w3, b3)
    return jnp.squeeze(x)


if __name__ == "__main__":
    key = jax.random.PRNGKey(0)
    kx, kp = jax.random.split(key)
    # 95x95 single-channel input: the 21x21 final conv then yields a 1x1 map, as the module implies.
    x = jax.random.normal(kx, (2, 1, 95, 95), jnp.float32)   # NCHW, like PyTorch
    params = init_params(kp)

    out = jax.jit(constraint_detector_forward)(x, params)
    out = jax.block_until_ready(out)

    ref = _ref_forward(x, params)
    assert out.shape == (2, 3), out.shape
    # conv2 runs with bf16 operands (f32 accumulation) per the perf review, so compare against the
    # pure-f32 reference with a correspondingly looser (but still tight, ~0.3% expected) tolerance.
    assert jnp.allclose(out, ref, rtol=2e-2, atol=2e-2), (out, ref)
    print("KERNEL_OK")
</pallas_src>

<mosaic_0001>
module attributes {stable_mosaic.version = 11 : i64} {
  func.func @kernel(%arg0: i32, %arg1: memref<1x95x95xf32, #tpu.memory_space<vmem>>, %arg2: memref<16x16xf32, #tpu.memory_space<vmem>>, %arg3: memref<16x1xf32, #tpu.memory_space<vmem>>, %arg4: memref<32x256xbf16, #tpu.memory_space<vmem>>, %arg5: memref<32x1xf32, #tpu.memory_space<vmem>>, %arg6: memref<3x672x21xf32, #tpu.memory_space<vmem>>, %arg7: memref<1x3xf32, #tpu.memory_space<vmem>>, %arg8: memref<1x1x3xf32, #tpu.memory_space<vmem>>, %arg9: memref<736x46xbf16, #tpu.memory_space<vmem>>, %arg10: memref<672x21xf32, #tpu.memory_space<vmem>>) attributes {dimension_semantics = [#tpu.dimension_semantics<parallel>], iteration_bounds = array<i64: 2>, scalar_prefetch = 0 : i64, scratch_operands = 2 : i64, tpu.core_type = #tpu.core_type<tc>, window_params = [{transform_indices = @transform_0, window_bounds = array<i64: 1, 95, 95>}, {pipeline_mode = #tpu.pipeline_mode<synchronous>, transform_indices = @transform_1, window_bounds = array<i64: 16, 16>}, {pipeline_mode = #tpu.pipeline_mode<synchronous>, transform_indices = @transform_2, window_bounds = array<i64: 16, 1>}, {pipeline_mode = #tpu.pipeline_mode<synchronous>, transform_indices = @transform_3, window_bounds = array<i64: 32, 256>}, {pipeline_mode = #tpu.pipeline_mode<synchronous>, transform_indices = @transform_4, window_bounds = array<i64: 32, 1>}, {pipeline_mode = #tpu.pipeline_mode<synchronous>, transform_indices = @transform_5, window_bounds = array<i64: 3, 672, 21>}, {pipeline_mode = #tpu.pipeline_mode<synchronous>, transform_indices = @transform_6, window_bounds = array<i64: 1, 3>}, {transform_indices = @transform_7, window_bounds = array<i64: 1, 1, 3>}]} {
    %c0 = arith.constant 0 : index
    %c0_0 = arith.constant 0 : index
    %0 = vector.load %arg2[%c0, %c0_0] : memref<16x16xf32, #tpu.memory_space<vmem>>, vector<16x16xf32>
    %c0_1 = arith.constant 0 : index
    %c0_2 = arith.constant 0 : index
    %1 = vector.load %arg4[%c0_1, %c0_2] : memref<32x256xbf16, #tpu.memory_space<vmem>>, vector<32x256xbf16>
    %c0_3 = arith.constant 0 : index
    %c0_4 = arith.constant 0 : index
    %2 = vector.load %arg3[%c0_3, %c0_4] : memref<16x1xf32, #tpu.memory_space<vmem>>, vector<16x1xf32>
    %3 = vector.shape_cast %2 : vector<16x1xf32> to vector<16x1xf32>
    %4 = vector.broadcast %3 : vector<16x1xf32> to vector<16x92xf32>
    %c0_5 = arith.constant 0 : index
    %c0_6 = arith.constant 0 : index
    %5 = vector.load %arg5[%c0_5, %c0_6] : memref<32x1xf32, #tpu.memory_space<vmem>>, vector<32x1xf32>
    %6 = vector.shape_cast %5 : vector<32x1xf32> to vector<32x1xf32>
    %7 = vector.broadcast %6 : vector<32x1xf32> to vector<32x43xf32>
    %8 = vector.extract_strided_slice %0 {offsets = [0, 0], sizes = [16, 4], strides = [1, 1]} : vector<16x16xf32> to vector<16x4xf32>
    %9 = vector.extract_strided_slice %0 {offsets = [0, 4], sizes = [16, 4], strides = [1, 1]} : vector<16x16xf32> to vector<16x4xf32>
    %10 = vector.extract_strided_slice %0 {offsets = [0, 8], sizes = [16, 4], strides = [1, 1]} : vector<16x16xf32> to vector<16x4xf32>
    %11 = vector.extract_strided_slice %0 {offsets = [0, 12], sizes = [16, 4], strides = [1, 1]} : vector<16x16xf32> to vector<16x4xf32>
    %12 = vector.extract_strided_slice %1 {offsets = [0, 0], sizes = [32, 64], strides = [1, 1]} : vector<32x256xbf16> to vector<32x64xbf16>
    %13 = vector.extract_strided_slice %1 {offsets = [0, 64], sizes = [32, 64], strides = [1, 1]} : vector<32x256xbf16> to vector<32x64xbf16>
    %14 = vector.extract_strided_slice %1 {offsets = [0, 128], sizes = [32, 64], strides = [1, 1]} : vector<32x256xbf16> to vector<32x64xbf16>
    %15 = vector.extract_strided_slice %1 {offsets = [0, 192], sizes = [32, 64], strides = [1, 1]} : vector<32x256xbf16> to vector<32x64xbf16>
    %16 = tpu.iota {dimensions = array<i32: 0>} : vector<91x46xi32>
    %17 = tpu.iota {dimensions = array<i32: 1>} : vector<91x46xi32>
    %c2_i32 = arith.constant 2 : i32
    %18 = vector.broadcast %c2_i32 : i32 to vector<91x46xi32>
    %19 = arith.muli %18, %17 : vector<91x46xi32>
    %20 = arith.cmpi eq, %16, %19 : vector<91x46xi32>
    %21 = arith.extui %20 : vector<91x46xi1> to vector<91x46xi32>
    %22 = arith.sitofp %21 : vector<91x46xi32> to vector<91x46xf32>
    %23 = tpu.iota {dimensions = array<i32: 0>} : vector<42x21xi32>
    %24 = tpu.iota {dimensions = array<i32: 1>} : vector<42x21xi32>
    %c2_i32_7 = arith.constant 2 : i32
    %25 = vector.broadcast %c2_i32_7 : i32 to vector<42x21xi32>
    %26 = arith.muli %25, %24 : vector<42x21xi32>
    %27 = arith.cmpi eq, %23, %26 : vector<42x21xi32>
    %28 = arith.extui %27 : vector<42x21xi1> to vector<42x21xi32>
    %29 = arith.sitofp %28 : vector<42x21xi32> to vector<42x21xf32>
    %c0_i32 = arith.constant 0 : i32
    %c46_i32 = arith.constant 46 : i32
    %30 = arith.addi %c0_i32, %c46_i32 : i32
    %c1_i32 = arith.constant 1 : i32
    scf.for %arg11 = %c0_i32 to %30 step %c1_i32  : i32 {
      %c2_i32_37 = arith.constant 2 : i32
      %70 = arith.muli %c2_i32_37, %arg11 : i32
      %c0_38 = arith.constant 0 : index
      %71 = arith.index_cast %70 : i32 to index
      %c0_39 = arith.constant 0 : index
      %72 = vector.load %arg1[%c0_38, %71, %c0_39] : memref<1x95x95xf32, #tpu.memory_space<vmem>>, vector<1x5x95xf32>
      %73 = vector.shape_cast %72 : vector<1x5x95xf32> to vector<5x95xf32>
      %74 = vector.extract_strided_slice %73 {offsets = [0, 0], sizes = [4, 92], strides = [1, 1]} : vector<5x95xf32> to vector<4x92xf32>
      %cst_40 = arith.constant dense<0.000000e+00> : vector<16x92xf32>
      %75 = tpu.matmul %8, %74, %cst_40 {dimension_numbers = #tpu.dot_dimension_numbers<[1], [0], [0], [1], [0, 0, 1, 1], [], []>} : vector<16x4xf32>, vector<4x92xf32>, vector<16x92xf32> -> vector<16x92xf32>
      %76 = arith.addf %4, %75 : vector<16x92xf32>
      %77 = vector.extract_strided_slice %73 {offsets = [0, 1], sizes = [4, 92], strides = [1, 1]} : vector<5x95xf32> to vector<4x92xf32>
      %cst_41 = arith.constant dense<0.000000e+00> : vector<16x92xf32>
      %78 = tpu.matmul %9, %77, %cst_41 {dimension_numbers = #tpu.dot_dimension_numbers<[1], [0], [0], [1], [0, 0, 1, 1], [], []>} : vector<16x4xf32>, vector<4x92xf32>, vector<16x92xf32> -> vector<16x92xf32>
      %79 = arith.addf %76, %78 : vector<16x92xf32>
      %80 = vector.extract_strided_slice %73 {offsets = [0, 2], sizes = [4, 92], strides = [1, 1]} : vector<5x95xf32> to vector<4x92xf32>
      %cst_42 = arith.constant dense<0.000000e+00> : vector<16x92xf32>
      %81 = tpu.matmul %10, %80, %cst_42 {dimension_numbers = #tpu.dot_dimension_numbers<[1], [0], [0], [1], [0, 0, 1, 1], [], []>} : vector<16x4xf32>, vector<4x92xf32>, vector<16x92xf32> -> vector<16x92xf32>
      %82 = arith.addf %79, %81 : vector<16x92xf32>
      %83 = vector.extract_strided_slice %73 {offsets = [0, 3], sizes = [4, 92], strides = [1, 1]} : vector<5x95xf32> to vector<4x92xf32>
      %cst_43 = arith.constant dense<0.000000e+00> : vector<16x92xf32>
      %84 = tpu.matmul %11, %83, %cst_43 {dimension_numbers = #tpu.dot_dimension_numbers<[1], [0], [0], [1], [0, 0, 1, 1], [], []>} : vector<16x4xf32>, vector<4x92xf32>, vector<16x92xf32> -> vector<16x92xf32>
      %85 = arith.addf %82, %84 : vector<16x92xf32>
      %86 = vector.extract_strided_slice %73 {offsets = [1, 0], sizes = [4, 92], strides = [1, 1]} : vector<5x95xf32> to vector<4x92xf32>
      %cst_44 = arith.constant dense<0.000000e+00> : vector<16x92xf32>
      %87 = tpu.matmul %8, %86, %cst_44 {dimension_numbers = #tpu.dot_dimension_numbers<[1], [0], [0], [1], [0, 0, 1, 1], [], []>} : vector<16x4xf32>, vector<4x92xf32>, vector<16x92xf32> -> vector<16x92xf32>
      %88 = arith.addf %4, %87 : vector<16x92xf32>
      %89 = vector.extract_strided_slice %73 {offsets = [1, 1], sizes = [4, 92], strides = [1, 1]} : vector<5x95xf32> to vector<4x92xf32>
      %cst_45 = arith.constant dense<0.000000e+00> : vector<16x92xf32>
      %90 = tpu.matmul %9, %89, %cst_45 {dimension_numbers = #tpu.dot_dimension_numbers<[1], [0], [0], [1], [0, 0, 1, 1], [], []>} : vector<16x4xf32>, vector<4x92xf32>, vector<16x92xf32> -> vector<16x92xf32>
      %91 = arith.addf %88, %90 : vector<16x92xf32>
      %92 = vector.extract_strided_slice %73 {offsets = [1, 2], sizes = [4, 92], strides = [1, 1]} : vector<5x95xf32> to vector<4x92xf32>
      %cst_46 = arith.constant dense<0.000000e+00> : vector<16x92xf32>
      %93 = tpu.matmul %10, %92, %cst_46 {dimension_numbers = #tpu.dot_dimension_numbers<[1], [0], [0], [1], [0, 0, 1, 1], [], []>} : vector<16x4xf32>, vector<4x92xf32>, vector<16x92xf32> -> vector<16x92xf32>
      %94 = arith.addf %91, %93 : vector<16x92xf32>
      %95 = vector.extract_strided_slice %73 {offsets = [1, 3], sizes = [4, 92], strides = [1, 1]} : vector<5x95xf32> to vector<4x92xf32>
      %cst_47 = arith.constant dense<0.000000e+00> : vector<16x92xf32>
      %96 = tpu.matmul %11, %95, %cst_47 {dimension_numbers = #tpu.dot_dimension_numbers<[1], [0], [0], [1], [0, 0, 1, 1], [], []>} : vector<16x4xf32>, vector<4x92xf32>, vector<16x92xf32> -> vector<16x92xf32>
      %97 = arith.addf %94, %96 : vector<16x92xf32>
      %98 = arith.maximumf %85, %97 : vector<16x92xf32>
      %cst_48 = arith.constant 0.000000e+00 : f32
      %99 = vector.broadcast %cst_48 : f32 to vector<16x92xf32>
      %100 = arith.maximumf %98, %99 : vector<16x92xf32>
      %101 = vector.extract_strided_slice %100 {offsets = [0, 0], sizes = [16, 91], strides = [1, 1]} : vector<16x92xf32> to vector<16x91xf32>
      %102 = vector.extract_strided_slice %100 {offsets = [0, 1], sizes = [16, 91], strides = [1, 1]} : vector<16x92xf32> to vector<16x91xf32>
      %103 = arith.maximumf %101, %102 : vector<16x91xf32>
      %cst_49 = arith.constant dense<0.000000e+00> : vector<16x46xf32>
      %104 = tpu.matmul %103, %22, %cst_49 {dimension_numbers = #tpu.dot_dimension_numbers<[1], [0], [0], [1], [0, 0, 1, 1], [], []>} : vector<16x91xf32>, vector<91x46xf32>, vector<16x46xf32> -> vector<16x46xf32>
      %105 = arith.truncf %104 : vector<16x46xf32> to vector<16x46xbf16>
      %c16_i32 = arith.constant 16 : i32
      %106 = arith.muli %arg11, %c16_i32 : i32
      %107 = tpu.assume_multiple %106, 16 : i32
      %108 = arith.index_cast %107 : i32 to index
      %c0_50 = arith.constant 0 : index
      %109 = vector.load %arg9[%108, %c0_50] : memref<736x46xbf16, #tpu.memory_space<vmem>>, vector<16x46xbf16>
      tpu.vector_store %arg9[%108, %c0_50], %105 {strides = array<i32>} : memref<736x46xbf16, #tpu.memory_space<vmem>>, vector<16x46xbf16>,
    }
    %c46_i32_8 = arith.constant 46 : i32
    %c0_i32_9 = arith.constant 0 : i32
    %c21_i32 = arith.constant 21 : i32
    %31 = arith.addi %c0_i32_9, %c21_i32 : i32
    %c1_i32_10 = arith.constant 1 : i32
    scf.for %arg11 = %c0_i32_9 to %31 step %c1_i32_10  : i32 {
      %c2_i32_37 = arith.constant 2 : i32
      %70 = arith.muli %arg11, %c2_i32_37 : i32
      %c16_i32 = arith.constant 16 : i32
      %71 = arith.muli %70, %c16_i32 : i32
      %72 = tpu.assume_multiple %71, 32 : i32
      %73 = arith.index_cast %72 : i32 to index
      %c0_38 = arith.constant 0 : index
      %74 = vector.load %arg9[%73, %c0_38] : memref<736x46xbf16, #tpu.memory_space<vmem>>, vector<80x46xbf16>
      %75 = vector.extract_strided_slice %74 {offsets = [0, 0], sizes = [64, 43], strides = [1, 1]} : vector<80x46xbf16> to vector<64x43xbf16>
      %cst_39 = arith.constant dense<0.000000e+00> : vector<32x43xf32>
      %76 = tpu.matmul %12, %75, %cst_39 {dimension_numbers = #tpu.dot_dimension_numbers<[1], [0], [0], [1], [0, 0, 1, 1], [], []>} : vector<32x64xbf16>, vector<64x43xbf16>, vector<32x43xf32> -> vector<32x43xf32>
      %77 = arith.addf %7, %76 : vector<32x43xf32>
      %78 = vector.extract_strided_slice %74 {offsets = [0, 1], sizes = [64, 43], strides = [1, 1]} : vector<80x46xbf16> to vector<64x43xbf16>
      %cst_40 = arith.constant dense<0.000000e+00> : vector<32x43xf32>
      %79 = tpu.matmul %13, %78, %cst_40 {dimension_numbers = #tpu.dot_dimension_numbers<[1], [0], [0], [1], [0, 0, 1, 1], [], []>} : vector<32x64xbf16>, vector<64x43xbf16>, vector<32x43xf32> -> vector<32x43xf32>
      %80 = arith.addf %77, %79 : vector<32x43xf32>
      %81 = vector.extract_strided_slice %74 {offsets = [0, 2], sizes = [64, 43], strides = [1, 1]} : vector<80x46xbf16> to vector<64x43xbf16>
      %cst_41 = arith.constant dense<0.000000e+00> : vector<32x43xf32>
      %82 = tpu.matmul %14, %81, %cst_41 {dimension_numbers = #tpu.dot_dimension_numbers<[1], [0], [0], [1], [0, 0, 1, 1], [], []>} : vector<32x64xbf16>, vector<64x43xbf16>, vector<32x43xf32> -> vector<32x43xf32>
      %83 = arith.addf %80, %82 : vector<32x43xf32>
      %84 = vector.extract_strided_slice %74 {offsets = [0, 3], sizes = [64, 43], strides = [1, 1]} : vector<80x46xbf16> to vector<64x43xbf16>
      %cst_42 = arith.constant dense<0.000000e+00> : vector<32x43xf32>
      %85 = tpu.matmul %15, %84, %cst_42 {dimension_numbers = #tpu.dot_dimension_numbers<[1], [0], [0], [1], [0, 0, 1, 1], [], []>} : vector<32x64xbf16>, vector<64x43xbf16>, vector<32x43xf32> -> vector<32x43xf32>
      %86 = arith.addf %83, %85 : vector<32x43xf32>
      %87 = vector.extract_strided_slice %74 {offsets = [16, 0], sizes = [64, 43], strides = [1, 1]} : vector<80x46xbf16> to vector<64x43xbf16>
      %cst_43 = arith.constant dense<0.000000e+00> : vector<32x43xf32>
      %88 = tpu.matmul %12, %87, %cst_43 {dimension_numbers = #tpu.dot_dimension_numbers<[1], [0], [0], [1], [0, 0, 1, 1], [], []>} : vector<32x64xbf16>, vector<64x43xbf16>, vector<32x43xf32> -> vector<32x43xf32>
      %89 = arith.addf %7, %88 : vector<32x43xf32>
      %90 = vector.extract_strided_slice %74 {offsets = [16, 1], sizes = [64, 43], strides = [1, 1]} : vector<80x46xbf16> to vector<64x43xbf16>
      %cst_44 = arith.constant dense<0.000000e+00> : vector<32x43xf32>
      %91 = tpu.matmul %13, %90, %cst_44 {dimension_numbers = #tpu.dot_dimension_numbers<[1], [0], [0], [1], [0, 0, 1, 1], [], []>} : vector<32x64xbf16>, vector<64x43xbf16>, vector<32x43xf32> -> vector<32x43xf32>
      %92 = arith.addf %89, %91 : vector<32x43xf32>
      %93 = vector.extract_strided_slice %74 {offsets = [16, 2], sizes = [64, 43], strides = [1, 1]} : vector<80x46xbf16> to vector<64x43xbf16>
      %cst_45 = arith.constant dense<0.000000e+00> : vector<32x43xf32>
      %94 = tpu.matmul %14, %93, %cst_45 {dimension_numbers = #tpu.dot_dimension_numbers<[1], [0], [0], [1], [0, 0, 1, 1], [], []>} : vector<32x64xbf16>, vector<64x43xbf16>, vector<32x43xf32> -> vector<32x43xf32>
      %95 = arith.addf %92, %94 : vector<32x43xf32>
      %96 = vector.extract_strided_slice %74 {offsets = [16, 3], sizes = [64, 43], strides = [1, 1]} : vector<80x46xbf16> to vector<64x43xbf16>
      %cst_46 = arith.constant dense<0.000000e+00> : vector<32x43xf32>
      %97 = tpu.matmul %15, %96, %cst_46 {dimension_numbers = #tpu.dot_dimension_numbers<[1], [0], [0], [1], [0, 0, 1, 1], [], []>} : vector<32x64xbf16>, vector<64x43xbf16>, vector<32x43xf32> -> vector<32x43xf32>
      %98 = arith.addf %95, %97 : vector<32x43xf32>
      %99 = arith.maximumf %86, %98 : vector<32x43xf32>
      %cst_47 = arith.constant 0.000000e+00 : f32
      %100 = vector.broadcast %cst_47 : f32 to vector<32x43xf32>
      %101 = arith.maximumf %99, %100 : vector<32x43xf32>
      %102 = vector.extract_strided_slice %101 {offsets = [0, 0], sizes = [32, 42], strides = [1, 1]} : vector<32x43xf32> to vector<32x42xf32>
      %103 = vector.extract_strided_slice %101 {offsets = [0, 1], sizes = [32, 42], strides = [1, 1]} : vector<32x43xf32> to vector<32x42xf32>
      %104 = arith.maximumf %102, %103 : vector<32x42xf32>
      %cst_48 = arith.constant dense<0.000000e+00> : vector<32x21xf32>
      %105 = tpu.matmul %104, %29, %cst_48 {dimension_numbers = #tpu.dot_dimension_numbers<[1], [0], [0], [1], [0, 0, 1, 1], [], []>} : vector<32x42xf32>, vector<42x21xf32>, vector<32x21xf32> -> vector<32x21xf32>
      %c32_i32 = arith.constant 32 : i32
      %106 = arith.muli %arg11, %c32_i32 : i32
      %107 = tpu.assume_multiple %106, 32 : i32
      %108 = arith.index_cast %107 : i32 to index
      %c0_49 = arith.constant 0 : index
      %109 = vector.load %arg10[%108, %c0_49] : memref<672x21xf32, #tpu.memory_space<vmem>>, vector<32x21xf32>
      tpu.vector_store %arg10[%108, %c0_49], %105 {strides = array<i32>} : memref<672x21xf32, #tpu.memory_space<vmem>>, vector<32x21xf32>,
    }
    %c21_i32_11 = arith.constant 21 : i32
    %c0_12 = arith.constant 0 : index
    %c0_13 = arith.constant 0 : index
    %32 = vector.load %arg10[%c0_12, %c0_13] : memref<672x21xf32, #tpu.memory_space<vmem>>, vector<672x21xf32>
    %c0_14 = arith.constant 0 : index
    %c0_15 = arith.constant 0 : index
    %33 = vector.load %arg7[%c0_14, %c0_15] : memref<1x3xf32, #tpu.memory_space<vmem>>, vector<1x3xf32>
    %c0_16 = arith.constant 0 : index
    %c0_17 = arith.constant 0 : index
    %c0_18 = arith.constant 0 : index
    %34 = vector.load %arg6[%c0_16, %c0_17, %c0_18] : memref<3x672x21xf32, #tpu.memory_space<vmem>>, vector<1x672x21xf32>
    %35 = vector.shape_cast %34 : vector<1x672x21xf32> to vector<672x21xf32>
    %36 = arith.mulf %32, %35 : vector<672x21xf32>
    %cst = arith.constant dense<0.000000e+00> : vector<672xf32>
    %37 = vector.multi_reduction <add>, %36, %cst [1] : vector<672x21xf32> to vector<672xf32>
    %38 = vector.shape_cast %37 : vector<672xf32> to vector<672x1xf32>
    %cst_19 = arith.constant dense<0.000000e+00> : vector<1xf32>
    %39 = vector.multi_reduction <add>, %38, %cst_19 [0] : vector<672x1xf32> to vector<1xf32>
    %40 = vector.shape_cast %39 : vector<1xf32> to vector<1x1xf32>
    %41 = vector.extract_strided_slice %33 {offsets = [0, 0], sizes = [1, 1], strides = [1, 1]} : vector<1x3xf32> to vector<1x1xf32>
    %42 = arith.addf %40, %41 : vector<1x1xf32>
    %c0_20 = arith.constant 0 : index
    %c0_21 = arith.constant 0 : index
    %c0_22 = arith.constant 0 : index
    %43 = vector.load %arg8[%c0_20, %c0_21, %c0_22] : memref<1x1x3xf32, #tpu.memory_space<vmem>>, vector<1x1x1xf32>
    %44 = vector.shape_cast %43 : vector<1x1x1xf32> to vector<1x1xf32>
    %45 = vector.shape_cast %42 : vector<1x1xf32> to vector<1x1x1xf32>
    tpu.vector_store %arg8[%c0_20, %c0_21, %c0_22], %45 {strides = array<i32>} : memref<1x1x3xf32, #tpu.memory_space<vmem>>, vector<1x1x1xf32>,
    %c1 = arith.constant 1 : index
    %c0_23 = arith.constant 0 : index
    %c0_24 = arith.constant 0 : index
    %46 = vector.load %arg6[%c1, %c0_23, %c0_24] : memref<3x672x21xf32, #tpu.memory_space<vmem>>, vector<1x672x21xf32>
    %47 = vector.shape_cast %46 : vector<1x672x21xf32> to vector<672x21xf32>
    %48 = arith.mulf %32, %47 : vector<672x21xf32>
    %cst_25 = arith.constant dense<0.000000e+00> : vector<672xf32>
    %49 = vector.multi_reduction <add>, %48, %cst_25 [1] : vector<672x21xf32> to vector<672xf32>
    %50 = vector.shape_cast %49 : vector<672xf32> to vector<672x1xf32>
    %cst_26 = arith.constant dense<0.000000e+00> : vector<1xf32>
    %51 = vector.multi_reduction <add>, %50, %cst_26 [0] : vector<672x1xf32> to vector<1xf32>
    %52 = vector.shape_cast %51 : vector<1xf32> to vector<1x1xf32>
    %53 = vector.extract_strided_slice %33 {offsets = [0, 1], sizes = [1, 1], strides = [1, 1]} : vector<1x3xf32> to vector<1x1xf32>
    %54 = arith.addf %52, %53 : vector<1x1xf32>
    %c0_27 = arith.constant 0 : index
    %c0_28 = arith.constant 0 : index
    %c1_29 = arith.constant 1 : index
    %55 = vector.load %arg8[%c0_27, %c0_28, %c1_29] : memref<1x1x3xf32, #tpu.memory_space<vmem>>, vector<1x1x1xf32>
    %56 = vector.shape_cast %55 : vector<1x1x1xf32> to vector<1x1xf32>
    %57 = vector.shape_cast %54 : vector<1x1xf32> to vector<1x1x1xf32>
    tpu.vector_store %arg8[%c0_27, %c0_28, %c1_29], %57 {strides = array<i32>} : memref<1x1x3xf32, #tpu.memory_space<vmem>>, vector<1x1x1xf32>,
    %c2 = arith.constant 2 : index
    %c0_30 = arith.constant 0 : index
    %c0_31 = arith.constant 0 : index
    %58 = vector.load %arg6[%c2, %c0_30, %c0_31] : memref<3x672x21xf32, #tpu.memory_space<vmem>>, vector<1x672x21xf32>
    %59 = vector.shape_cast %58 : vector<1x672x21xf32> to vector<672x21xf32>
    %60 = arith.mulf %32, %59 : vector<672x21xf32>
    %cst_32 = arith.constant dense<0.000000e+00> : vector<672xf32>
    %61 = vector.multi_reduction <add>, %60, %cst_32 [1] : vector<672x21xf32> to vector<672xf32>
    %62 = vector.shape_cast %61 : vector<672xf32> to vector<672x1xf32>
    %cst_33 = arith.constant dense<0.000000e+00> : vector<1xf32>
    %63 = vector.multi_reduction <add>, %62, %cst_33 [0] : vector<672x1xf32> to vector<1xf32>
    %64 = vector.shape_cast %63 : vector<1xf32> to vector<1x1xf32>
    %65 = vector.extract_strided_slice %33 {offsets = [0, 2], sizes = [1, 1], strides = [1, 1]} : vector<1x3xf32> to vector<1x1xf32>
    %66 = arith.addf %64, %65 : vector<1x1xf32>
    %c0_34 = arith.constant 0 : index
    %c0_35 = arith.constant 0 : index
    %c2_36 = arith.constant 2 : index
    %67 = vector.load %arg8[%c0_34, %c0_35, %c2_36] : memref<1x1x3xf32, #tpu.memory_space<vmem>>, vector<1x1x1xf32>
    %68 = vector.shape_cast %67 : vector<1x1x1xf32> to vector<1x1xf32>
    %69 = vector.shape_cast %66 : vector<1x1xf32> to vector<1x1x1xf32>
    tpu.vector_store %arg8[%c0_34, %c0_35, %c2_36], %69 {strides = array<i32>} : memref<1x1x3xf32, #tpu.memory_space<vmem>>, vector<1x1x1xf32>,
    return
  }
  func.func @transform_0(%arg0: i32) -> (i32, i32, i32) {
    %c0_i32 = arith.constant 0 : i32
    %c0_i32_0 = arith.constant 0 : i32
    %c0_i32_1 = arith.constant 0 : i32
    return %arg0, %c0_i32, %c0_i32_0 : i32, i32, i32
  }
  func.func @transform_1(%arg0: i32) -> (i32, i32) {
    %c0_i32 = arith.constant 0 : i32
    %c0_i32_0 = arith.constant 0 : i32
    %c0_i32_1 = arith.constant 0 : i32
    return %c0_i32, %c0_i32_0 : i32, i32
  }
  func.func @transform_2(%arg0: i32) -> (i32, i32) {
    %c0_i32 = arith.constant 0 : i32
    %c0_i32_0 = arith.constant 0 : i32
    %c0_i32_1 = arith.constant 0 : i32
    return %c0_i32, %c0_i32_0 : i32, i32
  }
  func.func @transform_3(%arg0: i32) -> (i32, i32) {
    %c0_i32 = arith.constant 0 : i32
    %c0_i32_0 = arith.constant 0 : i32
    %c0_i32_1 = arith.constant 0 : i32
    return %c0_i32, %c0_i32_0 : i32, i32
  }
  func.func @transform_4(%arg0: i32) -> (i32, i32) {
    %c0_i32 = arith.constant 0 : i32
    %c0_i32_0 = arith.constant 0 : i32
    %c0_i32_1 = arith.constant 0 : i32
    return %c0_i32, %c0_i32_0 : i32, i32
  }
  func.func @transform_5(%arg0: i32) -> (i32, i32, i32) {
    %c0_i32 = arith.constant 0 : i32
    %c0_i32_0 = arith.constant 0 : i32
    %c0_i32_1 = arith.constant 0 : i32
    %c0_i32_2 = arith.constant 0 : i32
    return %c0_i32, %c0_i32_0, %c0_i32_1 : i32, i32, i32
  }
  func.func @transform_6(%arg0: i32) -> (i32, i32) {
    %c0_i32 = arith.constant 0 : i32
    %c0_i32_0 = arith.constant 0 : i32
    %c0_i32_1 = arith.constant 0 : i32
    return %c0_i32, %c0_i32_0 : i32, i32
  }
  func.func @transform_7(%arg0: i32) -> (i32, i32, i32) {
    %c0_i32 = arith.constant 0 : i32
    %c0_i32_0 = arith.constant 0 : i32
    %c0_i32_1 = arith.constant 0 : i32
    return %arg0, %c0_i32, %c0_i32_0 : i32, i32, i32
  }
}

</mosaic_0001>

<bundles_post_ra>
// kernel: constraint_detector_forward.1
= control target key start
LH: loop header
LB: loop body
LE: loop exit
PB: predicated region body
PF: predicated region fallthrough
CT: control target
= control target key end

     0   :  { %12 = vsyncpa [#allocation5], 0  ;;  %s4998_s0 = inlined_call_operand.vmem [shape: f32[2,95,95], index: 0, kind: input, shape index: {}]   ;;  %s4999_s1 = inlined_call_operand.vmem [shape: f32[16,16], index: 1, kind: input, shape index: {}]   ;;  %s5000_s2 = inlined_call_operand.vmem [shape: f32[16,1], index: 2, kind: input, shape index: {}]   ;;  %s5001_s3 = inlined_call_operand.vmem [shape: bf16[32,256], index: 3, kind: input, shape index: {}]   ;;  %s5002_s4 = inlined_call_operand.vmem [shape: f32[32,1], index: 4, kind: input, shape index: {}]   ;;  %s5003_s5 = inlined_call_operand.vmem [shape: f32[3,672,21], index: 5, kind: input, shape index: {}]   ;;  %s5004_s6 = inlined_call_operand.vmem [shape: f32[1,3], index: 6, kind: input, shape index: {}]   ;;  %s5005_s7 = inlined_call_operand.hbm [shape: f32[2,1,3], index: 7, kind: output, shape index: {}]  }
   0x1   :  { %14 = vsyncpa [#allocation5 + $0x1], 0  ;;  %s3496_s24 = smov 0   ;;  %s3498_s25 = smov 0  }
   0x2   :  { %s3500_s26 = smov 0   ;;  %s3502_s27 = smov 0  }
   0x3 LB: > { %s3517_s28 = sadd.s32 4294967295, %s3432_s27   ;;  %s2819_s29 = sadd.s32 4294967294, %s3432_s27   ;;  %s3432_s27 = sphi %s3502_s27, %s5011_s27   ;;  %s3428_s26 = sphi %s3500_s26, %s5010_s26   ;;  %s3424_s25 = sphi %s3498_s25, %s5009_s25   ;;  %s3420_s24 = sphi %s3496_s24, %s5008_s24  }
   0x4   : > { %s3521_s30 = sadd.s32 1, %s3432_s27   ;;  %s179_s8 = sadd.s32 1, %s3428_s26 }
   0x5   : > { %s176_s9 = ssub.s32 %s3432_s27, %s3521_s30  ;;  %p189_p0 = scmp.ne.s32.totalorder %s3428_s26, %s3424_s25 }
   0x6   : > { %p177_p1 = scmp.eq.s32.totalorder %s176_s9, 0  ;;  %p190_p2 = scmp.eq.s32.totalorder %s3517_s28, 1 }
   0x7   : > { %p195_p3 = scmp.ne.s32.totalorder %s3424_s25, %s3420_s24  ;;  %p196_p4 = scmp.eq.s32.totalorder %s2819_s29, 1 }
   0x8   : > { %s3532_s10 = scalar_select %p177_p1, %s3428_s26, %s179_s8  }
   0x9   : > { %p3534_p5 = por %p190_p2, %p189_p0  ;;  %p3538_p6 = por %p196_p4, %p195_p3 }
   0xa   : > { %p2822_p7 = scmp.ge.s32.totalorder %s3432_s27, 1  ;;  %p240_p8 = scmp.lt.s32.totalorder %s3432_s27, 3 }
   0xc   : > { %p241_p9 = pnand %p2822_p7, %p240_p8 }
   0xd   : > { %s269_s17 = sand.u32 (!%p241_p9), 1, %s3424_s25   ;;  %p271_p10 = scmp.lt.s32.totalorder (!%p241_p9), %s3517_s28, 1 }
   0xe   : > { %244 = sbr.rel (%p241_p9) target bundleno = 2093 (0x82d), region = 48  ;;  %s3699_s13 = scalar_lea.vmem (!%p241_p9), [#allocation4], %s269_s17 }
   0xf   : > { %s3701_s14 = smov (!%p241_p9), 0  }
  0x13   : > { %v295_v0 = vld [vmem:[%s5002_s4] sm:$0xff]  ;;  %v3442_v2 = vmov 0   ;;  %v297_v3 = vld [vmem:[%s5002_s4 + $0x10] sm:$0xff]  ;;  %s272_s20 = scalar_select %p271_p10, %s3517_s28, 1  ;;  %v296_v4 = vld [vmem:[%s5002_s4 + $0x8] sm:$0xff]  ;;  %v319_v7 = vlaneseq  ;;  %v3443_v33 = vmov 0.0  }
  0x14   : > { %v283_v1 = vld [vmem:[%s5000_s2] sm:$0xff]  ;;  %3202 = vset.pattern.permute.xlu1 %v3442_v2  ;;  %3201 = vset.pattern.permute.xlu0 %v3442_v2  ;;  %v284_v5 = vld [vmem:[%s5000_s2 + $0x8] sm:$0xff]  ;;  %v298_v6 = vld [vmem:[%s5002_s4 + $0x18] sm:$0xff] }
  0x15   : > { %301 = vperm.xlu1 %3202, %v295_v0   ;;  %287 = vperm.xlu0 %3201, %v283_v1   ;;  %s3131_s21 = smul.u32 96, %s272_s20  ;;  %v3570_v8 = vshrl.u32 %v319_v7, 7  ;;  %v333_v9 = vand.u32 127, %v319_v7  ;;  %v3605_v21 = vld [vmem:[%s4999_s1] sm:$0xff]  ;;  %v3610_v22 = vld [vmem:[%s4999_s1 + $0x8] sm:$0xff] }
  0x16   : > { %3203 = vset.pattern.permute.xlu2 %v3442_v2  ;;  %v3615_v23 = vld [vmem:[%s5001_s3 + $0x4] sm:$0xf]  ;;  %v3629_v25 = vld [vmem:[%s5001_s3] sm:$0xf]  ;;  %v3634_v26 = vld [vmem:[%s5001_s3 + $0x8] sm:$0xf0] }
  0x17   : > { %311 = vperm.xlu2 %3203, %v297_v3   ;;  %s3559_s29 = scalar_lea.vmem %s4998_s0, %s3131_s21  ;;  %v3573_v10 = vadd.s32 40, %v3570_v8  ;;  %v331_v11 = vadd.s32 88, %v3570_v8  ;;  %v3576_v12 = vmul.u32 2, %v333_v9  ;;  %v3579_v13 = vadd.s32 8, %v3570_v8  ;;  %v3639_v27 = vld [vmem:[%s5001_s3 + $0x4] sm:$0xf0] }
  0x18   : > { %v3582_v14 = vadd.s32 16, %v3570_v8  ;;  %v3585_v15 = vadd.s32 24, %v3570_v8  ;;  %v3588_v16 = vadd.s32 32, %v3570_v8  ;;  %v3591_v17 = vadd.s32 48, %v3570_v8  ;;  %v3654_v29 = vld [vmem:[%s5001_s3 + $0x14] sm:$0xf] }
  0x19   : > { %v3594_v18 = vadd.s32 56, %v3570_v8  ;;  %v3597_v19 = vadd.s32 64, %v3570_v8  ;;  %v3600_v20 = vadd.s32 72, %v3570_v8  ;;  %v3618_v24 = vadd.s32 80, %v3570_v8  ;;  %v3659_v30 = vld [vmem:[%s5001_s3 + $0x10] sm:$0xf] }
  0x1a   : > { %vm335_vm0 = vcmp.eq.s32.totalorder %v3570_v8, %v3576_v12  ;;  %vm336_vm1 = vcmp.eq.s32.totalorder %v3579_v13, %v3576_v12  ;;  %vm337_vm2 = vcmp.eq.s32.totalorder %v3582_v14, %v3576_v12  ;;  %vm338_vm3 = vcmp.eq.s32.totalorder %v3585_v15, %v3576_v12  ;;  %v3664_v31 = vld [vmem:[%s5001_s3 + $0x18] sm:$0xf0]  ;;  %v3677_v32 = vld [vmem:[%s5001_s3 + $0x14] sm:$0xf0] }
  0x1b   : > { %vm339_vm4 = vcmp.eq.s32.totalorder %v3588_v16, %v3576_v12  ;;  %vm340_vm5 = vcmp.eq.s32.totalorder %v3573_v10, %v3576_v12  ;;  %vm341_vm6 = vcmp.eq.s32.totalorder %v3591_v17, %v3576_v12  ;;  %vm342_vm7 = vcmp.eq.s32.totalorder %v3594_v18, %v3576_v12 }
  0x1c   : > { %vm343_vm8 = vcmp.eq.s32.totalorder %v3597_v19, %v3576_v12  ;;  %vm344_vm9 = vcmp.eq.s32.totalorder %v3600_v20, %v3576_v12  ;;  %vm345_vm10 = vcmp.eq.s32.totalorder %v3618_v24, %v3576_v12  ;;  %vm346_vm11 = vcmp.eq.s32.totalorder %v331_v11, %v3576_v12 }
  0x1d   : > { %306 = vperm.xlu1 %3202, %v296_v4   ;;  %292 = vperm.xlu0 %3201, %v284_v5   ;;  %v3683_v34 = vsel %vm340_vm5, 1.0, %v3443_v33  ;;  %v3685_v35 = vsel %vm346_vm11, 1.0, %v3443_v33 }
  0x1f   : > { %316 = vperm.xlu2 %3203, %v298_v6  }
  0x71   : > { %v3649_v28 = vpop.permute.xlu2 %311 }
  0x79   : > { %v3687_v36 = vpop.permute.xlu2 %316 }
  0x87   : > { %v3689_v37 = vpop.permute.xlu1 %301  ;;  %v3691_v38 = vpop.permute.xlu0 %287 }
  0x8f   : > { %v3693_v39 = vpop.permute.xlu1 %306  ;;  %v3695_v40 = vpop.permute.xlu0 %292 }
  0x90 LB: >> { %s2836_s15 = sshll.u32 %s3436_s14, 1  ;;  %s3444_s18 = smov 125   ;;  %vm387_vm12 = vcmask 1043456   ;;  %vm380_vm13 = vcmask 31744   ;;  %vm663_vm14 = vcmask 1042432   ;;  %v3450_v61 = vmov 1.0   ;;  %s3436_s14 = sphi %s3701_s14, %s376_s14  }
  0x91   : >> { %s378_s16 = scalar_lea.vmem %s3559_s29, %s2836_s15  ;;  %s3445_s19 = smov 126   ;;  %vm656_vm15 = vcmask 744448   ;;  %vm697_vm11 = vcmask 371712  }
  0x92   : >> { %v379_v41 = vld [vmem:[%s378_s16] sm:$0x1f]  ;;  %s3446_s20 = smov 127   ;;  %s3447_s21 = smov 116  }
  0x93   : >> { %494 = vrot.lane.b32.xlu1 %v379_v41, %s3444_s18  ;;  %457 = vrot.lane.b32.xlu0 %v379_v41, %s3445_s19  ;;  %s3448_s22 = smov 120   ;;  %s3449_s23 = smov 124   ;;  %v527_v42 = vrot.slane %v379_v41, 1 }
  0x94   : >> { %420 = vrot.lane.b32.xlu2 %v379_v41, %s3446_s20  ;;  %2837 = vmatpush.msk.msra.mxu1 %vm387_vm12, %v379_v41  ;;  %s2875_s8 = sshll.u32 %s3436_s14, 4  ;;  %s376_s14 = sadd.s32 1, %s3436_s14  }
  0x95   : >> { %3120 = vmatpush.msk.msra.mxu2 %vm387_vm12, %v379_v41  ;;  %2838 = vmatmul.msk.f32.vlgmr.msra.gmra.mxu1 %vm380_vm13, %v3605_v21  ;;  %s693_s9 = sshra.s32 %s2875_s8, 3  ;;  %p373_p11 = scmp.ge.s32.totalorder %s376_s14, 46  }
  0x96   : >> { %2839 = vmatmul.msk.f32.vlgmr.msra.gmra.mxu2 %vm380_vm13, %v3610_v22  ;;  %2849 = vmatpush.msk.msra.mxu0 %vm387_vm12, %v527_v42  ;;  %s2876_s15 = sshll.u32 %s693_s9, 2 }
  0x97   : >> { %2850 = vmatmul.msk.f32.vlgmr.msra.gmra.mxu0 %vm380_vm13, %v3605_v21  ;;  %s696_s16 = scalar_lea.vmem [#allocation2], %s2876_s15 }
  0x98   : >> { %2861 = vmatpush.msk.msrb.mxu0 %vm663_vm14, %v3685_v35 }
  0x9a   : >> { %2862 = vmatpush.msk.msrb.mxu0 %vm345_vm10, %v3450_v61 }
  0x9b   : >> { %490 = vrot.lane.b32.xlu1 %v3605_v21, %s3447_s21  ;;  %453 = vrot.lane.b32.xlu0 %v3605_v21, %s3448_s22 }
  0x9c   : >> { %416 = vrot.lane.b32.xlu2 %v3605_v21, %s3449_s23  ;;  %2863 = vmatpush.msk.msrb.mxu0 %vm344_vm9, %v3450_v61 }
  0x9e   : >> { %2864 = vmatpush.msk.msrb.mxu0 %vm343_vm8, %v3450_v61 }
  0x9f   : >> { %2851 = vmatmul.msk.f32.gmra.mxu0 %vm380_vm13, %v3610_v22 }
  0xa0   : >> { %2865 = vmatpush.msk.msrb.mxu0 %vm342_vm7, %v3450_v61 }
  0xa2   : >> { %2866 = vmatpush.msk.msrb.mxu0 %vm341_vm6, %v3450_v61 }
  0xa3   : >> { %492 = vrot.lane.b32.xlu1 %v3610_v22, %s3447_s21  ;;  %455 = vrot.lane.b32.xlu0 %v3610_v22, %s3448_s22 }
  0xa4   : >> { %418 = vrot.lane.b32.xlu2 %v3610_v22, %s3449_s23  ;;  %2867 = vmatpush.msk.msrb.mxu0 %vm340_vm5, %v3450_v61 }
  0xa6   : >> { %2868 = vmatpush.msk.msrb.mxu0 %vm339_vm4, %v3450_v61 }
  0xa8   : >> { %2869 = vmatpush.msk.msrb.mxu0 %vm338_vm3, %v3450_v61 }
  0xaa   : >> { %2870 = vmatpush.msk.msrb.mxu0 %vm337_vm2, %v3450_v61 }
  0xab   : >> { %613 = vrot.lane.b32.xlu1 %v527_v42, %s3444_s18  ;;  %584 = vrot.lane.b32.xlu0 %v527_v42, %s3445_s19  ;;  %s3789_s18 = smov (%p373_p11), 0  }
  0xac   : >> { %555 = vrot.lane.b32.xlu2 %v527_v42, %s3446_s20  ;;  %2871 = vmatpush.msk.msrb.mxu0 %vm336_vm1, %v3450_v61 }
  0xae   : >> { %2872 = vmatpush.msk.msrb.mxu0 %vm335_vm0, %v3450_v61 }
  0xee   : >> { %v421_v43 = vpop.permute.xlu2 %420 }
  0xef   : >> { %2840 = vmatpush.msk.msrb.mxu1 %vm387_vm12, %v421_v43 }
  0xf6   : >> { %v417_v44 = vpop.permute.xlu2 %416 }
  0xf7   : >> { %2841 = vmatmul.msk.f32.vlgmr.msrb.gmra.mxu1 %vm380_vm13, %v417_v44 }
  0xfe   : >> { %v419_v45 = vpop.permute.xlu2 %418 }
  0xff   : >> { %2842 = vmatmul.msk.f32.gmra.mxu1 %vm380_vm13, %v419_v45 }
 0x105   : >> { %v495_v46 = vpop.permute.xlu1 %494  ;;  %v458_v47 = vpop.permute.xlu0 %457 }
 0x106   : >> { %2843 = vmatpush.msk.msrb.mxu2 %vm387_vm12, %v458_v47  ;;  %2846 = vmatpush.msk.msra.mxu3 %vm387_vm12, %v495_v46  ;;  %v556_v48 = vpop.permute.xlu2 %555 }
 0x107   : >> { %2852 = vmatpush.msk.msra.mxu1 %vm387_vm12, %v556_v48 }
 0x108   : >> { %2853 = vmatmul.msk.f32.vlgmr.msra.gmra.mxu1 %vm380_vm13, %v417_v44 }
 0x10d   : >> { %v491_v49 = vpop.permute.xlu1 %490  ;;  %v454_v50 = vpop.permute.xlu0 %453 }
 0x10e   : >> { %2844 = vmatmul.msk.f32.vlgmr.msrb.gmra.mxu2 %vm380_vm13, %v454_v50  ;;  %2847 = vmatmul.msk.f32.vlgmr.msra.gmra.mxu3 %vm380_vm13, %v491_v49 }
 0x110   : >> { %2854 = vmatmul.msk.f32.gmra.mxu1 %vm380_vm13, %v419_v45 }
 0x112   : >> { %v408_v55 = vpop.f32.mrf.mxu1 }
 0x113   : >> { %v414_v1 = vadd.f32 %v408_v55, %v3691_v38 }
 0x114   : >> { %v547_v62 = vpop.f32.mrf.mxu0 }
 0x115   : >> { %v493_v51 = vpop.permute.xlu1 %492  ;;  %v456_v52 = vpop.permute.xlu0 %455  ;;  %v553_v3 = vadd.f32 %v547_v62, %v3691_v38 }
 0x116   : >> { %2845 = vmatmul.msk.f32.gmra.mxu2 %vm380_vm13, %v456_v52  ;;  %2848 = vmatmul.msk.f32.gmra.mxu3 %vm380_vm13, %v493_v51 }
 0x119   : >> { %v411_v56 = vpop.f32.mrf.mxu2 }
 0x11a   : >> { %v415_v33 = vadd.f32 %v411_v56, %v3695_v40 }
 0x11c   : >> { %v550_v7 = vpop.f32.mrf.mxu0 }
 0x11d   : >> { %v614_v53 = vpop.permute.xlu1 %613  ;;  %v585_v54 = vpop.permute.xlu0 %584  ;;  %v554_v43 = vadd.f32 %v550_v7, %v3695_v40 }
 0x11e   : >> { %2855 = vmatpush.msk.msra.mxu2 %vm387_vm12, %v585_v54  ;;  %2858 = vmatpush.msk.msrb.mxu3 %vm387_vm12, %v614_v53 }
 0x11f   : >> { %2856 = vmatmul.msk.f32.vlgmr.msra.gmra.mxu2 %vm380_vm13, %v454_v50  ;;  %2859 = vmatmul.msk.f32.vlgmr.msrb.gmra.mxu3 %vm380_vm13, %v491_v49 }
 0x127   : >> { %2857 = vmatmul.msk.f32.gmra.mxu2 %vm380_vm13, %v456_v52  ;;  %2860 = vmatmul.msk.f32.gmra.mxu3 %vm380_vm13, %v493_v51 }
 0x174   : >> { %v445_v57 = vpop.f32.mrf.mxu1 }
 0x175   : >> { %v451_v4 = vadd.f32 %v445_v57, %v414_v1 }
 0x17c   : >> { %v448_v60 = vpop.f32.mrf.mxu1 }
 0x17d   : >> { %v452_v46 = vadd.f32 %v448_v60, %v415_v33 }
 0x185   : >> { %v576_v2 = vpop.f32.mrf.mxu1 }
 0x186   : >> { %v582_v5 = vadd.f32 %v576_v2, %v553_v3 }
 0x18d   : >> { %v579_v45 = vpop.f32.mrf.mxu1 }
 0x18e   : >> { %v583_v48 = vadd.f32 %v579_v45, %v554_v43 }
 0x191   : >> { %v482_v58 = vpop.f32.mrf.mxu2  ;;  %v519_v59 = vpop.f32.mrf.mxu3 }
 0x192   : >> { %v488_v6 = vadd.f32 %v482_v58, %v451_v4 }
 0x194   : >> { %v525_v42 = vadd.f32 %v519_v59, %v488_v6 }
 0x199   : >> { %v485_v63 = vpop.f32.mrf.mxu2  ;;  %v522_v0 = vpop.f32.mrf.mxu3 }
 0x19a   : >> { %v489_v49 = vadd.f32 %v485_v63, %v452_v46 }
 0x19c   : >> { %v526_v54 = vadd.f32 %v522_v0, %v489_v49 }
 0x1a2   : >> { %v605_v9 = vpop.f32.mrf.mxu2  ;;  %v634_v11 = vpop.f32.mrf.mxu3 }
 0x1a3   : >> { %v611_v41 = vadd.f32 %v605_v9, %v582_v5 }
 0x1a5   : >> { %v640_v44 = vadd.f32 %v634_v11, %v611_v41 }
 0x1a7   : >> { %v642_v47 = vmax.f32 %v525_v42, %v640_v44 }
 0x1a9   : >> { %v644_v50 = vmax.f32 %v642_v47, 0.0 }
 0x1aa   : >> { %v608_v51 = vpop.f32.mrf.mxu2  ;;  %v637_v53 = vpop.f32.mrf.mxu3 }
 0x1ab   : >> { %v612_v52 = vadd.f32 %v608_v51, %v583_v48  ;;  %648 = vrot.lane.b32.xlu0 %v644_v50, %s3446_s20 }
 0x1ad   : >> { %v641_v55 = vadd.f32 %v637_v53, %v612_v52 }
 0x1af   : >> { %v643_v56 = vmax.f32 %v526_v54, %v641_v55 }
 0x1b1   : >> { %v645_v57 = vmax.f32 %v643_v56, 0.0 }
 0x1b3   : >> { %650 = vrot.lane.b32.xlu1 %v645_v57, %s3446_s20 }
 0x21d   : >> { %v649_v58 = vpop.permute.xlu0 %648 }
 0x21e   : >> { %v654_v59 = vmax.f32 %v644_v50, %v649_v58 }
 0x220   : >> { %2873 = vmatmul.msk.f32.vlgmr.msrb.gmra.mxu0 %vm656_vm15, %v654_v59 }
 0x225   : >> { %v651_v60 = vpop.permute.xlu1 %650 }
 0x226   : >> { %v655_v62 = vmax.f32 %v645_v57, %v651_v60 }
 0x228   : >> { %2874 = vmatmul.msk.f32.gmra.mxu0 %vm656_vm15, %v655_v62 }
 0x29d   : >> { %v684_v61 = vpop.f32.mrf.mxu0 }
 0x29e   : >> { %v690_v63 = vpack.c.bf16 %v684_v61, %v684_v61 }
 0x2a0   : >> { %698 = vst.msk [vmem:[%s696_s16] sm:$0xf] %vm697_vm11, %v690_v63 }
 0x2a4   : > { %375 = sbr.rel (!%p373_p11) target bundleno = 144 (0x90), region = 103 }
 0x2a5   : >> { %v687_v0 = vpop.f32.mrf.mxu0 }
 0x2a6   : >> { %v691_v1 = vpack.c.bf16 %v687_v0, %v687_v0 }
 0x2a8   : >> { %699 = vst.msk [vmem:[%s696_s16 + $0x4] sm:$0xf] %vm697_vm11, %v691_v1 }
 0x2a9 LB: >> { %s2877_s19 = sshll.u32 %s3440_s18, 5  ;;  %s3451_s23 = smov 127   ;;  %v2882_v19 = vor.u32 %v3639_v27, %v3629_v25  ;;  %v3813_v20 = vor.u32 %v3615_v23, %v3634_v26  ;;  %v3819_v21 = vor.u32 %v3654_v29, %v3664_v31  ;;  %v2886_v22 = vor.u32 %v3677_v32, %v3659_v30  ;;  %s3440_s18 = sphi %s3789_s18, %s705_s18  }
 0x2aa   : >> { %s707_s20 = sshra.s32 %s2877_s19, 3  ;;  %s3452_s14 = smov 126   ;;  %vm755_vm5 = vcmask 523264   ;;  %vm1070_vm6 = vcmask 1041408   ;;  %vm1057_vm7 = vcmask 343040   ;;  %vm1104_vm8 = vcmask 171008  }
 0x2ab   : >> { %s2878_s21 = sshll.u32 %s707_s20, 2  ;;  %s3453_s29 = smov 125  }
 0x2ac   : >> { %s710_s22 = scalar_lea.vmem [#allocation2], %s2878_s21  ;;  %s3454_s8 = smov 64  }
 0x2ad   : >> { %s1103_s9 = scalar_lea.vmem [#allocation3], %s2877_s19  ;;  %s705_s18 = sadd.s32 1, %s3440_s18  }
 0x2ae   : >> { %p702_p12 = scmp.ge.s32.totalorder %s705_s18, 21  }
 0x2af   : >> { %v3118_v2 = vld [vmem:[%s710_s22 + $0x18] sm:$0xff]  ;;  %v3117_v3 = vld [vmem:[%s710_s22 + $0x10] sm:$0xff]  ;;  %v3116_v10 = vld [vmem:[%s710_s22 + $0x8] sm:$0xff]  ;;  %s2742_s18 = scalar_lea.hbm (%p702_p12), %s5005_s7, %s3517_s28  ;;  %s3382_s16 = scalar_lea.hbm (%p702_p12), %s5005_s7, 2 }
 0x2b0   : >> { %795 = vrot.lane.b32.xlu1 %v3118_v2, %s3451_s23  ;;  %842 = vrot.lane.b32.xlu0 %v3118_v2, %s3452_s14  ;;  %v3115_v17 = vld [vmem:[%s710_s22] sm:$0xff]  ;;  %v1197_v14 = vld [vmem:[%s5003_s5 + $0x18] sm:$0xff] (%p702_p12) }
 0x2b1   : >> { %885 = vrot.lane.b32.xlu2 %v3117_v3, %s3453_s29  ;;  %3121 = vmatpush.bf16.msra.mxu1 %v3118_v2  ;;  %v3119_v18 = vld [vmem:[%s710_s22 + $0x20] sm:$0xff]  ;;  %v1195_v23 = vld [vmem:[%s5003_s5 + $0x8] sm:$0xff] (%p702_p12) }
 0x2b2   : >> { %766 = vmatpush.bf16.msra.mxu0 %v3118_v2  ;;  %v1199_v26 = vld [vmem:[%s5003_s5 + $0x28] sm:$0xff] (%p702_p12) }
 0x2b5   : >> { %3122 = vmatpush.bf16.msra.mxu1 %v3117_v3 }
 0x2b6   : >> { %767 = vmatpush.bf16.msra.mxu0 %v3117_v3 }
 0x2b8   : >> { %887 = vrot.lane.b32.xlu0 %v3118_v2, %s3453_s29  ;;  %840 = vrot.lane.b32.xlu1 %v3117_v3, %s3452_s14 }
 0x2b9   : >> { %793 = vrot.lane.b32.xlu2 %v3117_v3, %s3451_s23  ;;  %3123 = vmatpush.bf16.msra.mxu1 %v3116_v10 }
 0x2ba   : >> { %768 = vmatpush.bf16.msra.mxu0 %v3116_v10 }
 0x2bd   : >> { %3124 = vmatpush.bf16.msra.mxu1 %v3115_v17 }
 0x2be   : >> { %769 = vmatpush.bf16.msra.mxu0 %v3115_v17 }
 0x2c0   : >> { %883 = vrot.lane.b32.xlu1 %v3116_v10, %s3453_s29  ;;  %838 = vrot.lane.b32.xlu0 %v3116_v10, %s3452_s14 }
 0x2c1   : >> { %791 = vrot.lane.b32.xlu2 %v3116_v10, %s3451_s23  ;;  %2904 = vmatmul.msk.bf16.vlgmr.msra.gmra.mxu1 %vm755_vm5, %v2886_v22 }
 0x2c2   : >> { %932 = vmatpush.bf16.msrb.mxu0 %v3119_v18 }
 0x2c3   : >> { %2903 = vmatmul.msk.bf16.vlgmr.msra.gmra.mxu0 %vm755_vm5, %v2882_v19 }
 0x2c6   : >> { %933 = vmatpush.bf16.msrb.mxu0 %v3118_v2 }
 0x2c8   : >> { %881 = vrot.lane.b32.xlu1 %v3115_v17, %s3453_s29  ;;  %836 = vrot.lane.b32.xlu0 %v3115_v17, %s3452_s14 }
 0x2c9   : >> { %789 = vrot.lane.b32.xlu2 %v3115_v17, %s3451_s23 }
 0x2ca   : >> { %934 = vmatpush.bf16.msrb.mxu0 %v3117_v3 }
 0x2ce   : >> { %935 = vmatpush.bf16.msrb.mxu0 %v3116_v10 }
 0x2d0   : >> { %785 = vrot.lane.b32.xlu1 %v2882_v19, %s3454_s8  ;;  %877 = vrot.lane.b32.xlu0 %v3813_v20, %s3454_s8 }
 0x2d1   : >> { %977 = vrot.lane.b32.xlu2 %v3119_v18, %s3452_s14  ;;  %s2746_s14 = sshll.u32 (%p702_p12), %s2742_s18, 4  ;;  %s2747_s14 = int_to_ptr.hbm [resolvable:$true] %s2746_s14 }
 0x2d2   : >> { %2931 = vmatpush.msk.msra.mxu0 %vm1070_vm6, %v3683_v34 }
 0x2d3   : >> { %2923 = vmatmul.msk.bf16.vlgmr.msrb.gmra.mxu0 %vm755_vm5, %v2882_v19 }
 0x2d8   : >> { %1003 = vrot.lane.b32.xlu1 %v3119_v18, %s3453_s29  ;;  %879 = vrot.lane.b32.xlu0 %v3819_v21, %s3454_s8  ;;  %s2734_s29 = scalar_lea.sflag (%p702_p12), [#allocation5], %s269_s17 }
 0x2d9   : >> { %787 = vrot.lane.b32.xlu2 %v2886_v22, %s3454_s8  ;;  %s3376_s8 = sshra.s32 (%p702_p12), %s2747_s14, 4  ;;  %s3377_s8 = int_to_ptr.hbm [resolvable:$true] %s3376_s8 }
 0x2da   : > { %p3383_p2 = scmp.lt.s32.totalorder (%p702_p12), %s3377_s8, %s5005_s7 }
 0x2e0   : >> { %951 = vrot.lane.b32.xlu0 %v3119_v18, %s3451_s23 }
 0x2e3   : >> { %2924 = vmatmul.msk.bf16.gmra.mxu0 %vm755_vm5, %v2886_v22 }
 0x30b   : >> { %v886_v24 = vpop.permute.xlu2 %885 }
 0x313   : >> { %v794_v35 = vpop.permute.xlu2 %793 }
 0x31b   : >> { %v792_v4 = vpop.permute.xlu2 %791 }
 0x322   : >> { %v796_v38 = vpop.permute.xlu1 %795  ;;  %v843_v40 = vpop.permute.xlu0 %842 }
 0x323   : >> { %858 = vmatpush.bf16.msra.mxu2 %v843_v40  ;;  %811 = vmatpush.bf16.msrb.mxu1 %v796_v38  ;;  %v790_v7 = vpop.permute.xlu2 %789 }
 0x327   : >> { %812 = vmatpush.bf16.msrb.mxu1 %v794_v35 }
 0x32a   : >> { %v888_v5 = vpop.permute.xlu0 %887  ;;  %v841_v6 = vpop.permute.xlu1 %840 }
 0x32b   : >> { %903 = vmatpush.bf16.msra.mxu3 %v888_v5  ;;  %859 = vmatpush.bf16.msra.mxu2 %v841_v6  ;;  %v978_v33 = vpop.permute.xlu2 %977 }
 0x32c   : >> { %813 = vmatpush.bf16.msrb.mxu1 %v792_v4 }
 0x32f   : >> { %904 = vmatpush.bf16.msra.mxu3 %v886_v24 }
 0x330   : >> { %814 = vmatpush.bf16.msrb.mxu1 %v790_v7 }
 0x332   : >> { %v884_v9 = vpop.permute.xlu1 %883  ;;  %v839_v11 = vpop.permute.xlu0 %838 }
 0x333   : >> { %860 = vmatpush.bf16.msra.mxu2 %v839_v11  ;;  %905 = vmatpush.bf16.msra.mxu3 %v884_v9  ;;  %v788_v47 = vpop.permute.xlu2 %787 }
 0x33a   : >> { %v882_v41 = vpop.permute.xlu1 %881  ;;  %v837_v42 = vpop.permute.xlu0 %836 }
 0x33b   : >> { %861 = vmatpush.bf16.msra.mxu2 %v837_v42  ;;  %906 = vmatpush.bf16.msra.mxu3 %v882_v41 }
 0x33e   : >> { %2915 = vmatmul.msk.bf16.vlgmr.msra.gmra.mxu2 %vm755_vm5, %v3813_v20  ;;  %v776_v49 = vpop.f32.mrf.mxu1 }
 0x33f   : >> { %984 = vmatpush.bf16.msrb.mxu2 %v978_v33 }
 0x340   : >> { %v771_v53 = vpop.f32.mrf.mxu0 }
 0x341   : >> { %v781_v1 = vadd.f32 %v771_v53, %v3689_v37 }
 0x342   : >> { %v786_v43 = vpop.permute.xlu1 %785  ;;  %v878_v44 = vpop.permute.xlu0 %877 }
 0x343   : >> { %985 = vmatpush.bf16.msrb.mxu2 %v843_v40  ;;  %2905 = vmatmul.msk.bf16.vlgmr.msrb.gmra.mxu1 %vm755_vm5, %v786_v43 }
 0x344   : >> { %2917 = vmatmul.msk.bf16.vlgmr.msra.gmra.mxu3 %vm755_vm5, %v878_v44 }
 0x346   : >> { %v778_v50 = vpop.f32.mrf.mxu1 }
 0x347   : >> { %986 = vmatpush.bf16.msrb.mxu2 %v841_v6 }
 0x348   : >> { %v773_v57 = vpop.f32.mrf.mxu0 }
 0x349   : >> { %v782_v22 = vadd.f32 %v773_v57, %v3693_v39 }
 0x34a   : >> { %v1004_v45 = vpop.permute.xlu1 %1003  ;;  %v880_v46 = vpop.permute.xlu0 %879 }
 0x34b   : >> { %987 = vmatpush.bf16.msrb.mxu2 %v839_v11  ;;  %1010 = vmatpush.bf16.msrb.mxu3 %v1004_v45 }
 0x34e   : >> { %2916 = vmatmul.msk.bf16.gmra.mxu2 %vm755_vm5, %v3819_v21 }
 0x34f   : >> { %1011 = vmatpush.bf16.msrb.mxu3 %v888_v5  ;;  %3125 = vmatpush.msk.msra.mxu2 %vm1070_vm6, %v3683_v34 }
 0x350   : >> { %v937_v61 = vpop.f32.mrf.mxu0 }
 0x351   : >> { %v947_v2 = vadd.f32 %v937_v61, %v3689_v37 }
 0x352   : >> { %v952_v48 = vpop.permute.xlu0 %951 }
 0x353   : >> { %2906 = vmatmul.msk.bf16.gmra.mxu1 %vm755_vm5, %v788_v47  ;;  %1012 = vmatpush.bf16.msrb.mxu3 %v886_v24 }
 0x354   : >> { %2918 = vmatmul.msk.bf16.gmra.mxu3 %vm755_vm5, %v880_v46  ;;  %958 = vmatpush.bf16.msra.mxu1 %v952_v48 }
 0x357   : >> { %1013 = vmatpush.bf16.msrb.mxu3 %v884_v9 }
 0x358   : >> { %959 = vmatpush.bf16.msra.mxu1 %v796_v38  ;;  %v939_v18 = vpop.f32.mrf.mxu0 }
 0x359   : >> { %v948_v40 = vadd.f32 %v939_v18, %v3693_v39  ;;  %v1201_v39 = vld [vmem:[%s5003_s5 + $0x38] sm:$0xff] (%p702_p12) }
 0x35c   : >> { %960 = vmatpush.bf16.msra.mxu1 %v794_v35 }
 0x35e   : >> { %2927 = vmatmul.msk.bf16.vlgmr.msrb.gmra.mxu2 %vm755_vm5, %v3813_v20 }
 0x360   : >> { %961 = vmatpush.bf16.msra.mxu1 %v792_v4  ;;  %v942_v33 = vpop.f32.mrf.mxu0 }
 0x363   : >> { %2925 = vmatmul.msk.bf16.vlgmr.msra.gmra.mxu1 %vm755_vm5, %v786_v43 }
 0x364   : >> { %2929 = vmatmul.msk.bf16.vlgmr.msrb.gmra.mxu3 %vm755_vm5, %v878_v44  ;;  %v949_v44 = vadd.f32 %v942_v33, %v3649_v28 }
 0x368   : >> { %v944_v61 = vpop.f32.mrf.mxu0 }
 0x369   : >> { %v950_v18 = vadd.f32 %v944_v61, %v3687_v36 }
 0x36e   : >> { %2928 = vmatmul.msk.bf16.gmra.mxu2 %vm755_vm5, %v3819_v21 }
 0x373   : >> { %2926 = vmatmul.msk.bf16.gmra.mxu1 %vm755_vm5, %v788_v47 }
 0x374   : >> { %2930 = vmatmul.msk.bf16.gmra.mxu3 %vm755_vm5, %v880_v46  ;;  %v783_v46 = vadd.f32 %v776_v49, %v3649_v28 }
 0x3c0   : >> { %v816_v51 = vpop.f32.mrf.mxu1 }
 0x3c1   : >> { %v863_v52 = vpop.f32.mrf.mxu2  ;;  %v826_v10 = vadd.f32 %v816_v51, %v781_v1 }
 0x3c3   : >> { %v873_v21 = vadd.f32 %v863_v52, %v826_v10  ;;  %v784_v10 = vadd.f32 %v778_v50, %v3687_v36  ;;  %v3455_v50 = vmov 1.0  }
 0x3c4   : >> { %2932 = vmatpush.msk.msra.mxu0 %vm339_vm4, %v3455_v50  ;;  %3126 = vmatpush.msk.msra.mxu2 %vm339_vm4, %v3455_v50 }
 0x3c6   : >> { %2933 = vmatpush.msk.msra.mxu0 %vm338_vm3, %v3455_v50  ;;  %3127 = vmatpush.msk.msra.mxu2 %vm338_vm3, %v3455_v50 }
 0x3c7   : >> { %v908_v54 = vpop.f32.mrf.mxu3 }
 0x3c8   : >> { %v818_v55 = vpop.f32.mrf.mxu1  ;;  %v918_v38 = vadd.f32 %v908_v54, %v873_v21  ;;  %2934 = vmatpush.msk.msra.mxu0 %vm337_vm2, %v3455_v50  ;;  %3128 = vmatpush.msk.msra.mxu2 %vm337_vm2, %v3455_v50  ;;  %vm2731_vm2 = vcmask (%p702_p12), 16400  }
 0x3c9   : >> { %v865_v56 = vpop.f32.mrf.mxu2  ;;  %v827_v6 = vadd.f32 %v818_v55, %v782_v22 }
 0x3ca   : >> { %2935 = vmatpush.msk.msra.mxu0 %vm336_vm1, %v3455_v50  ;;  %3129 = vmatpush.msk.msra.mxu2 %vm336_vm1, %v3455_v50  ;;  %vm2218_vm1 = vcmask (%p702_p12), 8200  }
 0x3cb   : >> { %v874_v42 = vadd.f32 %v865_v56, %v827_v6 }
 0x3cc   : >> { %2936 = vmatpush.msk.msra.mxu0 %vm335_vm0, %v3455_v50  ;;  %3130 = vmatpush.msk.msra.mxu2 %vm335_vm0, %v3455_v50  ;;  %v1206_v50 = vld [vmem:[%s5003_s5 + $0x60] sm:$0xff] (%p702_p12)  ;;  %vm1705_vm0 = vcmask (%p702_p12), 0  }
 0x3cf   : >> { %v910_v58 = vpop.f32.mrf.mxu3 }
 0x3d0   : >> { %v821_v59 = vpop.f32.mrf.mxu1  ;;  %v919_v47 = vadd.f32 %v910_v58, %v874_v42 }
 0x3d1   : >> { %v868_v60 = vpop.f32.mrf.mxu2  ;;  %v828_v52 = vadd.f32 %v821_v59, %v783_v46 }
 0x3d3   : >> { %v875_v1 = vadd.f32 %v868_v60, %v828_v52  ;;  %v1198_v52 = vld [vmem:[%s5003_s5 + $0x20] sm:$0xff] (%p702_p12) }
 0x3d7   : >> { %v913_v62 = vpop.f32.mrf.mxu3 }
 0x3d8   : >> { %v823_v63 = vpop.f32.mrf.mxu1 }
 0x3d9   : >> { %v870_v0 = vpop.f32.mrf.mxu2 }
 0x3df   : >> { %v915_v3 = vpop.f32.mrf.mxu3 }
 0x3e0   : >> { %v963_v17 = vpop.f32.mrf.mxu1 }
 0x3e1   : >> { %v973_v19 = vadd.f32 %v963_v17, %v947_v2  ;;  %v989_v20 = vpop.f32.mrf.mxu2  ;;  %v920_v17 = vadd.f32 %v913_v62, %v875_v1 }
 0x3e3   : >> { %v999_v24 = vadd.f32 %v989_v20, %v973_v19  ;;  %v829_v19 = vadd.f32 %v823_v63, %v784_v10 }
 0x3e7   : >> { %v1015_v35 = vpop.f32.mrf.mxu3 }
 0x3e8   : >> { %v1025_v4 = vadd.f32 %v1015_v35, %v999_v24  ;;  %v965_v5 = vpop.f32.mrf.mxu1  ;;  %v876_v24 = vadd.f32 %v870_v0, %v829_v19  ;;  %v1203_v19 = vld [vmem:[%s5003_s5 + $0x48] sm:$0xff] (%p702_p12) }
 0x3e9   : >> { %v974_v9 = vadd.f32 %v965_v5, %v948_v40  ;;  %v991_v11 = vpop.f32.mrf.mxu2 }
 0x3ea   : >> { %v1029_v7 = vmax.f32 %v918_v38, %v1025_v4  ;;  %v921_v38 = vadd.f32 %v915_v3, %v876_v24 }
 0x3eb   : >> { %v1000_v43 = vadd.f32 %v991_v11, %v974_v9 }
 0x3ec   : >> { %v1033_v41 = vmax.f32 %v1029_v7, 0.0 }
 0x3ee   : >> { %1041 = vrot.lane.b32.xlu1 %v1033_v41, %s3451_s23 }
 0x3ef   : >> { %v1017_v45 = vpop.f32.mrf.mxu3 }
 0x3f0   : >> { %v1026_v48 = vadd.f32 %v1017_v45, %v1000_v43  ;;  %v968_v51 = vpop.f32.mrf.mxu1  ;;  %v1196_v45 = vld [vmem:[%s5003_s5 + $0x10] sm:$0xff] (%p702_p12) }
 0x3f1   : >> { %v975_v54 = vadd.f32 %v968_v51, %v949_v44  ;;  %v994_v55 = vpop.f32.mrf.mxu2 }
 0x3f2   : >> { %v1030_v53 = vmax.f32 %v919_v47, %v1026_v48  ;;  %v1194_v48 = vld [vmem:[%s5003_s5] sm:$0xff] (%p702_p12) }
 0x3f3   : >> { %v1001_v2 = vadd.f32 %v994_v55, %v975_v54  ;;  %v1200_v54 = vld [vmem:[%s5003_s5 + $0x30] sm:$0xff] (%p702_p12) }
 0x3f4   : >> { %v1034_v57 = vmax.f32 %v1030_v53, 0.0 }
 0x3f6   : >> { %1043 = vrot.lane.b32.xlu2 %v1034_v57, %s3451_s23 }
 0x3f7   : >> { %v1020_v56 = vpop.f32.mrf.mxu3 }
 0x3f8   : >> { %v1027_v49 = vadd.f32 %v1020_v56, %v1001_v2  ;;  %v970_v58 = vpop.f32.mrf.mxu1 }
 0x3f9   : >> { %v976_v59 = vadd.f32 %v970_v58, %v950_v18  ;;  %v996_v21 = vpop.f32.mrf.mxu2 }
 0x3fa   : >> { %v1031_v20 = vmax.f32 %v920_v17, %v1027_v49  ;;  %v1204_v49 = vld [vmem:[%s5003_s5 + $0x50] sm:$0xff] (%p702_p12) }
 0x3fb   : >> { %v1002_v35 = vadd.f32 %v996_v21, %v976_v59  ;;  %v1205_v59 = vld [vmem:[%s5003_s5 + $0x58] sm:$0xff] (%p702_p12) }
 0x3fc   : >> { %v1035_v22 = vmax.f32 %v1031_v20, 0.0 }
 0x3fe   : >> { %1045 = vrot.lane.b32.xlu1 %v1035_v22, %s3451_s23 }
 0x3ff   : >> { %v1022_v60 = vpop.f32.mrf.mxu3 }
 0x400   : >> { %v1028_v40 = vadd.f32 %v1022_v60, %v1002_v35 }
 0x402   : >> { %v1032_v4 = vmax.f32 %v921_v38, %v1028_v40 }
 0x404   : >> { %v1036_v5 = vmax.f32 %v1032_v4, 0.0  ;;  %v1207_v4 = vld [vmem:[%s5003_s5 + $0x68] sm:$0xff] (%p702_p12) }
 0x406   : >> { %1047 = vrot.lane.b32.xlu0 %v1036_v5, %s3451_s23  ;;  %s2744_s23 = sshll.u32 (%p702_p12), %s3699_s13, 4  ;;  %s2745_s23 = int_to_ptr.vmem [resolvable:$true] %s2744_s23 }
 0x450   : >> { %v1044_v0 = vpop.permute.xlu2 %1043 }
 0x451   : >> { %v1054_v3 = vmax.f32 %v1034_v57, %v1044_v0  ;;  %v1202_v57 = vld [vmem:[%s5003_s5 + $0x40] sm:$0xff] (%p702_p12) }
 0x460   : >> { %v1042_v62 = vpop.permute.xlu1 %1041 }
 0x461   : >> { %v1053_v63 = vmax.f32 %v1033_v41, %v1042_v62 }
 0x463   : >> { %2937 = vmatmul.msk.f32.vlgmr.msra.gmra.mxu0 %vm1057_vm7, %v1053_v63  ;;  %v1208_v63 = vld [vmem:[%s5003_s5 + $0x70] sm:$0xff] (%p702_p12) }
 0x46b   : >> { %2938 = vmatmul.msk.f32.gmra.mxu0 %vm1057_vm7, %v1054_v3 }
 0x470   : >> { %v1046_v6 = vpop.permute.xlu1 %1045 }
 0x471   : >> { %v1055_v7 = vmax.f32 %v1035_v22, %v1046_v6 }
 0x473   : >> { %2939 = vmatmul.msk.f32.gmra.mxu0 %vm1057_vm7, %v1055_v7 }
 0x478   : >> { %v1048_v9 = vpop.permute.xlu0 %1047 }
 0x479   : >> { %v1056_v11 = vmax.f32 %v1036_v5, %v1048_v9 }
 0x47b   : >> { %2940 = vmatmul.msk.f32.vlgmr.msra.gmra.mxu2 %vm1057_vm7, %v1056_v11 }
 0x4e0   : >> { %v1091_v33 = vpop.f32.mrf.mxu0 }
 0x4e1   : >> { %1105 = vst.msk [vmem:[%s1103_s9] sm:$0xff] %vm1104_vm8, %v1091_v33 }
 0x4e8   : >> { %v1094_v42 = vpop.f32.mrf.mxu0 }
 0x4e9   : >> { %1106 = vst.msk [vmem:[%s1103_s9 + $0x8] sm:$0xff] %vm1104_vm8, %v1094_v42  ;;  %v1210_v42 = vld [vmem:[%s5003_s5 + $0x80] sm:$0xff] (%p702_p12) }
 0x4f0   : >> { %v1097_v41 = vpop.f32.mrf.mxu0 }
 0x4f1   : >> { %1107 = vst.msk [vmem:[%s1103_s9 + $0x10] sm:$0xff] %vm1104_vm8, %v1097_v41 }
 0x4fb   : > { %704 = sbr.rel (!%p702_p12) target bundleno = 681 (0x2a9), region = 114 }
 0x4fe   : >> { %v1100_v43 = vpop.f32.mrf.mxu2 }
 0x4ff   : >> { %1108 = vst.msk [vmem:[%s1103_s9 + $0x18] sm:$0xff] %vm1104_vm8, %v1100_v43  ;;  %v1209_v43 = vld [vmem:[%s5003_s5 + $0x78] sm:$0xff] (%p702_p12)  ;;  %s3378_s9 = scalar_lea.hbm (%p702_p12), %s3377_s8, 1 }
 0x500   : > { %p3379_p13 = scmp.ne.s32.totalorder %s3377_s8, %s3378_s9  ;;  %p3384_p3 = scmp.lt.s32.totalorder %s3382_s16, %s3378_s9 }
 0x502   : > { %p3380_p0 = pnand %p3379_p13, %p3534_p5  ;;  %p3385_p4 = por %p3384_p3, %p3383_p2 }
 0x504   : > { %p3381_p1 = pneg %p3380_p0 }
 0x506   : > { %v3899_v44 = vld [vmem:[#allocation3 + $0x10] sm:$0xff]  ;;  %v3904_v46 = vld [vmem:[#allocation3] sm:$0xff]  ;;  %v3914_v13 = vld [vmem:[#allocation3 + $0x18] sm:$0xff]  ;;  %p3386_p7 = pnand %p3385_p4, %p3381_p1 }
 0x507   : > { %v1280_v47 = vmul.f32 %v1196_v45, %v3899_v44  ;;  %v1113_v51 = vld [vmem:[#allocation3 + $0x20] sm:$0xff]  ;;  %v1278_v8 = vmul.f32 %v1194_v48, %v3904_v46  ;;  %v3919_v15 = vld [vmem:[#allocation3 + $0x8] sm:$0xff]  ;;  %v1281_v29 = vmul.f32 %v1197_v14, %v3914_v13  ;;  %v3938_v37 = vld [vmem:[#allocation3 + $0x38] sm:$0xff] }
 0x508   : > { %v1282_v12 = vmul.f32 %v1198_v52, %v1113_v51  ;;  %v3925_v25 = vld [vmem:[#allocation3 + $0x28] sm:$0xff]  ;;  %v1279_v30 = vmul.f32 %v1195_v23, %v3919_v15  ;;  %v3943_v53 = vld [vmem:[#allocation3 + $0x30] sm:$0xff]  ;;  %v3948_v55 = vld [vmem:[#allocation3 + $0x40] sm:$0xff]  ;;  %v1285_v61 = vmul.f32 %v1201_v39, %v3938_v37 }
 0x509   : > { %v1369_v16 = vsel %vm1104_vm8, %v1280_v47, 0.0  ;;  %v1363_v27 = vsel %vm1104_vm8, %v1278_v8, 0.0  ;;  %v1283_v31 = vmul.f32 %v1199_v26, %v3925_v25  ;;  %v1372_v32 = vsel %vm1104_vm8, %v1281_v29, 0.0  ;;  %v3959_v18 = vld [vmem:[#allocation3 + $0x50] sm:$0xff]  ;;  %v3964_v58 = vld [vmem:[#allocation3 + $0x48] sm:$0xff]  ;;  %v3969_v20 = vld [vmem:[#allocation3 + $0x58] sm:$0xff] }
 0x50a   : > { %1370 = vadd.xlane.f32.xlu1 %v1369_v16  ;;  %v1375_v28 = vsel %vm1104_vm8, %v1282_v12, 0.0  ;;  %1364 = vadd.xlane.f32.xlu0 %v1363_v27  ;;  %v1366_v34 = vsel %vm1104_vm8, %v1279_v30, 0.0  ;;  %v1284_v1 = vmul.f32 %v1200_v54, %v3943_v53  ;;  %v1286_v2 = vmul.f32 %v1202_v57, %v3948_v55  ;;  %v1122_v40 = vld [vmem:[#allocation3 + $0x68] sm:$0xff]  ;;  %v1121_v5 = vld [vmem:[#allocation3 + $0x60] sm:$0xff]  ;;  %v1123_v62 = vld [vmem:[#allocation3 + $0x70] sm:$0xff] }
 0x50b   : > { %1376 = vadd.xlane.f32.xlu2 %v1375_v28  ;;  %v1378_v36 = vsel %vm1104_vm8, %v1283_v31, 0.0  ;;  %v1384_v56 = vsel %vm1104_vm8, %v1285_v61, 0.0  ;;  %v1288_v21 = vmul.f32 %v1204_v49, %v3959_v18  ;;  %v1287_v22 = vmul.f32 %v1203_v19, %v3964_v58  ;;  %v1125_v33 = vld [vmem:[#allocation3 + $0x80] sm:$0xff]  ;;  %v1124_v41 = vld [vmem:[#allocation3 + $0x78] sm:$0xff]  ;;  %v1126_v45 = vld [vmem:[#allocation3 + $0x88] sm:$0xff] }
 0x50c   : > { %v1381_v10 = vsel %vm1104_vm8, %v1284_v1, 0.0  ;;  %v1387_v17 = vsel %vm1104_vm8, %v1286_v2, 0.0  ;;  %v1289_v24 = vmul.f32 %v1205_v59, %v3969_v20  ;;  %v1291_v0 = vmul.f32 %v1207_v4, %v1122_v40  ;;  %v1211_v47 = vld [vmem:[%s5003_s5 + $0x88] sm:$0xff]  ;;  %v1213_v23 = vld [vmem:[%s5003_s5 + $0x98] sm:$0xff]  ;;  %v1127_v26 = vld [vmem:[#allocation3 + $0x90] sm:$0xff] }
 0x50d   : > { %v1393_v35 = vsel %vm1104_vm8, %v1288_v21, 0.0  ;;  %v1390_v60 = vsel %vm1104_vm8, %v1287_v22, 0.0  ;;  %v1290_v3 = vmul.f32 %v1206_v50, %v1121_v5  ;;  %v1292_v6 = vmul.f32 %v1208_v63, %v1123_v62  ;;  %v1128_v16 = vld [vmem:[#allocation3 + $0x98] sm:$0xff]  ;;  %v1212_v27 = vld [vmem:[%s5003_s5 + $0x90] sm:$0xff]  ;;  %v1214_v29 = vld [vmem:[%s5003_s5 + $0xa0] sm:$0xff] }
 0x50e   : > { %v1396_v38 = vsel %vm1104_vm8, %v1289_v24, 0.0  ;;  %v1402_v7 = vsel %vm1104_vm8, %v1291_v0, 0.0  ;;  %v1294_v48 = vmul.f32 %v1210_v42, %v1125_v33  ;;  %v1293_v51 = vmul.f32 %v1209_v43, %v1124_v41  ;;  %v1129_v28 = vld [vmem:[#allocation3 + $0xa0] sm:$0xff]  ;;  %v1131_v54 = vld [vmem:[#allocation3 + $0xb0] sm:$0xff]  ;;  %v1130_v61 = vld [vmem:[#allocation3 + $0xa8] sm:$0xff] }
 0x50f   : > { %v1399_v9 = vsel %vm1104_vm8, %v1290_v3, 0.0  ;;  %v1405_v11 = vsel %vm1104_vm8, %v1292_v6, 0.0  ;;  %v1295_v52 = vmul.f32 %v1211_v47, %v1126_v45  ;;  %v1297_v30 = vmul.f32 %v1213_v23, %v1128_v16  ;;  %v1216_v57 = vld [vmem:[%s5003_s5 + $0xb0] sm:$0xff]  ;;  %v1215_v1 = vld [vmem:[%s5003_s5 + $0xa8] sm:$0xff]  ;;  %v1134_v22 = vld [vmem:[#allocation3 + $0xc8] sm:$0xff] }
 0x510   : > { %v1411_v8 = vsel %vm1104_vm8, %v1294_v48, 0.0  ;;  %v1408_v12 = vsel %vm1104_vm8, %v1293_v51, 0.0  ;;  %v1296_v31 = vmul.f32 %v1212_v27, %v1127_v26  ;;  %v1132_v2 = vld [vmem:[#allocation3 + $0xb8] sm:$0xff]  ;;  %v1220_v40 = vld [vmem:[%s5003_s5 + $0xd0] sm:$0xff]  ;;  %v1222_v6 = vld [vmem:[%s5003_s5 + $0xe0] sm:$0xff] }
 0x511   : > { %v1414_v14 = vsel %vm1104_vm8, %v1295_v52, 0.0  ;;  %v1219_v24 = vld [vmem:[%s5003_s5 + $0xc8] sm:$0xff]  ;;  %v1137_v3 = vld [vmem:[#allocation3 + $0xe0] sm:$0xff]  ;;  %v1225_v52 = vld [vmem:[%s5003_s5 + $0xf8] sm:$0xff] }
 0x512   : > { %1373 = vadd.xlane.f32.xlu1 %v1372_v32  ;;  %1367 = vadd.xlane.f32.xlu0 %v1366_v34  ;;  %v1298_v32 = vmul.f32 %v1214_v29, %v1129_v28  ;;  %v1420_v34 = vsel %vm1104_vm8, %v1297_v30, 0.0  ;;  %v1303_v4 = vmul.f32 %v1219_v24, %v1134_v22  ;;  %v1223_v33 = vld [vmem:[%s5003_s5 + $0xe8] sm:$0xff]  ;;  %v1306_v42 = vmul.f32 %v1222_v6, %v1137_v3  ;;  %v1226_v16 = vld [vmem:[%s5003_s5 + $0x100] sm:$0xff]  ;;  %v1232_v22 = vld [vmem:[%s5003_s5 + $0x130] sm:$0xff] }
 0x513   : > { %1379 = vadd.xlane.f32.xlu2 %v1378_v36  ;;  %v1417_v36 = vsel %vm1104_vm8, %v1296_v31, 0.0  ;;  %v1140_v51 = vld [vmem:[#allocation3 + $0xf8] sm:$0xff]  ;;  %v1143_v31 = vld [vmem:[#allocation3 + $0x110] sm:$0xff] }
 0x514   : > { %v1423_v39 = vsel %vm1104_vm8, %v1298_v32, 0.0  ;;  %v1438_v62 = vsel %vm1104_vm8, %v1303_v4, 0.0  ;;  %v1447_v45 = vsel %vm1104_vm8, %v1306_v42, 0.0  ;;  %v1309_v23 = vmul.f32 %v1225_v52, %v1140_v51  ;;  %v1228_v32 = vld [vmem:[%s5003_s5 + $0x110] sm:$0xff]  ;;  %v1235_v3 = vld [vmem:[%s5003_s5 + $0x148] sm:$0xff]  ;;  %v1238_v51 = vld [vmem:[%s5003_s5 + $0x160] sm:$0xff] }
 0x516   : > { %v1456_v28 = vsel %vm1104_vm8, %v1309_v23, 0.0 }
 0x51a   : > { %1385 = vadd.xlane.f32.xlu1 %v1384_v56  ;;  %1382 = vadd.xlane.f32.xlu0 %v1381_v10  ;;  %v1217_v56 = vld [vmem:[%s5003_s5 + $0xb8] sm:$0xff]  ;;  %v1300_v10 = vmul.f32 %v1216_v57, %v1131_v54  ;;  %v1312_v57 = vmul.f32 %v1228_v32, %v1143_v31 }
 0x51b   : > { %1388 = vadd.xlane.f32.xlu2 %v1387_v17  ;;  %v1299_v17 = vmul.f32 %v1215_v1, %v1130_v61  ;;  %v1301_v49 = vmul.f32 %v1217_v56, %v1132_v2  ;;  %v1229_v54 = vld [vmem:[%s5003_s5 + $0x118] sm:$0xff] }
 0x51c   : > { %v1429_v19 = vsel %vm1104_vm8, %v1300_v10, 0.0  ;;  %v1465_v2 = vsel %vm1104_vm8, %v1312_v57, 0.0  ;;  %v1241_v31 = vld [vmem:[%s5003_s5 + $0x178] sm:$0xff] }
 0x51d   : > { %v1426_v59 = vsel %vm1104_vm8, %v1299_v17, 0.0  ;;  %v1432_v21 = vsel %vm1104_vm8, %v1301_v49, 0.0  ;;  %v1146_v17 = vld [vmem:[#allocation3 + $0x128] sm:$0xff]  ;;  %v1231_v49 = vld [vmem:[%s5003_s5 + $0x128] sm:$0xff] }
 0x51e   : > { %v1315_v24 = vmul.f32 %v1231_v49, %v1146_v17  ;;  %v1157_v17 = vld [vmem:[#allocation3 + $0x180] sm:$0xff]  ;;  %v1242_v49 = vld [vmem:[%s5003_s5 + $0x180] sm:$0xff] }
 0x522   : > { %1394 = vadd.xlane.f32.xlu1 %v1393_v35  ;;  %1391 = vadd.xlane.f32.xlu0 %v1390_v60  ;;  %v1133_v35 = vld [vmem:[#allocation3 + $0xc0] sm:$0xff]  ;;  %v1218_v60 = vld [vmem:[%s5003_s5 + $0xc0] sm:$0xff] }
 0x523   : > { %1397 = vadd.xlane.f32.xlu2 %v1396_v38  ;;  %v1135_v38 = vld [vmem:[#allocation3 + $0xd0] sm:$0xff]  ;;  %v1302_v5 = vmul.f32 %v1218_v60, %v1133_v35 }
 0x524   : > { %v1304_v50 = vmul.f32 %v1220_v40, %v1135_v38  ;;  %v1474_v38 = vsel %vm1104_vm8, %v1315_v24, 0.0 }
 0x525   : > { %v1435_v63 = vsel %vm1104_vm8, %v1302_v5, 0.0  ;;  %v1149_v5 = vld [vmem:[#allocation3 + $0x140] sm:$0xff] }
 0x526   : > { %v1441_v0 = vsel %vm1104_vm8, %v1304_v50, 0.0  ;;  %v1234_v50 = vld [vmem:[%s5003_s5 + $0x140] sm:$0xff] }
 0x527   : > { %v1318_v6 = vmul.f32 %v1234_v50, %v1149_v5 }
 0x52a   : > { %1403 = vadd.xlane.f32.xlu1 %v1402_v7  ;;  %1400 = vadd.xlane.f32.xlu0 %v1399_v9  ;;  %v1136_v7 = vld [vmem:[#allocation3 + $0xd8] sm:$0xff]  ;;  %v1221_v9 = vld [vmem:[%s5003_s5 + $0xd8] sm:$0xff] }
 0x52b   : > { %1406 = vadd.xlane.f32.xlu2 %v1405_v11  ;;  %v1138_v11 = vld [vmem:[#allocation3 + $0xe8] sm:$0xff]  ;;  %v1305_v41 = vmul.f32 %v1221_v9, %v1136_v7 }
 0x52c   : > { %v1307_v43 = vmul.f32 %v1223_v33, %v1138_v11  ;;  %v1483_v11 = vsel %vm1104_vm8, %v1318_v6, 0.0  ;;  %v1245_v6 = vld [vmem:[%s5003_s5 + $0x198] sm:$0xff] }
 0x52d   : > { %v1444_v47 = vsel %vm1104_vm8, %v1305_v41, 0.0  ;;  %v1152_v41 = vld [vmem:[#allocation3 + $0x158] sm:$0xff] }
 0x52e   : > { %v1450_v48 = vsel %vm1104_vm8, %v1307_v43, 0.0  ;;  %v1237_v43 = vld [vmem:[%s5003_s5 + $0x158] sm:$0xff] }
 0x52f   : > { %v1321_v52 = vmul.f32 %v1237_v43, %v1152_v41 }
 0x532   : > { %1412 = vadd.xlane.f32.xlu1 %v1411_v8  ;;  %1409 = vadd.xlane.f32.xlu0 %v1408_v12  ;;  %v1139_v8 = vld [vmem:[#allocation3 + $0xf0] sm:$0xff]  ;;  %v1224_v12 = vld [vmem:[%s5003_s5 + $0xf0] sm:$0xff] }
 0x533   : > { %1415 = vadd.xlane.f32.xlu2 %v1414_v14  ;;  %v1141_v14 = vld [vmem:[#allocation3 + $0x100] sm:$0xff]  ;;  %v1308_v26 = vmul.f32 %v1224_v12, %v1139_v8 }
 0x534   : > { %v1310_v27 = vmul.f32 %v1226_v16, %v1141_v14  ;;  %v1492_v14 = vsel %vm1104_vm8, %v1321_v52, 0.0 }
 0x535   : > { %v1453_v29 = vsel %vm1104_vm8, %v1308_v26, 0.0  ;;  %v1155_v26 = vld [vmem:[#allocation3 + $0x170] sm:$0xff] }
 0x536   : > { %v1459_v30 = vsel %vm1104_vm8, %v1310_v27, 0.0  ;;  %v1240_v27 = vld [vmem:[%s5003_s5 + $0x170] sm:$0xff] }
 0x537   : > { %v1324_v32 = vmul.f32 %v1240_v27, %v1155_v26  ;;  %v1248_v27 = vld [vmem:[%s5003_s5 + $0x1b0] sm:$0xff] }
 0x53a   : > { %1421 = vadd.xlane.f32.xlu1 %v1420_v34  ;;  %1418 = vadd.xlane.f32.xlu0 %v1417_v36  ;;  %v1142_v34 = vld [vmem:[#allocation3 + $0x108] sm:$0xff]  ;;  %v1227_v36 = vld [vmem:[%s5003_s5 + $0x108] sm:$0xff] }
 0x53b   : > { %1424 = vadd.xlane.f32.xlu2 %v1423_v39  ;;  %v1144_v39 = vld [vmem:[#allocation3 + $0x118] sm:$0xff]  ;;  %v1311_v61 = vmul.f32 %v1227_v36, %v1142_v34 }
 0x53c   : > { %v1313_v1 = vmul.f32 %v1229_v54, %v1144_v39 }
 0x53d   : > { %v1462_v56 = vsel %vm1104_vm8, %v1311_v61, 0.0  ;;  %v1501_v61 = vsel %vm1104_vm8, %v1324_v32, 0.0 }
 0x53e   : > { %v1468_v10 = vsel %vm1104_vm8, %v1313_v1, 0.0 }
 0x542   : > { %1430 = vadd.xlane.f32.xlu1 %v1429_v19  ;;  %1427 = vadd.xlane.f32.xlu0 %v1426_v59  ;;  %v1145_v19 = vld [vmem:[#allocation3 + $0x120] sm:$0xff]  ;;  %v1230_v59 = vld [vmem:[%s5003_s5 + $0x120] sm:$0xff] }
 0x543   : > { %1433 = vadd.xlane.f32.xlu2 %v1432_v21  ;;  %v1147_v21 = vld [vmem:[#allocation3 + $0x130] sm:$0xff]  ;;  %v1314_v35 = vmul.f32 %v1230_v59, %v1145_v19  ;;  %v1244_v59 = vld [vmem:[%s5003_s5 + $0x190] sm:$0xff] }
 0x544   : > { %v1316_v60 = vmul.f32 %v1232_v22, %v1147_v21  ;;  %v1159_v19 = vld [vmem:[#allocation3 + $0x190] sm:$0xff]  ;;  %v1326_v22 = vmul.f32 %v1242_v49, %v1157_v17  ;;  %v1252_v17 = vld [vmem:[%s5003_s5 + $0x1d0] sm:$0xff]  ;;  %v1166_v49 = vld [vmem:[#allocation3 + $0x1c8] sm:$0xff] }
 0x545   : > { %v1471_v40 = vsel %vm1104_vm8, %v1314_v35, 0.0  ;;  %v1328_v24 = vmul.f32 %v1244_v59, %v1159_v19  ;;  %v1251_v59 = vld [vmem:[%s5003_s5 + $0x1c8] sm:$0xff] }
 0x546   : > { %v1477_v4 = vsel %vm1104_vm8, %v1316_v60, 0.0  ;;  %v1507_v5 = vsel %vm1104_vm8, %v1326_v22, 0.0  ;;  %v1253_v22 = vld [vmem:[%s5003_s5 + $0x1d8] sm:$0xff] }
 0x547   : > { %v1513_v50 = vsel %vm1104_vm8, %v1328_v24, 0.0 }
 0x54a   : > { %1439 = vadd.xlane.f32.xlu1 %v1438_v62  ;;  %1436 = vadd.xlane.f32.xlu0 %v1435_v63  ;;  %v1148_v62 = vld [vmem:[#allocation3 + $0x138] sm:$0xff]  ;;  %v1233_v63 = vld [vmem:[%s5003_s5 + $0x138] sm:$0xff] }
 0x54b   : > { %1442 = vadd.xlane.f32.xlu2 %v1441_v0  ;;  %v1150_v0 = vld [vmem:[#allocation3 + $0x148] sm:$0xff]  ;;  %v1317_v7 = vmul.f32 %v1233_v63, %v1148_v62  ;;  %v1161_v62 = vld [vmem:[#allocation3 + $0x1a0] sm:$0xff]  ;;  %v1246_v63 = vld [vmem:[%s5003_s5 + $0x1a0] sm:$0xff] }
 0x54c   : > { %v1319_v9 = vmul.f32 %v1235_v3, %v1150_v0  ;;  %v1160_v0 = vld [vmem:[#allocation3 + $0x198] sm:$0xff] }
 0x54d   : > { %v1480_v33 = vsel %vm1104_vm8, %v1317_v7, 0.0  ;;  %v1162_v7 = vld [vmem:[#allocation3 + $0x1a8] sm:$0xff] }
 0x54e   : > { %v1486_v42 = vsel %vm1104_vm8, %v1319_v9, 0.0  ;;  %v1247_v9 = vld [vmem:[%s5003_s5 + $0x1a8] sm:$0xff] }
 0x54f   : > { %v1331_v41 = vmul.f32 %v1247_v9, %v1162_v7  ;;  %v1169_v7 = vld [vmem:[#allocation3 + $0x1e0] sm:$0xff] }
 0x552   : > { %1448 = vadd.xlane.f32.xlu1 %v1447_v45  ;;  %1445 = vadd.xlane.f32.xlu0 %v1444_v47  ;;  %v1151_v45 = vld [vmem:[#allocation3 + $0x150] sm:$0xff]  ;;  %v1236_v47 = vld [vmem:[%s5003_s5 + $0x150] sm:$0xff] }
 0x553   : > { %1451 = vadd.xlane.f32.xlu2 %v1450_v48  ;;  %v1153_v48 = vld [vmem:[#allocation3 + $0x160] sm:$0xff]  ;;  %v1320_v8 = vmul.f32 %v1236_v47, %v1151_v45 }
 0x554   : > { %v1322_v12 = vmul.f32 %v1238_v51, %v1153_v48 }
 0x555   : > { %v1489_v16 = vsel %vm1104_vm8, %v1320_v8, 0.0 }
 0x556   : > { %v1495_v23 = vsel %vm1104_vm8, %v1322_v12, 0.0  ;;  %v1522_v12 = vsel %vm1104_vm8, %v1331_v41, 0.0 }
 0x55a   : > { %1457 = vadd.xlane.f32.xlu1 %v1456_v28  ;;  %1454 = vadd.xlane.f32.xlu0 %v1453_v29  ;;  %v1154_v28 = vld [vmem:[#allocation3 + $0x168] sm:$0xff]  ;;  %v1239_v29 = vld [vmem:[%s5003_s5 + $0x168] sm:$0xff] }
 0x55b   : > { %1460 = vadd.xlane.f32.xlu2 %v1459_v30  ;;  %v1156_v30 = vld [vmem:[#allocation3 + $0x178] sm:$0xff]  ;;  %v1323_v34 = vmul.f32 %v1239_v29, %v1154_v28  ;;  %v1165_v28 = vld [vmem:[#allocation3 + $0x1c0] sm:$0xff]  ;;  %v1250_v29 = vld [vmem:[%s5003_s5 + $0x1c0] sm:$0xff] }
 0x55c   : > { %v1325_v36 = vmul.f32 %v1241_v31, %v1156_v30 }
 0x55d   : > { %v1498_v1 = vsel %vm1104_vm8, %v1323_v34, 0.0  ;;  %v1334_v34 = vmul.f32 %v1250_v29, %v1165_v28  ;;  %v1257_v29 = vld [vmem:[%s5003_s5 + $0x1f8] sm:$0xff] }
 0x562   : > { %1466 = vadd.xlane.f32.xlu1 %v1465_v2  ;;  %1463 = vadd.xlane.f32.xlu0 %v1462_v56  ;;  %v1504_v2 = vsel %vm1104_vm8, %v1325_v36, 0.0  ;;  %v1158_v56 = vld [vmem:[#allocation3 + $0x188] sm:$0xff] }
 0x563   : > { %1469 = vadd.xlane.f32.xlu2 %v1468_v10  ;;  %v1243_v10 = vld [vmem:[%s5003_s5 + $0x188] sm:$0xff] }
 0x564   : > { %v1327_v21 = vmul.f32 %v1243_v10, %v1158_v56  ;;  %v1531_v56 = vsel %vm1104_vm8, %v1334_v34, 0.0  ;;  %v1167_v10 = vld [vmem:[#allocation3 + $0x1d0] sm:$0xff] }
 0x565   : > { %v1336_v24 = vmul.f32 %v1252_v17, %v1167_v10  ;;  %v1176_v17 = vld [vmem:[#allocation3 + $0x218] sm:$0xff] }
 0x56a   : > { %1475 = vadd.xlane.f32.xlu1 %v1474_v38  ;;  %1472 = vadd.xlane.f32.xlu0 %v1471_v40 }
 0x56b   : > { %1478 = vadd.xlane.f32.xlu2 %v1477_v4  ;;  %v1510_v4 = vsel %vm1104_vm8, %v1327_v21, 0.0  ;;  %v1168_v21 = vld [vmem:[#allocation3 + $0x1d8] sm:$0xff] }
 0x572   : > { %1484 = vadd.xlane.f32.xlu1 %v1483_v11  ;;  %1481 = vadd.xlane.f32.xlu0 %v1480_v33  ;;  %v1330_v33 = vmul.f32 %v1246_v63, %v1161_v62  ;;  %v1537_v62 = vsel %vm1104_vm8, %v1336_v24, 0.0  ;;  %v1262_v24 = vld [vmem:[%s5003_s5 + $0x220] sm:$0xff] }
 0x573   : > { %1487 = vadd.xlane.f32.xlu2 %v1486_v42  ;;  %v1329_v42 = vmul.f32 %v1245_v6, %v1160_v0  ;;  %v1255_v6 = vld [vmem:[%s5003_s5 + $0x1e8] sm:$0xff] }
 0x574   : > { %v1519_v52 = vsel %vm1104_vm8, %v1330_v33, 0.0  ;;  %v1171_v33 = vld [vmem:[#allocation3 + $0x1f0] sm:$0xff] }
 0x575   : > { %v1516_v8 = vsel %vm1104_vm8, %v1329_v42, 0.0  ;;  %v1256_v42 = vld [vmem:[%s5003_s5 + $0x1f0] sm:$0xff] }
 0x57a   : > { %1493 = vadd.xlane.f32.xlu1 %v1492_v14  ;;  %1490 = vadd.xlane.f32.xlu0 %v1489_v16  ;;  %v1164_v14 = vld [vmem:[#allocation3 + $0x1b8] sm:$0xff]  ;;  %v1249_v16 = vld [vmem:[%s5003_s5 + $0x1b8] sm:$0xff] }
 0x57b   : > { %1496 = vadd.xlane.f32.xlu2 %v1495_v23  ;;  %v1163_v23 = vld [vmem:[#allocation3 + $0x1b0] sm:$0xff]  ;;  %v1333_v31 = vmul.f32 %v1249_v16, %v1164_v14 }
 0x57c   : > { %v1332_v32 = vmul.f32 %v1248_v27, %v1163_v23  ;;  %v1173_v23 = vld [vmem:[#allocation3 + $0x200] sm:$0xff]  ;;  %v1172_v27 = vld [vmem:[#allocation3 + $0x1f8] sm:$0xff] }
 0x57d   : > { %v1371_v39 = vpop.xlane.xlu1 %1370  ;;  %v1365_v54 = vpop.xlane.xlu0 %1364  ;;  %v1341_v34 = vmul.f32 %v1257_v29, %v1172_v27  ;;  %v1267_v27 = vld [vmem:[%s5003_s5 + $0x248] sm:$0xff] }
 0x57e   : > { %v1377_v57 = vpop.xlane.xlu2 %1376 }
 0x582   : > { %1502 = vadd.xlane.f32.xlu1 %v1501_v61  ;;  %1499 = vadd.xlane.f32.xlu0 %v1498_v1  ;;  %v1528_v1 = vsel %vm1104_vm8, %v1333_v31, 0.0  ;;  %v1259_v31 = vld [vmem:[%s5003_s5 + $0x208] sm:$0xff] }
 0x583   : > { %1505 = vadd.xlane.f32.xlu2 %v1504_v2  ;;  %v1525_v2 = vsel %vm1104_vm8, %v1332_v32, 0.0 }
 0x585   : > { %v1374_v35 = vpop.xlane.xlu1 %1373  ;;  %v1368_v60 = vpop.xlane.xlu0 %1367 }
 0x586   : > { %v1380_v38 = vpop.xlane.xlu2 %1379  ;;  %v1615_v40 = vadd.f32 %v1368_v60, %v1365_v54  ;;  %v1337_v60 = vmul.f32 %v1253_v22, %v1168_v21  ;;  %v1260_v21 = vld [vmem:[%s5003_s5 + $0x210] sm:$0xff] }
 0x587   : > { %v1177_v22 = vld [vmem:[#allocation3 + $0x220] sm:$0xff] }
 0x588   : > { %v1616_v3 = vadd.f32 %v1615_v40, %v1371_v39  ;;  %v1540_v0 = vsel %vm1104_vm8, %v1337_v60, 0.0 }
 0x58a   : > { %1511 = vadd.xlane.f32.xlu1 %v1510_v4  ;;  %v1617_v11 = vadd.f32 %v1616_v3, %v1374_v35  ;;  %1508 = vadd.xlane.f32.xlu0 %v1507_v5  ;;  %v1335_v35 = vmul.f32 %v1251_v59, %v1166_v49  ;;  %v1170_v3 = vld [vmem:[#allocation3 + $0x1e8] sm:$0xff] }
 0x58b   : > { %1514 = vadd.xlane.f32.xlu2 %v1513_v50  ;;  %v1339_v41 = vmul.f32 %v1255_v6, %v1170_v3  ;;  %v1261_v49 = vld [vmem:[%s5003_s5 + $0x218] sm:$0xff]  ;;  %v1179_v6 = vld [vmem:[#allocation3 + $0x230] sm:$0xff] }
 0x58c   : > { %v1618_v43 = vadd.f32 %v1617_v11, %v1377_v57  ;;  %v1534_v63 = vsel %vm1104_vm8, %v1335_v35, 0.0  ;;  %v1254_v11 = vld [vmem:[%s5003_s5 + $0x1e0] sm:$0xff]  ;;  %v1345_v35 = vmul.f32 %v1261_v49, %v1176_v17  ;;  %v1185_v49 = vld [vmem:[#allocation3 + $0x260] sm:$0xff] }
 0x58d   : > { %v1386_v45 = vpop.xlane.xlu1 %1385  ;;  %v1383_v47 = vpop.xlane.xlu0 %1382 }
 0x58e   : > { %v1389_v48 = vpop.xlane.xlu2 %1388  ;;  %v1619_v51 = vadd.f32 %v1618_v43, %v1380_v38  ;;  %v1338_v43 = vmul.f32 %v1254_v11, %v1169_v7  ;;  %v1264_v7 = vld [vmem:[%s5003_s5 + $0x230] sm:$0xff] }
 0x590   : > { %v1620_v26 = vadd.f32 %v1619_v51, %v1383_v47  ;;  %v1543_v14 = vsel %vm1104_vm8, %v1338_v43, 0.0  ;;  %v1348_v43 = vmul.f32 %v1264_v7, %v1179_v6  ;;  %v1188_v7 = vld [vmem:[#allocation3 + $0x278] sm:$0xff] }
 0x592   : > { %1520 = vadd.xlane.f32.xlu1 %v1519_v52  ;;  %v1621_v30 = vadd.f32 %v1620_v26, %v1386_v45  ;;  %1517 = vadd.xlane.f32.xlu0 %v1516_v8  ;;  %v1340_v45 = vmul.f32 %v1256_v42, %v1171_v33  ;;  %v1258_v26 = vld [vmem:[%s5003_s5 + $0x200] sm:$0xff]  ;;  %v1263_v33 = vld [vmem:[%s5003_s5 + $0x228] sm:$0xff] }
 0x593   : > { %1523 = vadd.xlane.f32.xlu2 %v1522_v12  ;;  %v1546_v12 = vsel %vm1104_vm8, %v1339_v41, 0.0  ;;  %v1342_v32 = vmul.f32 %v1258_v26, %v1173_v23  ;;  %v1180_v42 = vld [vmem:[#allocation3 + $0x238] sm:$0xff]  ;;  %v1265_v41 = vld [vmem:[%s5003_s5 + $0x238] sm:$0xff] }
 0x594   : > { %v1622_v36 = vadd.f32 %v1621_v30, %v1389_v48  ;;  %v1549_v16 = vsel %vm1104_vm8, %v1340_v45, 0.0  ;;  %v1174_v30 = vld [vmem:[#allocation3 + $0x208] sm:$0xff] }
 0x595   : > { %v1395_v39 = vpop.xlane.xlu1 %1394  ;;  %v1392_v54 = vpop.xlane.xlu0 %1391  ;;  %v1182_v26 = vld [vmem:[#allocation3 + $0x248] sm:$0xff] }
 0x596   : > { %v1398_v57 = vpop.xlane.xlu2 %1397  ;;  %v1623_v61 = vadd.f32 %v1622_v36, %v1392_v54  ;;  %v1343_v36 = vmul.f32 %v1259_v31, %v1174_v30  ;;  %v1266_v30 = vld [vmem:[%s5003_s5 + $0x240] sm:$0xff] }
 0x597   : > { %v1183_v31 = vld [vmem:[#allocation3 + $0x250] sm:$0xff] }
 0x598   : > { %v1624_v19 = vadd.f32 %v1623_v61, %v1395_v39  ;;  %v1558_v10 = vsel %vm1104_vm8, %v1343_v36, 0.0 }
 0x59a   : > { %1529 = vadd.xlane.f32.xlu1 %v1528_v1  ;;  %1526 = vadd.xlane.f32.xlu0 %v1525_v2  ;;  %v1625_v38 = vadd.f32 %v1624_v19, %v1398_v57  ;;  %v1555_v2 = vsel %vm1104_vm8, %v1342_v32, 0.0  ;;  %v1175_v19 = vld [vmem:[#allocation3 + $0x210] sm:$0xff]  ;;  %v1268_v32 = vld [vmem:[%s5003_s5 + $0x250] sm:$0xff] }
 0x59b   : > { %1532 = vadd.xlane.f32.xlu2 %v1531_v56  ;;  %v1552_v56 = vsel %vm1104_vm8, %v1341_v34, 0.0  ;;  %v1344_v60 = vmul.f32 %v1260_v21, %v1175_v19  ;;  %v1351_v34 = vmul.f32 %v1267_v27, %v1182_v26  ;;  %v1270_v19 = vld [vmem:[%s5003_s5 + $0x260] sm:$0xff] }
 0x59c   : > { %v1191_v27 = vld [vmem:[#allocation3 + $0x290] sm:$0xff] }
 0x59d   : > { %v1404_v40 = vpop.xlane.xlu1 %1403  ;;  %v1401_v4 = vpop.xlane.xlu0 %1400 }
 0x59e   : > { %v1407_v5 = vpop.xlane.xlu2 %1406  ;;  %v1626_v50 = vadd.f32 %v1625_v38, %v1401_v4  ;;  %v1346_v38 = vmul.f32 %v1262_v24, %v1177_v22  ;;  %v1269_v22 = vld [vmem:[%s5003_s5 + $0x258] sm:$0xff] }
 0x59f   : > { %v1186_v24 = vld [vmem:[#allocation3 + $0x268] sm:$0xff] }
 0x5a0   : > { %v1627_v9 = vadd.f32 %v1626_v50, %v1404_v40  ;;  %v1567_v3 = vsel %vm1104_vm8, %v1346_v38, 0.0 }
 0x5a2   : > { %1538 = vadd.xlane.f32.xlu1 %v1537_v62  ;;  %1535 = vadd.xlane.f32.xlu0 %v1534_v63  ;;  %v1628_v47 = vadd.f32 %v1627_v9, %v1407_v5  ;;  %v1564_v63 = vsel %vm1104_vm8, %v1345_v35, 0.0  ;;  %v1178_v9 = vld [vmem:[#allocation3 + $0x228] sm:$0xff]  ;;  %v1271_v35 = vld [vmem:[%s5003_s5 + $0x268] sm:$0xff] }
 0x5a3   : > { %1541 = vadd.xlane.f32.xlu2 %v1540_v0  ;;  %v1561_v0 = vsel %vm1104_vm8, %v1344_v60, 0.0  ;;  %v1347_v45 = vmul.f32 %v1263_v33, %v1178_v9  ;;  %v1354_v60 = vmul.f32 %v1270_v19, %v1185_v49  ;;  %v1273_v9 = vld [vmem:[%s5003_s5 + $0x278] sm:$0xff]  ;;  %v2942_v19 = vld [vmem:[%s5003_s5 + $0x2a8] sm:$0xff] }
 0x5a5   : > { %v1413_v48 = vpop.xlane.xlu1 %1412  ;;  %v1410_v51 = vpop.xlane.xlu0 %1409 }
 0x5a6   : > { %v1416_v52 = vpop.xlane.xlu2 %1415  ;;  %v1629_v8 = vadd.f32 %v1628_v47, %v1410_v51  ;;  %v1349_v47 = vmul.f32 %v1265_v41, %v1180_v42  ;;  %v1272_v42 = vld [vmem:[%s5003_s5 + $0x270] sm:$0xff] }
 0x5a7   : > { %v1189_v41 = vld [vmem:[#allocation3 + $0x280] sm:$0xff] }
 0x5a8   : > { %v1630_v28 = vadd.f32 %v1629_v8, %v1413_v48  ;;  %v1576_v23 = vsel %vm1104_vm8, %v1349_v47, 0.0 }
 0x5aa   : > { %1547 = vadd.xlane.f32.xlu1 %v1546_v12  ;;  %1544 = vadd.xlane.f32.xlu0 %v1543_v14  ;;  %v1631_v39 = vadd.f32 %v1630_v28, %v1416_v52  ;;  %v1573_v14 = vsel %vm1104_vm8, %v1348_v43, 0.0  ;;  %v1181_v28 = vld [vmem:[#allocation3 + $0x240] sm:$0xff]  ;;  %v1274_v43 = vld [vmem:[%s5003_s5 + $0x280] sm:$0xff] }
 0x5ab   : > { %1550 = vadd.xlane.f32.xlu2 %v1549_v16  ;;  %v1570_v16 = vsel %vm1104_vm8, %v1347_v45, 0.0  ;;  %v1350_v36 = vmul.f32 %v1266_v30, %v1181_v28  ;;  %v1357_v45 = vmul.f32 %v1273_v9, %v1188_v7  ;;  %v1276_v28 = vld [vmem:[%s5003_s5 + $0x290] sm:$0xff] }
 0x5ad   : > { %v1422_v54 = vpop.xlane.xlu1 %1421  ;;  %v1419_v57 = vpop.xlane.xlu0 %1418 }
 0x5ae   : > { %v1425_v61 = vpop.xlane.xlu2 %1424  ;;  %v1632_v1 = vadd.f32 %v1631_v39, %v1419_v57  ;;  %v1352_v39 = vmul.f32 %v1268_v32, %v1183_v31  ;;  %v1275_v31 = vld [vmem:[%s5003_s5 + $0x288] sm:$0xff] }
 0x5af   : > { %v1192_v32 = vld [vmem:[#allocation3 + $0x298] sm:$0xff] }
 0x5b0   : > { %v1633_v59 = vadd.f32 %v1632_v1, %v1422_v54  ;;  %v1585_v17 = vsel %vm1104_vm8, %v1352_v39, 0.0 }
 0x5b2   : > { %1556 = vadd.xlane.f32.xlu1 %v1555_v2  ;;  %1553 = vadd.xlane.f32.xlu0 %v1552_v56  ;;  %v1634_v40 = vadd.f32 %v1633_v59, %v1425_v61  ;;  %v1582_v56 = vsel %vm1104_vm8, %v1351_v34, 0.0  ;;  %v1184_v59 = vld [vmem:[#allocation3 + $0x258] sm:$0xff]  ;;  %v1277_v34 = vld [vmem:[%s5003_s5 + $0x298] sm:$0xff] }
 0x5b3   : > { %1559 = vadd.xlane.f32.xlu2 %v1558_v10  ;;  %v1579_v10 = vsel %vm1104_vm8, %v1350_v36, 0.0  ;;  %v1353_v38 = vmul.f32 %v1269_v22, %v1184_v59  ;;  %v1360_v36 = vmul.f32 %v1276_v28, %v1191_v27  ;;  %v2943_v22 = vld [vmem:[%s5003_s5 + $0x2b0] sm:$0xff] }
 0x5b5   : > { %v1431_v4 = vpop.xlane.xlu1 %1430  ;;  %v1428_v5 = vpop.xlane.xlu0 %1427 }
 0x5b6   : > { %v1434_v50 = vpop.xlane.xlu2 %1433  ;;  %v1635_v62 = vadd.f32 %v1634_v40, %v1428_v5  ;;  %v1355_v40 = vmul.f32 %v1271_v35, %v1186_v24  ;;  %v1793_v24 = vmul.f32 %v2942_v19, %v3919_v15  ;;  %v2954_v19 = vld [vmem:[%s5003_s5 + $0x308] sm:$0xff] }
 0x5b8   : > { %v1636_v11 = vadd.f32 %v1635_v62, %v1431_v4  ;;  %v1594_v6 = vsel %vm1104_vm8, %v1355_v40, 0.0 }
 0x5ba   : > { %1565 = vadd.xlane.f32.xlu1 %v1564_v63  ;;  %1562 = vadd.xlane.f32.xlu0 %v1561_v0  ;;  %v1637_v48 = vadd.f32 %v1636_v11, %v1434_v50  ;;  %v1591_v0 = vsel %vm1104_vm8, %v1354_v60, 0.0  ;;  %v1187_v11 = vld [vmem:[#allocation3 + $0x270] sm:$0xff]  ;;  %v1794_v60 = vmul.f32 %v2943_v22, %v3899_v44  ;;  %v2944_v44 = vld [vmem:[%s5003_s5 + $0x2b8] sm:$0xff]  ;;  %v3206_v22 = vld [vmem:[#allocation3 + $0x60] sm:$0xff] }
 0x5bb   : > { %1568 = vadd.xlane.f32.xlu2 %v1567_v3  ;;  %v1588_v3 = vsel %vm1104_vm8, %v1353_v38, 0.0  ;;  %v1356_v47 = vmul.f32 %v1272_v42, %v1187_v11  ;;  %v1795_v9 = vmul.f32 %v2944_v44, %v3914_v13  ;;  %v2947_v13 = vld [vmem:[%s5003_s5 + $0x2d0] sm:$0xff]  ;;  %v2956_v44 = vld [vmem:[%s5003_s5 + $0x318] sm:$0xff] }
 0x5bd   : > { %v1440_v51 = vpop.xlane.xlu1 %1439  ;;  %v1437_v52 = vpop.xlane.xlu0 %1436 }
 0x5be   : > { %v1443_v8 = vpop.xlane.xlu2 %1442  ;;  %v1638_v12 = vadd.f32 %v1637_v48, %v1437_v52  ;;  %v1358_v48 = vmul.f32 %v1274_v43, %v1189_v41 }
 0x5c0   : > { %v1639_v29 = vadd.f32 %v1638_v12, %v1440_v51  ;;  %v1603_v26 = vsel %vm1104_vm8, %v1358_v48, 0.0  ;;  %v1885_v48 = vsel %vm1104_vm8, %v1795_v9, 0.0  ;;  %v3209_v9 = vld [vmem:[#allocation3 + $0x78] sm:$0xff] }
 0x5c2   : > { %1574 = vadd.xlane.f32.xlu1 %v1573_v14  ;;  %1571 = vadd.xlane.f32.xlu0 %v1570_v16  ;;  %v1640_v54 = vadd.f32 %v1639_v29, %v1443_v8  ;;  %v1600_v16 = vsel %vm1104_vm8, %v1357_v45, 0.0  ;;  %v1190_v29 = vld [vmem:[#allocation3 + $0x288] sm:$0xff] }
 0x5c3   : > { %1577 = vadd.xlane.f32.xlu2 %v1576_v23  ;;  %v1597_v23 = vsel %vm1104_vm8, %v1356_v47, 0.0  ;;  %v1359_v39 = vmul.f32 %v1275_v31, %v1190_v29 }
 0x5c5   : > { %v1449_v57 = vpop.xlane.xlu1 %1448  ;;  %v1446_v61 = vpop.xlane.xlu0 %1445 }
 0x5c6   : > { %v1452_v1 = vpop.xlane.xlu2 %1451  ;;  %v1641_v2 = vadd.f32 %v1640_v54, %v1446_v61  ;;  %v1361_v54 = vmul.f32 %v1277_v34, %v1192_v32  ;;  %v2951_v34 = vld [vmem:[%s5003_s5 + $0x2f0] sm:$0xff] }
 0x5c8   : > { %v1642_v21 = vadd.f32 %v1641_v2, %v1449_v57  ;;  %v1612_v49 = vsel %vm1104_vm8, %v1361_v54, 0.0 }
 0x5ca   : > { %1583 = vadd.xlane.f32.xlu1 %v1582_v56  ;;  %1580 = vadd.xlane.f32.xlu0 %v1579_v10  ;;  %v1643_v4 = vadd.f32 %v1642_v21, %v1452_v1  ;;  %v1609_v10 = vsel %vm1104_vm8, %v1360_v36, 0.0  ;;  %v2941_v21 = vld [vmem:[%s5003_s5 + $0x2a0] sm:$0xff]  ;;  %v1802_v36 = vmul.f32 %v2951_v34, %v3959_v18 }
 0x5cb   : > { %1586 = vadd.xlane.f32.xlu2 %v1585_v17  ;;  %v1606_v17 = vsel %vm1104_vm8, %v1359_v39, 0.0  ;;  %v1792_v35 = vmul.f32 %v2941_v21, %v3904_v46  ;;  %v2946_v46 = vld [vmem:[%s5003_s5 + $0x2c8] sm:$0xff] }
 0x5cc   : > { %v1797_v11 = vmul.f32 %v2946_v46, %v3925_v25  ;;  %v2949_v25 = vld [vmem:[%s5003_s5 + $0x2e0] sm:$0xff]  ;;  %v2958_v46 = vld [vmem:[%s5003_s5 + $0x328] sm:$0xff] }
 0x5cd   : > { %v1458_v5 = vpop.xlane.xlu1 %1457  ;;  %v1455_v50 = vpop.xlane.xlu0 %1454 }
 0x5ce   : > { %v1461_v62 = vpop.xlane.xlu2 %1460  ;;  %v1644_v63 = vadd.f32 %v1643_v4, %v1455_v50 }
 0x5d0   : > { %v1645_v33 = vadd.f32 %v1644_v63, %v1458_v5  ;;  %v1876_v63 = vsel %vm1104_vm8, %v1792_v35, 0.0  ;;  %v3207_v35 = vld [vmem:[#allocation3 + $0x70] sm:$0xff] }
 0x5d2   : > { %1592 = vadd.xlane.f32.xlu1 %v1591_v0  ;;  %1589 = vadd.xlane.f32.xlu0 %v1588_v3  ;;  %v1646_v51 = vadd.f32 %v1645_v33, %v1461_v62  ;;  %v1879_v62 = vsel %vm1104_vm8, %v1793_v24, 0.0  ;;  %v1882_v0 = vsel %vm1104_vm8, %v1794_v60, 0.0  ;;  %v2945_v3 = vld [vmem:[%s5003_s5 + $0x2c0] sm:$0xff] }
 0x5d3   : > { %1595 = vadd.xlane.f32.xlu2 %v1594_v6  ;;  %v3204_v6 = vld [vmem:[#allocation3 + $0x20] sm:$0xff] }
 0x5d4   : > { %v1796_v7 = vmul.f32 %v3204_v6, %v2945_v3  ;;  %v2957_v3 = vld [vmem:[%s5003_s5 + $0x320] sm:$0xff]  ;;  %v3208_v6 = vld [vmem:[#allocation3 + $0x80] sm:$0xff] }
 0x5d5   : > { %v1467_v52 = vpop.xlane.xlu1 %1466  ;;  %v1464_v8 = vpop.xlane.xlu0 %1463 }
 0x5d6   : > { %v1470_v12 = vpop.xlane.xlu2 %1469  ;;  %v1647_v14 = vadd.f32 %v1646_v51, %v1464_v8  ;;  %v1888_v47 = vsel %vm1104_vm8, %v1796_v7, 0.0  ;;  %v1891_v51 = vsel %vm1104_vm8, %v1797_v11, 0.0  ;;  %v1808_v7 = vmul.f32 %v3208_v6, %v2957_v3 }
 0x5d7   : > { %v1807_v11 = vmul.f32 %v3209_v9, %v2956_v44 }
 0x5d8   : > { %v1648_v30 = vadd.f32 %v1647_v14, %v1467_v52  ;;  %v2948_v52 = vld [vmem:[%s5003_s5 + $0x2d8] sm:$0xff]  ;;  %v1798_v14 = vmul.f32 %v2947_v13, %v3943_v53  ;;  %v2950_v53 = vld [vmem:[%s5003_s5 + $0x2e8] sm:$0xff] }
 0x5d9   : > { %v1801_v39 = vmul.f32 %v2950_v53, %v3964_v58  ;;  %v2953_v58 = vld [vmem:[%s5003_s5 + $0x300] sm:$0xff]  ;;  %v2960_v13 = vld [vmem:[%s5003_s5 + $0x338] sm:$0xff] }
 0x5da   : > { %1601 = vadd.xlane.f32.xlu1 %v1600_v16  ;;  %1598 = vadd.xlane.f32.xlu0 %v1597_v23  ;;  %v1649_v57 = vadd.f32 %v1648_v30, %v1470_v12  ;;  %v1799_v12 = vmul.f32 %v2948_v52, %v3938_v37  ;;  %v1800_v16 = vmul.f32 %v2949_v25, %v3948_v55  ;;  %v1894_v31 = vsel %vm1104_vm8, %v1798_v14, 0.0  ;;  %v2952_v55 = vld [vmem:[%s5003_s5 + $0x2f8] sm:$0xff]  ;;  %v2961_v14 = vld [vmem:[%s5003_s5 + $0x340] sm:$0xff] }
 0x5db   : > { %1604 = vadd.xlane.f32.xlu2 %v1603_v26  ;;  %v1803_v54 = vmul.f32 %v2952_v55, %v3969_v20  ;;  %v2955_v20 = vld [vmem:[%s5003_s5 + $0x310] sm:$0xff]  ;;  %v1804_v24 = vmul.f32 %v3206_v22, %v2953_v58  ;;  %v1921_v52 = vsel %vm1104_vm8, %v1807_v11, 0.0 }
 0x5dc   : > { %v1897_v30 = vsel %vm1104_vm8, %v1799_v12, 0.0  ;;  %v1900_v32 = vsel %vm1104_vm8, %v1800_v16, 0.0  ;;  %v1806_v60 = vmul.f32 %v3207_v35, %v2955_v20  ;;  %v2959_v12 = vld [vmem:[%s5003_s5 + $0x330] sm:$0xff]  ;;  %v3211_v16 = vld [vmem:[#allocation3 + $0x98] sm:$0xff] }
 0x5dd   : > { %v1476_v61 = vpop.xlane.xlu1 %1475  ;;  %v1473_v1 = vpop.xlane.xlu0 %1472  ;;  %v2966_v35 = vld [vmem:[%s5003_s5 + $0x368] sm:$0xff] }
 0x5de   : > { %v1479_v2 = vpop.xlane.xlu2 %1478  ;;  %v1650_v56 = vadd.f32 %v1649_v57, %v1473_v1 }
 0x5e0   : > { %v1651_v59 = vadd.f32 %v1650_v56, %v1476_v61 }
 0x5e2   : > { %1610 = vadd.xlane.f32.xlu1 %v1609_v10  ;;  %1607 = vadd.xlane.f32.xlu0 %v1606_v17  ;;  %v1652_v38 = vadd.f32 %v1651_v59, %v1479_v2  ;;  %v1906_v10 = vsel %vm1104_vm8, %v1802_v36, 0.0  ;;  %v1903_v17 = vsel %vm1104_vm8, %v1801_v39, 0.0  ;;  %v3205_v59 = vld [vmem:[#allocation3 + $0x68] sm:$0xff]  ;;  %v2963_v39 = vld [vmem:[%s5003_s5 + $0x350] sm:$0xff] }
 0x5e3   : > { %1613 = vadd.xlane.f32.xlu2 %v1612_v49  ;;  %v1909_v49 = vsel %vm1104_vm8, %v1803_v54, 0.0  ;;  %v1805_v21 = vmul.f32 %v3205_v59, %v2954_v19 }
 0x5e5   : > { %v1485_v40 = vpop.xlane.xlu1 %1484  ;;  %v1482_v4 = vpop.xlane.xlu0 %1481 }
 0x5e6   : > { %v1488_v5 = vpop.xlane.xlu2 %1487  ;;  %v1653_v50 = vadd.f32 %v1652_v38, %v1482_v4 }
 0x5e8   : > { %v1654_v15 = vadd.f32 %v1653_v50, %v1485_v40 }
 0x5ea   : > { %1880 = vadd.xlane.f32.xlu1 %v1879_v62  ;;  %1877 = vadd.xlane.f32.xlu0 %v1876_v63  ;;  %v1655_v33 = vadd.f32 %v1654_v15, %v1488_v5  ;;  %v1915_v62 = vsel %vm1104_vm8, %v1805_v21, 0.0  ;;  %v1912_v63 = vsel %vm1104_vm8, %v1804_v24, 0.0 }
 0x5eb   : > { %1883 = vadd.xlane.f32.xlu2 %v1882_v0  ;;  %v1918_v0 = vsel %vm1104_vm8, %v1806_v60, 0.0 }
 0x5ed   : > { %v1494_v42 = vpop.xlane.xlu1 %1493  ;;  %v1491_v41 = vpop.xlane.xlu0 %1490 }
 0x5ee   : > { %v1497_v43 = vpop.xlane.xlu2 %1496  ;;  %v1656_v45 = vadd.f32 %v1655_v33, %v1491_v41  ;;  %v3210_v33 = vld [vmem:[#allocation3 + $0x88] sm:$0xff] }
 0x5f0   : > { %v1657_v8 = vadd.f32 %v1656_v45, %v1494_v42  ;;  %v1809_v42 = vmul.f32 %v3210_v33, %v2958_v46  ;;  %v2969_v33 = vld [vmem:[%s5003_s5 + $0x380] sm:$0xff] }
 0x5f2   : > { %1889 = vadd.xlane.f32.xlu1 %v1888_v47  ;;  %1886 = vadd.xlane.f32.xlu0 %v1885_v48  ;;  %v1658_v23 = vadd.f32 %v1657_v8, %v1497_v43  ;;  %v1927_v8 = vsel %vm1104_vm8, %v1809_v42, 0.0 }
 0x5f3   : > { %1892 = vadd.xlane.f32.xlu2 %v1891_v51  ;;  %v1924_v51 = vsel %vm1104_vm8, %v1808_v7, 0.0 }
 0x5f5   : > { %v1503_v26 = vpop.xlane.xlu1 %1502  ;;  %v1500_v27 = vpop.xlane.xlu0 %1499 }
 0x5f6   : > { %v1506_v28 = vpop.xlane.xlu2 %1505  ;;  %v1659_v29 = vadd.f32 %v1658_v23, %v1500_v27  ;;  %v1811_v23 = vmul.f32 %v3211_v16, %v2960_v13 }
 0x5f8   : > { %v1660_v37 = vadd.f32 %v1659_v29, %v1503_v26  ;;  %v3212_v26 = vld [vmem:[#allocation3 + $0x90] sm:$0xff]  ;;  %v1933_v53 = vsel %vm1104_vm8, %v1811_v23, 0.0 }
 0x5f9   : > { %v1810_v27 = vmul.f32 %v3212_v26, %v2959_v12 }
 0x5fa   : > { %1898 = vadd.xlane.f32.xlu1 %v1897_v30  ;;  %1895 = vadd.xlane.f32.xlu0 %v1894_v31  ;;  %v1661_v57 = vadd.f32 %v1660_v37, %v1506_v28  ;;  %v3213_v28 = vld [vmem:[#allocation3 + $0xa0] sm:$0xff] }
 0x5fb   : > { %1901 = vadd.xlane.f32.xlu2 %v1900_v32  ;;  %v1812_v29 = vmul.f32 %v3213_v28, %v2961_v14  ;;  %v1930_v55 = vsel %vm1104_vm8, %v1810_v27, 0.0  ;;  %v2972_v28 = vld [vmem:[%s5003_s5 + $0x398] sm:$0xff] }
 0x5fd   : > { %v1512_v61 = vpop.xlane.xlu1 %1511  ;;  %v1509_v1 = vpop.xlane.xlu0 %1508  ;;  %v1936_v36 = vsel %vm1104_vm8, %v1812_v29, 0.0 }
 0x5fe   : > { %v1515_v2 = vpop.xlane.xlu2 %1514  ;;  %v1662_v56 = vadd.f32 %v1661_v57, %v1509_v1  ;;  %v2962_v57 = vld [vmem:[%s5003_s5 + $0x348] sm:$0xff]  ;;  %v3214_v1 = vld [vmem:[#allocation3 + $0xb0] sm:$0xff] }
 0x600   : > { %v1663_v18 = vadd.f32 %v1662_v56, %v1512_v61  ;;  %v2964_v61 = vld [vmem:[%s5003_s5 + $0x358] sm:$0xff] }
 0x601   : > { %v3215_v56 = vld [vmem:[#allocation3 + $0xa8] sm:$0xff] }
 0x602   : > { %1907 = vadd.xlane.f32.xlu1 %v1906_v10  ;;  %1904 = vadd.xlane.f32.xlu0 %v1903_v17  ;;  %v1664_v38 = vadd.f32 %v1663_v18, %v1515_v2  ;;  %v1814_v2 = vmul.f32 %v3214_v1, %v2963_v39  ;;  %v1813_v10 = vmul.f32 %v3215_v56, %v2962_v57  ;;  %v3216_v17 = vld [vmem:[#allocation3 + $0xb8] sm:$0xff] }
 0x603   : > { %1910 = vadd.xlane.f32.xlu2 %v1909_v49  ;;  %v1815_v49 = vmul.f32 %v3216_v17, %v2964_v61  ;;  %v2975_v17 = vld [vmem:[%s5003_s5 + $0x3b0] sm:$0xff] }
 0x604   : > { %v1942_v21 = vsel %vm1104_vm8, %v1814_v2, 0.0  ;;  %v1939_v22 = vsel %vm1104_vm8, %v1813_v10, 0.0 }
 0x605   : > { %v1521_v40 = vpop.xlane.xlu1 %1520  ;;  %v1518_v4 = vpop.xlane.xlu0 %1517  ;;  %v1945_v24 = vsel %vm1104_vm8, %v1815_v49, 0.0 }
 0x606   : > { %v1524_v5 = vpop.xlane.xlu2 %1523  ;;  %v1665_v50 = vadd.f32 %v1664_v38, %v1518_v4  ;;  %v2965_v38 = vld [vmem:[%s5003_s5 + $0x360] sm:$0xff]  ;;  %v3217_v4 = vld [vmem:[#allocation3 + $0xc8] sm:$0xff] }
 0x608   : > { %v1666_v15 = vadd.f32 %v1665_v50, %v1521_v40  ;;  %v2967_v40 = vld [vmem:[%s5003_s5 + $0x370] sm:$0xff] }
 0x609   : > { %v3218_v50 = vld [vmem:[#allocation3 + $0xc0] sm:$0xff] }
 0x60a   : > { %1916 = vadd.xlane.f32.xlu1 %v1915_v62  ;;  %1913 = vadd.xlane.f32.xlu0 %v1912_v63  ;;  %v1667_v41 = vadd.f32 %v1666_v15, %v1524_v5  ;;  %v1817_v5 = vmul.f32 %v3217_v4, %v2966_v35  ;;  %v1816_v62 = vmul.f32 %v3218_v50, %v2965_v38  ;;  %v3219_v63 = vld [vmem:[#allocation3 + $0xd0] sm:$0xff] }
 0x60b   : > { %1919 = vadd.xlane.f32.xlu2 %v1918_v0  ;;  %v1818_v0 = vmul.f32 %v3219_v63, %v2967_v40  ;;  %v2978_v63 = vld [vmem:[%s5003_s5 + $0x3c8] sm:$0xff] }
 0x60c   : > { %v1951_v7 = vsel %vm1104_vm8, %v1817_v5, 0.0  ;;  %v1948_v9 = vsel %vm1104_vm8, %v1816_v62, 0.0 }
 0x60d   : > { %v1530_v43 = vpop.xlane.xlu1 %1529  ;;  %v1527_v45 = vpop.xlane.xlu0 %1526  ;;  %v1954_v11 = vsel %vm1104_vm8, %v1818_v0, 0.0 }
 0x60e   : > { %v1533_v47 = vpop.xlane.xlu2 %1532  ;;  %v1668_v48 = vadd.f32 %v1667_v41, %v1527_v45  ;;  %v2968_v41 = vld [vmem:[%s5003_s5 + $0x378] sm:$0xff]  ;;  %v3220_v45 = vld [vmem:[#allocation3 + $0xe0] sm:$0xff] }
 0x610   : > { %v1669_v25 = vadd.f32 %v1668_v48, %v1530_v43  ;;  %v2970_v43 = vld [vmem:[%s5003_s5 + $0x388] sm:$0xff] }
 0x611   : > { %v3221_v48 = vld [vmem:[#allocation3 + $0xd8] sm:$0xff] }
 0x612   : > { %1925 = vadd.xlane.f32.xlu1 %v1924_v51  ;;  %1922 = vadd.xlane.f32.xlu0 %v1921_v52  ;;  %v1670_v30 = vadd.f32 %v1669_v25, %v1533_v47  ;;  %v1820_v47 = vmul.f32 %v3220_v45, %v2969_v33  ;;  %v1819_v51 = vmul.f32 %v3221_v48, %v2968_v41  ;;  %v3222_v52 = vld [vmem:[#allocation3 + $0xe8] sm:$0xff] }
 0x613   : > { %1928 = vadd.xlane.f32.xlu2 %v1927_v8  ;;  %v1821_v8 = vmul.f32 %v3222_v52, %v2970_v43  ;;  %v2981_v52 = vld [vmem:[%s5003_s5 + $0x3e0] sm:$0xff] }
 0x614   : > { %v1960_v23 = vsel %vm1104_vm8, %v1820_v47, 0.0  ;;  %v1957_v26 = vsel %vm1104_vm8, %v1819_v51, 0.0 }
 0x615   : > { %v1539_v31 = vpop.xlane.xlu1 %1538  ;;  %v1536_v32 = vpop.xlane.xlu0 %1535  ;;  %v1963_v27 = vsel %vm1104_vm8, %v1821_v8, 0.0 }
 0x616   : > { %v1542_v34 = vpop.xlane.xlu2 %1541  ;;  %v1671_v37 = vadd.f32 %v1670_v30, %v1536_v32  ;;  %v2971_v30 = vld [vmem:[%s5003_s5 + $0x390] sm:$0xff]  ;;  %v3223_v32 = vld [vmem:[#allocation3 + $0xf8] sm:$0xff] }
 0x618   : > { %v1672_v54 = vadd.f32 %v1671_v37, %v1539_v31  ;;  %v2973_v31 = vld [vmem:[%s5003_s5 + $0x3a0] sm:$0xff] }
 0x619   : > { %v3224_v37 = vld [vmem:[#allocation3 + $0xf0] sm:$0xff] }
 0x61a   : > { %1934 = vadd.xlane.f32.xlu1 %v1933_v53  ;;  %1931 = vadd.xlane.f32.xlu0 %v1930_v55  ;;  %v1673_v19 = vadd.f32 %v1672_v54, %v1542_v34  ;;  %v1823_v34 = vmul.f32 %v3223_v32, %v2972_v28  ;;  %v1822_v53 = vmul.f32 %v3224_v37, %v2971_v30  ;;  %v3225_v55 = vld [vmem:[#allocation3 + $0x100] sm:$0xff] }
 0x61b   : > { %1937 = vadd.xlane.f32.xlu2 %v1936_v36  ;;  %v1824_v36 = vmul.f32 %v3225_v55, %v2973_v31  ;;  %v2984_v55 = vld [vmem:[%s5003_s5 + $0x3f8] sm:$0xff] }
 0x61c   : > { %v1969_v2 = vsel %vm1104_vm8, %v1823_v34, 0.0  ;;  %v1966_v56 = vsel %vm1104_vm8, %v1822_v53, 0.0 }
 0x61d   : > { %v1548_v18 = vpop.xlane.xlu1 %1547  ;;  %v1545_v58 = vpop.xlane.xlu0 %1544  ;;  %v1972_v10 = vsel %vm1104_vm8, %v1824_v36, 0.0 }
 0x61e   : > { %v1551_v20 = vpop.xlane.xlu2 %1550  ;;  %v1674_v59 = vadd.f32 %v1673_v19, %v1545_v58  ;;  %v2974_v19 = vld [vmem:[%s5003_s5 + $0x3a8] sm:$0xff]  ;;  %v3226_v58 = vld [vmem:[#allocation3 + $0x110] sm:$0xff] }
 0x620   : > { %v1675_v60 = vadd.f32 %v1674_v59, %v1548_v18  ;;  %v2976_v18 = vld [vmem:[%s5003_s5 + $0x3b8] sm:$0xff] }
 0x621   : > { %v3227_v59 = vld [vmem:[#allocation3 + $0x108] sm:$0xff] }
 0x622   : > { %1943 = vadd.xlane.f32.xlu1 %v1942_v21  ;;  %1940 = vadd.xlane.f32.xlu0 %v1939_v22  ;;  %v1676_v3 = vadd.f32 %v1675_v60, %v1551_v20  ;;  %v1826_v20 = vmul.f32 %v3226_v58, %v2975_v17  ;;  %v1825_v21 = vmul.f32 %v3227_v59, %v2974_v19  ;;  %v3228_v22 = vld [vmem:[#allocation3 + $0x118] sm:$0xff] }
 0x623   : > { %1946 = vadd.xlane.f32.xlu2 %v1945_v24  ;;  %v1827_v24 = vmul.f32 %v3228_v22, %v2976_v18  ;;  %v2987_v22 = vld [vmem:[%s5003_s5 + $0x410] sm:$0xff] }
 0x624   : > { %v1978_v5 = vsel %vm1104_vm8, %v1826_v20, 0.0  ;;  %v1975_v50 = vsel %vm1104_vm8, %v1825_v21, 0.0 }
 0x625   : > { %v1557_v15 = vpop.xlane.xlu1 %1556  ;;  %v1554_v44 = vpop.xlane.xlu0 %1553  ;;  %v1981_v62 = vsel %vm1104_vm8, %v1827_v24, 0.0 }
 0x626   : > { %v1560_v46 = vpop.xlane.xlu2 %1559  ;;  %v1677_v6 = vadd.f32 %v1676_v3, %v1554_v44  ;;  %v2977_v3 = vld [vmem:[%s5003_s5 + $0x3c0] sm:$0xff]  ;;  %v3229_v44 = vld [vmem:[#allocation3 + $0x128] sm:$0xff] }
 0x628   : > { %v1678_v42 = vadd.f32 %v1677_v6, %v1557_v15  ;;  %v2979_v15 = vld [vmem:[%s5003_s5 + $0x3d0] sm:$0xff] }
 0x629   : > { %v3230_v6 = vld [vmem:[#allocation3 + $0x120] sm:$0xff] }
 0x62a   : > { %1952 = vadd.xlane.f32.xlu1 %v1951_v7  ;;  %1949 = vadd.xlane.f32.xlu0 %v1948_v9  ;;  %v1679_v13 = vadd.f32 %v1678_v42, %v1560_v46  ;;  %v1829_v46 = vmul.f32 %v3229_v44, %v2978_v63  ;;  %v1828_v7 = vmul.f32 %v3230_v6, %v2977_v3  ;;  %v3231_v9 = vld [vmem:[#allocation3 + $0x130] sm:$0xff] }
 0x62b   : > { %1955 = vadd.xlane.f32.xlu2 %v1954_v11  ;;  %v1830_v11 = vmul.f32 %v3231_v9, %v2979_v15 }
 0x62c   : > { %v1987_v47 = vsel %vm1104_vm8, %v1829_v46, 0.0  ;;  %v1984_v48 = vsel %vm1104_vm8, %v1828_v7, 0.0 }
 0x62d   : > { %v1566_v25 = vpop.xlane.xlu1 %1565  ;;  %v1563_v12 = vpop.xlane.xlu0 %1562  ;;  %v1990_v51 = vsel %vm1104_vm8, %v1830_v11, 0.0  ;;  %v2990_v11 = vld [vmem:[%s5003_s5 + $0x428] sm:$0xff] }
 0x62e   : > { %v1569_v14 = vpop.xlane.xlu2 %1568  ;;  %v1680_v16 = vadd.f32 %v1679_v13, %v1563_v12  ;;  %v2980_v13 = vld [vmem:[%s5003_s5 + $0x3d8] sm:$0xff]  ;;  %v3232_v12 = vld [vmem:[#allocation3 + $0x140] sm:$0xff] }
 0x630   : > { %v1681_v29 = vadd.f32 %v1680_v16, %v1566_v25  ;;  %v2982_v25 = vld [vmem:[%s5003_s5 + $0x3e8] sm:$0xff] }
 0x631   : > { %v3233_v16 = vld [vmem:[#allocation3 + $0x138] sm:$0xff] }
 0x632   : > { %1961 = vadd.xlane.f32.xlu1 %v1960_v23  ;;  %1958 = vadd.xlane.f32.xlu0 %v1957_v26  ;;  %v1682_v39 = vadd.f32 %v1681_v29, %v1569_v14  ;;  %v1832_v14 = vmul.f32 %v3232_v12, %v2981_v52  ;;  %v1831_v23 = vmul.f32 %v3233_v16, %v2980_v13  ;;  %v3234_v26 = vld [vmem:[#allocation3 + $0x148] sm:$0xff]  ;;  %v1193_v16 = vld [vmem:[%s5004_s6] sm:$0x1] }
 0x633   : > { %1964 = vadd.xlane.f32.xlu2 %v1963_v27  ;;  %v1833_v27 = vmul.f32 %v3234_v26, %v2982_v25 }
 0x634   : > { %v1996_v34 = vsel %vm1104_vm8, %v1832_v14, 0.0  ;;  %v1993_v37 = vsel %vm1104_vm8, %v1831_v23, 0.0 }
 0x635   : > { %v1575_v54 = vpop.xlane.xlu1 %1574  ;;  %v1572_v57 = vpop.xlane.xlu0 %1571  ;;  %v1999_v53 = vsel %vm1104_vm8, %v1833_v27, 0.0 }
 0x636   : > { %v1578_v61 = vpop.xlane.xlu2 %1577  ;;  %v1683_v1 = vadd.f32 %v1682_v39, %v1572_v57  ;;  %v2983_v39 = vld [vmem:[%s5003_s5 + $0x3f0] sm:$0xff]  ;;  %v3235_v57 = vld [vmem:[#allocation3 + $0x158] sm:$0xff] }
 0x638   : > { %v1684_v49 = vadd.f32 %v1683_v1, %v1575_v54  ;;  %v2985_v54 = vld [vmem:[%s5003_s5 + $0x400] sm:$0xff] }
 0x639   : > { %v3236_v1 = vld [vmem:[#allocation3 + $0x150] sm:$0xff] }
 0x63a   : > { %1970 = vadd.xlane.f32.xlu1 %v1969_v2  ;;  %1967 = vadd.xlane.f32.xlu0 %v1966_v56  ;;  %v1685_v35 = vadd.f32 %v1684_v49, %v1578_v61  ;;  %v1835_v61 = vmul.f32 %v3235_v57, %v2984_v55  ;;  %v1834_v2 = vmul.f32 %v3236_v1, %v2983_v39  ;;  %v3237_v56 = vld [vmem:[#allocation3 + $0x160] sm:$0xff]  ;;  %v2994_v55 = vld [vmem:[%s5003_s5 + $0x448] sm:$0xff] }
 0x63b   : > { %1973 = vadd.xlane.f32.xlu2 %v1972_v10  ;;  %v1836_v10 = vmul.f32 %v3237_v56, %v2985_v54  ;;  %v3245_v54 = vld [vmem:[#allocation3 + $0x198] sm:$0xff] }
 0x63c   : > { %v2005_v20 = vsel %vm1104_vm8, %v1835_v61, 0.0  ;;  %v2002_v59 = vsel %vm1104_vm8, %v1834_v2, 0.0  ;;  %v3246_v61 = vld [vmem:[#allocation3 + $0x1a8] sm:$0xff] }
 0x63d   : > { %v1584_v60 = vpop.xlane.xlu1 %1583  ;;  %v1581_v38 = vpop.xlane.xlu0 %1580  ;;  %v2008_v21 = vsel %vm1104_vm8, %v1836_v10, 0.0  ;;  %v1845_v1 = vmul.f32 %v3246_v61, %v2994_v55  ;;  %v3005_v61 = vld [vmem:[%s5003_s5 + $0x4a0] sm:$0xff] }
 0x63e   : > { %v1587_v40 = vpop.xlane.xlu2 %1586  ;;  %v1686_v4 = vadd.f32 %v1685_v35, %v1581_v38  ;;  %v2986_v35 = vld [vmem:[%s5003_s5 + $0x408] sm:$0xff] }
 0x640   : > { %v1687_v0 = vadd.f32 %v1686_v4, %v1584_v60  ;;  %v2988_v60 = vld [vmem:[%s5003_s5 + $0x418] sm:$0xff] }
 0x642   : > { %1979 = vadd.xlane.f32.xlu1 %v1978_v5  ;;  %1976 = vadd.xlane.f32.xlu0 %v1975_v50  ;;  %v1688_v33 = vadd.f32 %v1687_v0, %v1587_v40  ;;  %v3238_v40 = vld [vmem:[#allocation3 + $0x170] sm:$0xff]  ;;  %v3239_v5 = vld [vmem:[#allocation3 + $0x168] sm:$0xff] }
 0x643   : > { %1982 = vadd.xlane.f32.xlu2 %v1981_v62  ;;  %v1838_v4 = vmul.f32 %v3238_v40, %v2987_v22  ;;  %v1837_v50 = vmul.f32 %v3239_v5, %v2986_v35  ;;  %v3240_v62 = vld [vmem:[#allocation3 + $0x178] sm:$0xff]  ;;  %v2997_v22 = vld [vmem:[%s5003_s5 + $0x460] sm:$0xff]  ;;  %v3249_v40 = vld [vmem:[#allocation3 + $0x1c0] sm:$0xff] }
 0x644   : > { %v1839_v63 = vmul.f32 %v3240_v62, %v2988_v60  ;;  %v3248_v60 = vld [vmem:[#allocation3 + $0x1b0] sm:$0xff] }
 0x645   : > { %v1593_v42 = vpop.xlane.xlu1 %1592  ;;  %v1590_v41 = vpop.xlane.xlu0 %1589  ;;  %v2014_v6 = vsel %vm1104_vm8, %v1838_v4, 0.0  ;;  %v2011_v7 = vsel %vm1104_vm8, %v1837_v50, 0.0  ;;  %v1848_v4 = vmul.f32 %v3249_v40, %v2997_v22  ;;  %v3008_v40 = vld [vmem:[%s5003_s5 + $0x4b8] sm:$0xff] }
 0x646   : > { %v1596_v43 = vpop.xlane.xlu2 %1595  ;;  %v1689_v45 = vadd.f32 %v1688_v33, %v1590_v41  ;;  %v2017_v9 = vsel %vm1104_vm8, %v1839_v63, 0.0  ;;  %v2989_v41 = vld [vmem:[%s5003_s5 + $0x420] sm:$0xff] }
 0x648   : > { %v1690_v8 = vadd.f32 %v1689_v45, %v1593_v42 }
 0x64a   : > { %1988 = vadd.xlane.f32.xlu1 %v1987_v47  ;;  %1985 = vadd.xlane.f32.xlu0 %v1984_v48  ;;  %v1691_v28 = vadd.f32 %v1690_v8, %v1596_v43  ;;  %v2991_v43 = vld [vmem:[%s5003_s5 + $0x430] sm:$0xff]  ;;  %v3241_v47 = vld [vmem:[#allocation3 + $0x188] sm:$0xff]  ;;  %v3243_v8 = vld [vmem:[#allocation3 + $0x190] sm:$0xff] }
 0x64b   : > { %1991 = vadd.xlane.f32.xlu2 %v1990_v51  ;;  %v1841_v48 = vmul.f32 %v3241_v47, %v2990_v11  ;;  %v3242_v51 = vld [vmem:[#allocation3 + $0x180] sm:$0xff]  ;;  %v1842_v13 = vmul.f32 %v3243_v8, %v2991_v43  ;;  %v3250_v11 = vld [vmem:[#allocation3 + $0x1d0] sm:$0xff]  ;;  %v3252_v43 = vld [vmem:[#allocation3 + $0x1d8] sm:$0xff] }
 0x64c   : > { %v1840_v52 = vmul.f32 %v3242_v51, %v2989_v41 }
 0x64d   : > { %v1602_v29 = vpop.xlane.xlu1 %1601  ;;  %v1599_v30 = vpop.xlane.xlu0 %1598 }
 0x64e   : > { %v1605_v31 = vpop.xlane.xlu2 %1604  ;;  %v1692_v32 = vadd.f32 %v1691_v28, %v1599_v30  ;;  %v2020_v30 = vsel %vm1104_vm8, %v1840_v52, 0.0 }
 0x650   : > { %v1693_v36 = vadd.f32 %v1692_v32, %v1602_v29  ;;  %v2023_v29 = vsel %vm1104_vm8, %v1841_v48, 0.0  ;;  %v2993_v32 = vld [vmem:[%s5003_s5 + $0x440] sm:$0xff] }
 0x652   : > { %1997 = vadd.xlane.f32.xlu1 %v1996_v34  ;;  %1994 = vadd.xlane.f32.xlu0 %v1993_v37  ;;  %v1694_v17 = vadd.f32 %v1693_v36, %v1605_v31  ;;  %v2026_v31 = vsel %vm1104_vm8, %v1842_v13, 0.0  ;;  %v3244_v36 = vld [vmem:[#allocation3 + $0x1a0] sm:$0xff] }
 0x653   : > { %2000 = vadd.xlane.f32.xlu2 %v1999_v53  ;;  %v2992_v53 = vld [vmem:[%s5003_s5 + $0x438] sm:$0xff]  ;;  %v1844_v39 = vmul.f32 %v3244_v36, %v2993_v32 }
 0x654   : > { %v1843_v57 = vmul.f32 %v3245_v54, %v2992_v53 }
 0x655   : > { %v1611_v49 = vpop.xlane.xlu1 %1610  ;;  %v1608_v19 = vpop.xlane.xlu0 %1607 }
 0x656   : > { %v1614_v18 = vpop.xlane.xlu2 %1613  ;;  %v1695_v58 = vadd.f32 %v1694_v17, %v1608_v19  ;;  %v2032_v19 = vsel %vm1104_vm8, %v1844_v39, 0.0 }
 0x658   : > { %v1696_v24 = vadd.f32 %v1695_v58, %v1611_v49  ;;  %v2035_v58 = vsel %vm1104_vm8, %v1845_v1, 0.0 }
 0x65a   : > { %2006 = vadd.xlane.f32.xlu1 %v2005_v20  ;;  %v1697_v38 = vadd.f32 %v1696_v24, %v1614_v18  ;;  %2003 = vadd.xlane.f32.xlu0 %v2002_v59  ;;  %v2029_v18 = vsel %vm1104_vm8, %v1843_v57, 0.0  ;;  %v2996_v20 = vld [vmem:[%s5003_s5 + $0x458] sm:$0xff]  ;;  %v3247_v24 = vld [vmem:[#allocation3 + $0x1b8] sm:$0xff] }
 0x65b   : > { %2009 = vadd.xlane.f32.xlu2 %v2008_v21  ;;  %v2995_v21 = vld [vmem:[%s5003_s5 + $0x450] sm:$0xff]  ;;  %v1847_v35 = vmul.f32 %v3247_v24, %v2996_v20 }
 0x65c   : > { %v1698_v0 = vrot.slane %v1697_v38, 4 }
 0x65d   : > { %v1881_v3 = vpop.xlane.xlu1 %1880  ;;  %v1878_v15 = vpop.xlane.xlu0 %1877 }
 0x65e   : > { %v1884_v44 = vpop.xlane.xlu2 %1883  ;;  %v1699_v46 = vadd.f32 %v1698_v0, %v1697_v38  ;;  %v2128_v42 = vadd.f32 %v1881_v3, %v1878_v15  ;;  %v1846_v38 = vmul.f32 %v3248_v60, %v2995_v21  ;;  %v2041_v3 = vsel %vm1104_vm8, %v1847_v35, 0.0 }
 0x660   : > { %v1700_v33 = vrot.slane %v1699_v46, 2  ;;  %v2129_v12 = vadd.f32 %v2128_v42, %v1884_v44  ;;  %v2038_v15 = vsel %vm1104_vm8, %v1846_v38, 0.0  ;;  %v2044_v44 = vsel %vm1104_vm8, %v1848_v4, 0.0  ;;  %v3251_v42 = vld [vmem:[#allocation3 + $0x1c8] sm:$0xff] }
 0x662   : > { %2015 = vadd.xlane.f32.xlu1 %v2014_v6  ;;  %v1701_v45 = vadd.f32 %v1700_v33, %v1699_v46  ;;  %2012 = vadd.xlane.f32.xlu0 %v2011_v7  ;;  %v2999_v46 = vld [vmem:[%s5003_s5 + $0x470] sm:$0xff]  ;;  %v2998_v7 = vld [vmem:[%s5003_s5 + $0x468] sm:$0xff] }
 0x663   : > { %2018 = vadd.xlane.f32.xlu2 %v2017_v9  ;;  %v3000_v9 = vld [vmem:[%s5003_s5 + $0x478] sm:$0xff]  ;;  %v1850_v33 = vmul.f32 %v3250_v11, %v2999_v46  ;;  %v1849_v41 = vmul.f32 %v3251_v42, %v2998_v7 }
 0x664   : > { %v1702_v25 = vrot.slane %v1701_v45, 1 }
 0x665   : > { %v1890_v14 = vpop.xlane.xlu1 %1889  ;;  %v1887_v23 = vpop.xlane.xlu0 %1886  ;;  %v2050_v13 = vsel %vm1104_vm8, %v1850_v33, 0.0 }
 0x666   : > { %v1893_v26 = vpop.xlane.xlu2 %1892  ;;  %v1703_v27 = vadd.f32 %v1702_v25, %v1701_v45  ;;  %v2130_v28 = vadd.f32 %v2129_v12, %v1887_v23  ;;  %v1851_v45 = vmul.f32 %v3252_v43, %v3000_v9  ;;  %v2047_v25 = vsel %vm1104_vm8, %v1849_v41, 0.0  ;;  %v3001_v23 = vld [vmem:[%s5003_s5 + $0x480] sm:$0xff]  ;;  %v3011_v43 = vld [vmem:[%s5003_s5 + $0x4d0] sm:$0xff] }
 0x668   : > { %v1704_v34 = vadd.f32 %v1703_v27, %v1193_v16  ;;  %v2131_v37 = vadd.f32 %v2130_v28, %v1890_v14  ;;  %v2053_v12 = vsel %vm1104_vm8, %v1851_v45, 0.0  ;;  %v3002_v14 = vld [vmem:[%s5003_s5 + $0x488] sm:$0xff]  ;;  %v3253_v27 = vld [vmem:[#allocation3 + $0x1e8] sm:$0xff] }
 0x669   : > { %v1853_v28 = vmul.f32 %v3253_v27, %v3002_v14 }
 0x66a   : > { %2024 = vadd.xlane.f32.xlu1 %v2023_v29  ;;  %2021 = vadd.xlane.f32.xlu0 %v2020_v30  ;;  %1706 = vst.msk [vmem:[%s3699_s13] sm:$0x1] %vm1705_vm0, %v1704_v34  ;;  %v2132_v2 = vadd.f32 %v2131_v37, %v1893_v26  ;;  %v3003_v26 = vld [vmem:[%s5003_s5 + $0x490] sm:$0xff] }
 0x66b   : > { %2027 = vadd.xlane.f32.xlu2 %v2026_v31  ;;  %v3254_v29 = vld [vmem:[#allocation3 + $0x1e0] sm:$0xff]  ;;  %v3255_v31 = vld [vmem:[#allocation3 + $0x1f0] sm:$0xff]  ;;  %v2059_v39 = vsel %vm1104_vm8, %v1853_v28, 0.0 }
 0x66c   : > { %v1852_v30 = vmul.f32 %v3254_v29, %v3001_v23  ;;  %v1854_v32 = vmul.f32 %v3255_v31, %v3003_v26  ;;  %v3014_v31 = vld [vmem:[%s5003_s5 + $0x4e8] sm:$0xff] }
 0x66d   : > { %v1899_v56 = vpop.xlane.xlu1 %1898  ;;  %v1896_v10 = vpop.xlane.xlu0 %1895 }
 0x66e   : > { %v1902_v17 = vpop.xlane.xlu2 %1901  ;;  %v2133_v49 = vadd.f32 %v2132_v2, %v1896_v10  ;;  %v2056_v54 = vsel %vm1104_vm8, %v1852_v30, 0.0  ;;  %v2062_v57 = vsel %vm1104_vm8, %v1854_v32, 0.0  ;;  %v3004_v2 = vld [vmem:[%s5003_s5 + $0x498] sm:$0xff]  ;;  %v3256_v10 = vld [vmem:[#allocation3 + $0x200] sm:$0xff] }
 0x670   : > { %v2134_v59 = vadd.f32 %v2133_v49, %v1899_v56  ;;  %v3006_v56 = vld [vmem:[%s5003_s5 + $0x4a8] sm:$0xff] }
 0x671   : > { %v3257_v49 = vld [vmem:[#allocation3 + $0x1f8] sm:$0xff] }
 0x672   : > { %2033 = vadd.xlane.f32.xlu1 %v2032_v19  ;;  %2030 = vadd.xlane.f32.xlu0 %v2029_v18  ;;  %v2135_v5 = vadd.f32 %v2134_v59, %v1902_v17  ;;  %v1856_v17 = vmul.f32 %v3256_v10, %v3005_v61  ;;  %v1855_v19 = vmul.f32 %v3257_v49, %v3004_v2  ;;  %v3258_v18 = vld [vmem:[#allocation3 + $0x208] sm:$0xff] }
 0x673   : > { %2036 = vadd.xlane.f32.xlu2 %v2035_v58  ;;  %v1857_v58 = vmul.f32 %v3258_v18, %v3006_v56  ;;  %v3017_v18 = vld [vmem:[%s5003_s5 + $0x500] sm:$0xff] }
 0x674   : > { %v2068_v35 = vsel %vm1104_vm8, %v1856_v17, 0.0  ;;  %v2065_v60 = vsel %vm1104_vm8, %v1855_v19, 0.0 }
 0x675   : > { %v1908_v50 = vpop.xlane.xlu1 %1907  ;;  %v1905_v62 = vpop.xlane.xlu0 %1904  ;;  %v2071_v38 = vsel %vm1104_vm8, %v1857_v58, 0.0 }
 0x676   : > { %v1911_v63 = vpop.xlane.xlu2 %1910  ;;  %v2136_v0 = vadd.f32 %v2135_v5, %v1905_v62  ;;  %v3007_v5 = vld [vmem:[%s5003_s5 + $0x4b0] sm:$0xff]  ;;  %v3259_v62 = vld [vmem:[#allocation3 + $0x218] sm:$0xff] }
 0x678   : > { %v2137_v6 = vadd.f32 %v2136_v0, %v1908_v50  ;;  %v3009_v50 = vld [vmem:[%s5003_s5 + $0x4c0] sm:$0xff] }
 0x679   : > { %v3260_v0 = vld [vmem:[#allocation3 + $0x210] sm:$0xff] }
 0x67a   : > { %2042 = vadd.xlane.f32.xlu1 %v2041_v3  ;;  %2039 = vadd.xlane.f32.xlu0 %v2038_v15  ;;  %v2138_v47 = vadd.f32 %v2137_v6, %v1911_v63  ;;  %v1859_v63 = vmul.f32 %v3259_v62, %v3008_v40  ;;  %v1858_v3 = vmul.f32 %v3260_v0, %v3007_v5  ;;  %v3261_v15 = vld [vmem:[#allocation3 + $0x220] sm:$0xff] }
 0x67b   : > { %2045 = vadd.xlane.f32.xlu2 %v2044_v44  ;;  %v1860_v44 = vmul.f32 %v3261_v15, %v3009_v50  ;;  %v3020_v15 = vld [vmem:[%s5003_s5 + $0x518] sm:$0xff] }
 0x67c   : > { %v2077_v33 = vsel %vm1104_vm8, %v1859_v63, 0.0  ;;  %v2074_v42 = vsel %vm1104_vm8, %v1858_v3, 0.0 }
 0x67d   : > { %v1917_v48 = vpop.xlane.xlu1 %1916  ;;  %v1914_v51 = vpop.xlane.xlu0 %1913  ;;  %v2080_v41 = vsel %vm1104_vm8, %v1860_v44, 0.0 }
 0x67e   : > { %v1920_v52 = vpop.xlane.xlu2 %1919  ;;  %v2139_v8 = vadd.f32 %v2138_v47, %v1914_v51  ;;  %v3010_v47 = vld [vmem:[%s5003_s5 + $0x4c8] sm:$0xff]  ;;  %v3262_v51 = vld [vmem:[#allocation3 + $0x230] sm:$0xff] }
 0x680   : > { %v2140_v16 = vadd.f32 %v2139_v8, %v1917_v48  ;;  %v3012_v48 = vld [vmem:[%s5003_s5 + $0x4d8] sm:$0xff] }
 0x681   : > { %v3263_v8 = vld [vmem:[#allocation3 + $0x228] sm:$0xff] }
 0x682   : > { %2051 = vadd.xlane.f32.xlu1 %v2050_v13  ;;  %2048 = vadd.xlane.f32.xlu0 %v2047_v25  ;;  %v2141_v34 = vadd.f32 %v2140_v16, %v1920_v52  ;;  %v1862_v52 = vmul.f32 %v3262_v51, %v3011_v43  ;;  %v1861_v13 = vmul.f32 %v3263_v8, %v3010_v47  ;;  %v3264_v25 = vld [vmem:[#allocation3 + $0x238] sm:$0xff] }
 0x683   : > { %2054 = vadd.xlane.f32.xlu2 %v2053_v12  ;;  %v1863_v12 = vmul.f32 %v3264_v25, %v3012_v48  ;;  %v3023_v25 = vld [vmem:[%s5003_s5 + $0x530] sm:$0xff] }
 0x684   : > { %v2086_v28 = vsel %vm1104_vm8, %v1862_v52, 0.0  ;;  %v2083_v29 = vsel %vm1104_vm8, %v1861_v13, 0.0 }
 0x685   : > { %v1926_v37 = vpop.xlane.xlu1 %1925  ;;  %v1923_v53 = vpop.xlane.xlu0 %1922  ;;  %v2089_v30 = vsel %vm1104_vm8, %v1863_v12, 0.0 }
 0x686   : > { %v1929_v55 = vpop.xlane.xlu2 %1928  ;;  %v2142_v36 = vadd.f32 %v2141_v34, %v1923_v53  ;;  %v3013_v34 = vld [vmem:[%s5003_s5 + $0x4e0] sm:$0xff]  ;;  %v3265_v53 = vld [vmem:[#allocation3 + $0x248] sm:$0xff] }
 0x688   : > { %v2143_v1 = vadd.f32 %v2142_v36, %v1926_v37  ;;  %v3015_v37 = vld [vmem:[%s5003_s5 + $0x4f0] sm:$0xff] }
 0x689   : > { %v3266_v36 = vld [vmem:[#allocation3 + $0x240] sm:$0xff] }
 0x68a   : > { %2060 = vadd.xlane.f32.xlu1 %v2059_v39  ;;  %2057 = vadd.xlane.f32.xlu0 %v2056_v54  ;;  %v2144_v20 = vadd.f32 %v2143_v1, %v1929_v55  ;;  %v1865_v55 = vmul.f32 %v3265_v53, %v3014_v31  ;;  %v1864_v39 = vmul.f32 %v3266_v36, %v3013_v34  ;;  %v3267_v54 = vld [vmem:[#allocation3 + $0x250] sm:$0xff] }
 0x68b   : > { %2063 = vadd.xlane.f32.xlu2 %v2062_v57  ;;  %v1866_v57 = vmul.f32 %v3267_v54, %v3015_v37  ;;  %v3026_v54 = vld [vmem:[%s5003_s5 + $0x548] sm:$0xff] }
 0x68c   : > { %v2095_v17 = vsel %vm1104_vm8, %v1865_v55, 0.0  ;;  %v2092_v49 = vsel %vm1104_vm8, %v1864_v39, 0.0 }
 0x68d   : > { %v1935_v59 = vpop.xlane.xlu1 %1934  ;;  %v1932_v21 = vpop.xlane.xlu0 %1931  ;;  %v2098_v19 = vsel %vm1104_vm8, %v1866_v57, 0.0 }
 0x68e   : > { %v1938_v22 = vpop.xlane.xlu2 %1937  ;;  %v2145_v24 = vadd.f32 %v2144_v20, %v1932_v21  ;;  %v3016_v20 = vld [vmem:[%s5003_s5 + $0x4f8] sm:$0xff]  ;;  %v3268_v21 = vld [vmem:[#allocation3 + $0x260] sm:$0xff] }
 0x690   : > { %v2146_v4 = vadd.f32 %v2145_v24, %v1935_v59  ;;  %v3018_v59 = vld [vmem:[%s5003_s5 + $0x508] sm:$0xff] }
 0x691   : > { %v3269_v24 = vld [vmem:[#allocation3 + $0x258] sm:$0xff] }
 0x692   : > { %2069 = vadd.xlane.f32.xlu1 %v2068_v35  ;;  %2066 = vadd.xlane.f32.xlu0 %v2065_v60  ;;  %v2147_v46 = vadd.f32 %v2146_v4, %v1938_v22  ;;  %v1868_v22 = vmul.f32 %v3268_v21, %v3017_v18  ;;  %v1867_v35 = vmul.f32 %v3269_v24, %v3016_v20  ;;  %v3270_v60 = vld [vmem:[#allocation3 + $0x268] sm:$0xff] }
 0x693   : > { %2072 = vadd.xlane.f32.xlu2 %v2071_v38  ;;  %v1869_v38 = vmul.f32 %v3270_v60, %v3018_v59  ;;  %v3029_v60 = vld [vmem:[%s5003_s5 + $0x560] sm:$0xff] }
 0x694   : > { %v2104_v63 = vsel %vm1104_vm8, %v1868_v22, 0.0  ;;  %v2101_v0 = vsel %vm1104_vm8, %v1867_v35, 0.0 }
 0x695   : > { %v1944_v6 = vpop.xlane.xlu1 %1943  ;;  %v1941_v7 = vpop.xlane.xlu0 %1940  ;;  %v2107_v3 = vsel %vm1104_vm8, %v1869_v38, 0.0 }
 0x696   : > { %v1947_v9 = vpop.xlane.xlu2 %1946  ;;  %v2148_v11 = vadd.f32 %v2147_v46, %v1941_v7  ;;  %v3019_v46 = vld [vmem:[%s5003_s5 + $0x510] sm:$0xff]  ;;  %v3271_v7 = vld [vmem:[#allocation3 + $0x278] sm:$0xff] }
 0x698   : > { %v2149_v45 = vadd.f32 %v2148_v11, %v1944_v6  ;;  %v3021_v6 = vld [vmem:[%s5003_s5 + $0x520] sm:$0xff] }
 0x699   : > { %v3272_v11 = vld [vmem:[#allocation3 + $0x270] sm:$0xff] }
 0x69a   : > { %2078 = vadd.xlane.f32.xlu1 %v2077_v33  ;;  %2075 = vadd.xlane.f32.xlu0 %v2074_v42  ;;  %v2150_v14 = vadd.f32 %v2149_v45, %v1947_v9  ;;  %v1871_v9 = vmul.f32 %v3271_v7, %v3020_v15  ;;  %v1870_v33 = vmul.f32 %v3272_v11, %v3019_v46  ;;  %v3273_v42 = vld [vmem:[#allocation3 + $0x280] sm:$0xff] }
 0x69b   : > { %2081 = vadd.xlane.f32.xlu2 %v2080_v41  ;;  %v1872_v41 = vmul.f32 %v3273_v42, %v3021_v6  ;;  %v3032_v42 = vld [vmem:[%s5003_s5 + $0x578] sm:$0xff] }
 0x69c   : > { %v2113_v52 = vsel %vm1104_vm8, %v1871_v9, 0.0  ;;  %v2110_v8 = vsel %vm1104_vm8, %v1870_v33, 0.0 }
 0x69d   : > { %v1953_v16 = vpop.xlane.xlu1 %1952  ;;  %v1950_v23 = vpop.xlane.xlu0 %1949  ;;  %v2116_v13 = vsel %vm1104_vm8, %v1872_v41, 0.0 }
 0x69e   : > { %v1956_v26 = vpop.xlane.xlu2 %1955  ;;  %v2151_v27 = vadd.f32 %v2150_v14, %v1950_v23  ;;  %v3022_v14 = vld [vmem:[%s5003_s5 + $0x528] sm:$0xff]  ;;  %v3274_v23 = vld [vmem:[#allocation3 + $0x290] sm:$0xff] }
 0x6a0   : > { %v2152_v32 = vadd.f32 %v2151_v27, %v1953_v16  ;;  %v3024_v16 = vld [vmem:[%s5003_s5 + $0x538] sm:$0xff] }
 0x6a1   : > { %v3275_v27 = vld [vmem:[#allocation3 + $0x288] sm:$0xff] }
 0x6a2   : > { %2087 = vadd.xlane.f32.xlu1 %v2086_v28  ;;  %2084 = vadd.xlane.f32.xlu0 %v2083_v29  ;;  %v2153_v61 = vadd.f32 %v2152_v32, %v1956_v26  ;;  %v1874_v26 = vmul.f32 %v3274_v23, %v3023_v25  ;;  %v1873_v28 = vmul.f32 %v3275_v27, %v3022_v14  ;;  %v3276_v29 = vld [vmem:[#allocation3 + $0x298] sm:$0xff] }
 0x6a3   : > { %2090 = vadd.xlane.f32.xlu2 %v2089_v30  ;;  %v1875_v30 = vmul.f32 %v3276_v29, %v3024_v16  ;;  %v3035_v29 = vld [vmem:[%s5003_s5 + $0x590] sm:$0xff] }
 0x6a4   : > { %v2122_v55 = vsel %vm1104_vm8, %v1874_v26, 0.0  ;;  %v2119_v36 = vsel %vm1104_vm8, %v1873_v28, 0.0 }
 0x6a5   : > { %v1962_v1 = vpop.xlane.xlu1 %1961  ;;  %v1959_v2 = vpop.xlane.xlu0 %1958  ;;  %v2125_v39 = vsel %vm1104_vm8, %v1875_v30, 0.0 }
 0x6a6   : > { %v1965_v56 = vpop.xlane.xlu2 %1964  ;;  %v2154_v10 = vadd.f32 %v2153_v61, %v1959_v2  ;;  %v3025_v61 = vld [vmem:[%s5003_s5 + $0x540] sm:$0xff]  ;;  %v3277_v2 = vld [vmem:[#allocation3 + $0x8] sm:$0xff] }
 0x6a8   : > { %v2155_v58 = vadd.f32 %v2154_v10, %v1962_v1  ;;  %v3027_v1 = vld [vmem:[%s5003_s5 + $0x550] sm:$0xff] }
 0x6a9   : > { %v3278_v10 = vld [vmem:[#allocation3] sm:$0xff] }
 0x6aa   : > { %2096 = vadd.xlane.f32.xlu1 %v2095_v17  ;;  %2093 = vadd.xlane.f32.xlu0 %v2092_v49  ;;  %v2156_v40 = vadd.f32 %v2155_v58, %v1965_v56  ;;  %v2306_v56 = vmul.f32 %v3277_v2, %v3026_v54  ;;  %v2305_v17 = vmul.f32 %v3278_v10, %v3025_v61  ;;  %v3279_v49 = vld [vmem:[#allocation3 + $0x10] sm:$0xff] }
 0x6ab   : > { %2099 = vadd.xlane.f32.xlu2 %v2098_v19  ;;  %v2307_v19 = vmul.f32 %v3279_v49, %v3027_v1  ;;  %v3038_v49 = vld [vmem:[%s5003_s5 + $0x5a8] sm:$0xff] }
 0x6ac   : > { %v2392_v22 = vsel %vm1104_vm8, %v2306_v56, 0.0  ;;  %v2389_v24 = vsel %vm1104_vm8, %v2305_v17, 0.0 }
 0x6ad   : > { %v1971_v4 = vpop.xlane.xlu1 %1970  ;;  %v1968_v5 = vpop.xlane.xlu0 %1967  ;;  %v2395_v35 = vsel %vm1104_vm8, %v2307_v19, 0.0 }
 0x6ae   : > { %v1974_v50 = vpop.xlane.xlu2 %1973  ;;  %v2157_v62 = vadd.f32 %v2156_v40, %v1968_v5  ;;  %v3028_v40 = vld [vmem:[%s5003_s5 + $0x558] sm:$0xff]  ;;  %v3280_v5 = vld [vmem:[#allocation3 + $0x20] sm:$0xff] }
 0x6b0   : > { %v2158_v44 = vadd.f32 %v2157_v62, %v1971_v4  ;;  %v3030_v4 = vld [vmem:[%s5003_s5 + $0x568] sm:$0xff] }
 0x6b1   : > { %v3281_v62 = vld [vmem:[#allocation3 + $0x18] sm:$0xff] }
 0x6b2   : > { %2105 = vadd.xlane.f32.xlu1 %v2104_v63  ;;  %2102 = vadd.xlane.f32.xlu0 %v2101_v0  ;;  %v2159_v43 = vadd.f32 %v2158_v44, %v1974_v50  ;;  %v2309_v50 = vmul.f32 %v3280_v5, %v3029_v60  ;;  %v2308_v63 = vmul.f32 %v3281_v62, %v3028_v40  ;;  %v3282_v0 = vld [vmem:[#allocation3 + $0x28] sm:$0xff] }
 0x6b3   : > { %2108 = vadd.xlane.f32.xlu2 %v2107_v3  ;;  %v2310_v3 = vmul.f32 %v3282_v0, %v3030_v4  ;;  %v3041_v0 = vld [vmem:[%s5003_s5 + $0x5c0] sm:$0xff] }
 0x6b4   : > { %v2401_v9 = vsel %vm1104_vm8, %v2309_v50, 0.0  ;;  %v2398_v11 = vsel %vm1104_vm8, %v2308_v63, 0.0 }
 0x6b5   : > { %v1980_v45 = vpop.xlane.xlu1 %1979  ;;  %v1977_v47 = vpop.xlane.xlu0 %1976  ;;  %v2404_v33 = vsel %vm1104_vm8, %v2310_v3, 0.0 }
 0x6b6   : > { %v1983_v48 = vpop.xlane.xlu2 %1982  ;;  %v2160_v51 = vadd.f32 %v2159_v43, %v1977_v47  ;;  %v3031_v43 = vld [vmem:[%s5003_s5 + $0x570] sm:$0xff]  ;;  %v3283_v47 = vld [vmem:[#allocation3 + $0x38] sm:$0xff] }
 0x6b8   : > { %v2161_v12 = vadd.f32 %v2160_v51, %v1980_v45  ;;  %v3033_v45 = vld [vmem:[%s5003_s5 + $0x580] sm:$0xff] }
 0x6b9   : > { %v3284_v51 = vld [vmem:[#allocation3 + $0x30] sm:$0xff] }
 0x6ba   : > { %2114 = vadd.xlane.f32.xlu1 %v2113_v52  ;;  %2111 = vadd.xlane.f32.xlu0 %v2110_v8  ;;  %v2162_v31 = vadd.f32 %v2161_v12, %v1983_v48  ;;  %v2312_v48 = vmul.f32 %v3283_v47, %v3032_v42  ;;  %v2311_v52 = vmul.f32 %v3284_v51, %v3031_v43  ;;  %v3285_v8 = vld [vmem:[#allocation3 + $0x40] sm:$0xff] }
 0x6bb   : > { %2117 = vadd.xlane.f32.xlu2 %v2116_v13  ;;  %v2313_v13 = vmul.f32 %v3285_v8, %v3033_v45  ;;  %v3044_v8 = vld [vmem:[%s5003_s5 + $0x5d8] sm:$0xff] }
 0x6bc   : > { %v2410_v26 = vsel %vm1104_vm8, %v2312_v48, 0.0  ;;  %v2407_v27 = vsel %vm1104_vm8, %v2311_v52, 0.0 }
 0x6bd   : > { %v1989_v32 = vpop.xlane.xlu1 %1988  ;;  %v1986_v34 = vpop.xlane.xlu0 %1985  ;;  %v2413_v28 = vsel %vm1104_vm8, %v2313_v13, 0.0 }
 0x6be   : > { %v1992_v37 = vpop.xlane.xlu2 %1991  ;;  %v2163_v53 = vadd.f32 %v2162_v31, %v1986_v34  ;;  %v3034_v31 = vld [vmem:[%s5003_s5 + $0x588] sm:$0xff]  ;;  %v3286_v34 = vld [vmem:[#allocation3 + $0x50] sm:$0xff] }
 0x6c0   : > { %v2164_v57 = vadd.f32 %v2163_v53, %v1989_v32  ;;  %v3036_v32 = vld [vmem:[%s5003_s5 + $0x598] sm:$0xff] }
 0x6c1   : > { %v3287_v53 = vld [vmem:[#allocation3 + $0x48] sm:$0xff] }
 0x6c2   : > { %2123 = vadd.xlane.f32.xlu1 %v2122_v55  ;;  %2120 = vadd.xlane.f32.xlu0 %v2119_v36  ;;  %v2165_v18 = vadd.f32 %v2164_v57, %v1992_v37  ;;  %v2315_v37 = vmul.f32 %v3286_v34, %v3035_v29  ;;  %v2314_v55 = vmul.f32 %v3287_v53, %v3034_v31  ;;  %v3288_v36 = vld [vmem:[#allocation3 + $0x58] sm:$0xff] }
 0x6c3   : > { %2126 = vadd.xlane.f32.xlu2 %v2125_v39  ;;  %v2316_v39 = vmul.f32 %v3288_v36, %v3036_v32  ;;  %v3047_v36 = vld [vmem:[%s5003_s5 + $0x5f0] sm:$0xff] }
 0x6c4   : > { %v2419_v56 = vsel %vm1104_vm8, %v2315_v37, 0.0  ;;  %v2416_v10 = vsel %vm1104_vm8, %v2314_v55, 0.0 }
 0x6c5   : > { %v1998_v58 = vpop.xlane.xlu1 %1997  ;;  %v1995_v20 = vpop.xlane.xlu0 %1994  ;;  %v2422_v17 = vsel %vm1104_vm8, %v2316_v39, 0.0 }
 0x6c6   : > { %v2001_v59 = vpop.xlane.xlu2 %2000  ;;  %v2166_v21 = vadd.f32 %v2165_v18, %v1995_v20  ;;  %v3037_v18 = vld [vmem:[%s5003_s5 + $0x5a0] sm:$0xff]  ;;  %v3289_v20 = vld [vmem:[#allocation3 + $0x68] sm:$0xff] }
 0x6c8   : > { %v2167_v38 = vadd.f32 %v2166_v21, %v1998_v58  ;;  %v3039_v58 = vld [vmem:[%s5003_s5 + $0x5b0] sm:$0xff] }
 0x6c9   : > { %v3290_v21 = vld [vmem:[#allocation3 + $0x60] sm:$0xff] }
 0x6ca   : > { %2393 = vadd.xlane.f32.xlu1 %v2392_v22  ;;  %2390 = vadd.xlane.f32.xlu0 %v2389_v24  ;;  %v2168_v15 = vadd.f32 %v2167_v38, %v2001_v59  ;;  %v2318_v59 = vmul.f32 %v3289_v20, %v3038_v49  ;;  %v2317_v22 = vmul.f32 %v3290_v21, %v3037_v18  ;;  %v3291_v24 = vld [vmem:[#allocation3 + $0x70] sm:$0xff] }
 0x6cb   : > { %2396 = vadd.xlane.f32.xlu2 %v2395_v35  ;;  %v2319_v35 = vmul.f32 %v3291_v24, %v3039_v58  ;;  %v3050_v24 = vld [vmem:[%s5003_s5 + $0x608] sm:$0xff] }
 0x6cc   : > { %v2428_v50 = vsel %vm1104_vm8, %v2318_v59, 0.0  ;;  %v2425_v62 = vsel %vm1104_vm8, %v2317_v22, 0.0 }
 0x6cd   : > { %v2007_v44 = vpop.xlane.xlu1 %2006  ;;  %v2004_v46 = vpop.xlane.xlu0 %2003  ;;  %v2431_v63 = vsel %vm1104_vm8, %v2319_v35, 0.0 }
 0x6ce   : > { %v2010_v6 = vpop.xlane.xlu2 %2009  ;;  %v2169_v7 = vadd.f32 %v2168_v15, %v2004_v46  ;;  %v3040_v15 = vld [vmem:[%s5003_s5 + $0x5b8] sm:$0xff]  ;;  %v3292_v46 = vld [vmem:[#allocation3 + $0x80] sm:$0xff] }
 0x6d0   : > { %v2170_v41 = vadd.f32 %v2169_v7, %v2007_v44  ;;  %v3042_v44 = vld [vmem:[%s5003_s5 + $0x5c8] sm:$0xff] }
 0x6d1   : > { %v3293_v7 = vld [vmem:[#allocation3 + $0x78] sm:$0xff] }
 0x6d2   : > { %2402 = vadd.xlane.f32.xlu1 %v2401_v9  ;;  %2399 = vadd.xlane.f32.xlu0 %v2398_v11  ;;  %v2171_v25 = vadd.f32 %v2170_v41, %v2010_v6  ;;  %v2321_v6 = vmul.f32 %v3292_v46, %v3041_v0  ;;  %v2320_v9 = vmul.f32 %v3293_v7, %v3040_v15  ;;  %v3294_v11 = vld [vmem:[#allocation3 + $0x88] sm:$0xff] }
 0x6d3   : > { %2405 = vadd.xlane.f32.xlu2 %v2404_v33  ;;  %v2322_v33 = vmul.f32 %v3294_v11, %v3042_v44  ;;  %v3053_v11 = vld [vmem:[%s5003_s5 + $0x620] sm:$0xff] }
 0x6d4   : > { %v2437_v48 = vsel %vm1104_vm8, %v2321_v6, 0.0  ;;  %v2434_v51 = vsel %vm1104_vm8, %v2320_v9, 0.0 }
 0x6d5   : > { %v2016_v12 = vpop.xlane.xlu1 %2015  ;;  %v2013_v14 = vpop.xlane.xlu0 %2012  ;;  %v2440_v52 = vsel %vm1104_vm8, %v2322_v33, 0.0 }
 0x6d6   : > { %v2019_v16 = vpop.xlane.xlu2 %2018  ;;  %v2172_v23 = vadd.f32 %v2171_v25, %v2013_v14  ;;  %v3043_v25 = vld [vmem:[%s5003_s5 + $0x5d0] sm:$0xff]  ;;  %v3295_v14 = vld [vmem:[#allocation3 + $0x98] sm:$0xff] }
 0x6d8   : > { %v2173_v30 = vadd.f32 %v2172_v23, %v2016_v12  ;;  %v3045_v12 = vld [vmem:[%s5003_s5 + $0x5e0] sm:$0xff] }
 0x6d9   : > { %v3296_v23 = vld [vmem:[#allocation3 + $0x90] sm:$0xff] }
 0x6da   : > { %2411 = vadd.xlane.f32.xlu1 %v2410_v26  ;;  %2408 = vadd.xlane.f32.xlu0 %v2407_v27  ;;  %v2174_v54 = vadd.f32 %v2173_v30, %v2019_v16  ;;  %v2324_v16 = vmul.f32 %v3295_v14, %v3044_v8  ;;  %v2323_v26 = vmul.f32 %v3296_v23, %v3043_v25  ;;  %v3297_v27 = vld [vmem:[#allocation3 + $0xa0] sm:$0xff] }
 0x6db   : > { %2414 = vadd.xlane.f32.xlu2 %v2413_v28  ;;  %v2325_v28 = vmul.f32 %v3297_v27, %v3045_v12  ;;  %v3056_v27 = vld [vmem:[%s5003_s5 + $0x638] sm:$0xff] }
 0x6dc   : > { %v2446_v37 = vsel %vm1104_vm8, %v2324_v16, 0.0  ;;  %v2443_v53 = vsel %vm1104_vm8, %v2323_v26, 0.0 }
 0x6dd   : > { %v2025_v57 = vpop.xlane.xlu1 %2024  ;;  %v2022_v61 = vpop.xlane.xlu0 %2021  ;;  %v2449_v55 = vsel %vm1104_vm8, %v2325_v28, 0.0 }
 0x6de   : > { %v2028_v1 = vpop.xlane.xlu2 %2027  ;;  %v2175_v2 = vadd.f32 %v2174_v54, %v2022_v61  ;;  %v3046_v54 = vld [vmem:[%s5003_s5 + $0x5e8] sm:$0xff]  ;;  %v3298_v61 = vld [vmem:[#allocation3 + $0xb0] sm:$0xff] }
 0x6e0   : > { %v2176_v19 = vadd.f32 %v2175_v2, %v2025_v57  ;;  %v3048_v57 = vld [vmem:[%s5003_s5 + $0x5f8] sm:$0xff] }
 0x6e1   : > { %v3299_v2 = vld [vmem:[#allocation3 + $0xa8] sm:$0xff] }
 0x6e2   : > { %2420 = vadd.xlane.f32.xlu1 %v2419_v56  ;;  %2417 = vadd.xlane.f32.xlu0 %v2416_v10  ;;  %v2177_v60 = vadd.f32 %v2176_v19, %v2028_v1  ;;  %v2327_v1 = vmul.f32 %v3298_v61, %v3047_v36  ;;  %v2326_v56 = vmul.f32 %v3299_v2, %v3046_v54  ;;  %v3300_v10 = vld [vmem:[#allocation3 + $0xb8] sm:$0xff] }
 0x6e3   : > { %2423 = vadd.xlane.f32.xlu2 %v2422_v17  ;;  %v2328_v17 = vmul.f32 %v3300_v10, %v3048_v57  ;;  %v3059_v10 = vld [vmem:[%s5003_s5 + $0x650] sm:$0xff] }
 0x6e4   : > { %v2455_v59 = vsel %vm1104_vm8, %v2327_v1, 0.0  ;;  %v2452_v21 = vsel %vm1104_vm8, %v2326_v56, 0.0 }
 0x6e5   : > { %v2034_v38 = vpop.xlane.xlu1 %2033  ;;  %v2031_v40 = vpop.xlane.xlu0 %2030  ;;  %v2458_v22 = vsel %vm1104_vm8, %v2328_v17, 0.0 }
 0x6e6   : > { %v2037_v4 = vpop.xlane.xlu2 %2036  ;;  %v2178_v5 = vadd.f32 %v2177_v60, %v2031_v40  ;;  %v3049_v60 = vld [vmem:[%s5003_s5 + $0x600] sm:$0xff]  ;;  %v3301_v40 = vld [vmem:[#allocation3 + $0xc8] sm:$0xff] }
 0x6e8   : > { %v2179_v3 = vadd.f32 %v2178_v5, %v2034_v38  ;;  %v3051_v38 = vld [vmem:[%s5003_s5 + $0x610] sm:$0xff] }
 0x6e9   : > { %v3302_v5 = vld [vmem:[#allocation3 + $0xc0] sm:$0xff] }
 0x6ea   : > { %2429 = vadd.xlane.f32.xlu1 %v2428_v50  ;;  %2426 = vadd.xlane.f32.xlu0 %v2425_v62  ;;  %v2180_v42 = vadd.f32 %v2179_v3, %v2037_v4  ;;  %v2330_v4 = vmul.f32 %v3301_v40, %v3050_v24  ;;  %v2329_v50 = vmul.f32 %v3302_v5, %v3049_v60  ;;  %v3303_v62 = vld [vmem:[#allocation3 + $0xd0] sm:$0xff] }
 0x6eb   : > { %2432 = vadd.xlane.f32.xlu2 %v2431_v63  ;;  %v2331_v63 = vmul.f32 %v3303_v62, %v3051_v38  ;;  %v3062_v62 = vld [vmem:[%s5003_s5 + $0x668] sm:$0xff] }
 0x6ec   : > { %v2464_v6 = vsel %vm1104_vm8, %v2330_v4, 0.0  ;;  %v2461_v7 = vsel %vm1104_vm8, %v2329_v50, 0.0 }
 0x6ed   : > { %v2043_v41 = vpop.xlane.xlu1 %2042  ;;  %v2040_v43 = vpop.xlane.xlu0 %2039  ;;  %v2467_v9 = vsel %vm1104_vm8, %v2331_v63, 0.0 }
 0x6ee   : > { %v2046_v45 = vpop.xlane.xlu2 %2045  ;;  %v2181_v47 = vadd.f32 %v2180_v42, %v2040_v43  ;;  %v3052_v42 = vld [vmem:[%s5003_s5 + $0x618] sm:$0xff]  ;;  %v3304_v43 = vld [vmem:[#allocation3 + $0xe0] sm:$0xff] }
 0x6f0   : > { %v2182_v13 = vadd.f32 %v2181_v47, %v2043_v41  ;;  %v3054_v41 = vld [vmem:[%s5003_s5 + $0x628] sm:$0xff] }
 0x6f1   : > { %v3305_v47 = vld [vmem:[#allocation3 + $0xd8] sm:$0xff] }
 0x6f2   : > { %2438 = vadd.xlane.f32.xlu1 %v2437_v48  ;;  %2435 = vadd.xlane.f32.xlu0 %v2434_v51  ;;  %v2183_v29 = vadd.f32 %v2182_v13, %v2046_v45  ;;  %v2333_v45 = vmul.f32 %v3304_v43, %v3053_v11  ;;  %v2332_v48 = vmul.f32 %v3305_v47, %v3052_v42  ;;  %v3306_v51 = vld [vmem:[#allocation3 + $0xe8] sm:$0xff] }
 0x6f3   : > { %2441 = vadd.xlane.f32.xlu2 %v2440_v52  ;;  %v2334_v52 = vmul.f32 %v3306_v51, %v3054_v41  ;;  %v3065_v51 = vld [vmem:[%s5003_s5 + $0x680] sm:$0xff] }
 0x6f4   : > { %v2473_v16 = vsel %vm1104_vm8, %v2333_v45, 0.0  ;;  %v2470_v23 = vsel %vm1104_vm8, %v2332_v48, 0.0 }
 0x6f5   : > { %v2052_v30 = vpop.xlane.xlu1 %2051  ;;  %v2049_v31 = vpop.xlane.xlu0 %2048  ;;  %v2476_v26 = vsel %vm1104_vm8, %v2334_v52, 0.0 }
 0x6f6   : > { %v2055_v32 = vpop.xlane.xlu2 %2054  ;;  %v2184_v34 = vadd.f32 %v2183_v29, %v2049_v31  ;;  %v3055_v29 = vld [vmem:[%s5003_s5 + $0x630] sm:$0xff]  ;;  %v3307_v31 = vld [vmem:[#allocation3 + $0xf8] sm:$0xff] }
 0x6f8   : > { %v2185_v39 = vadd.f32 %v2184_v34, %v2052_v30  ;;  %v3057_v30 = vld [vmem:[%s5003_s5 + $0x640] sm:$0xff] }
 0x6f9   : > { %v3308_v34 = vld [vmem:[#allocation3 + $0xf0] sm:$0xff] }
 0x6fa   : > { %2447 = vadd.xlane.f32.xlu1 %v2446_v37  ;;  %2444 = vadd.xlane.f32.xlu0 %v2443_v53  ;;  %v2186_v49 = vadd.f32 %v2185_v39, %v2055_v32  ;;  %v2336_v32 = vmul.f32 %v3307_v31, %v3056_v27  ;;  %v2335_v37 = vmul.f32 %v3308_v34, %v3055_v29  ;;  %v3309_v53 = vld [vmem:[#allocation3 + $0x100] sm:$0xff] }
 0x6fb   : > { %2450 = vadd.xlane.f32.xlu2 %v2449_v55  ;;  %v2337_v55 = vmul.f32 %v3309_v53, %v3057_v30  ;;  %v3068_v53 = vld [vmem:[%s5003_s5 + $0x698] sm:$0xff] }
 0x6fc   : > { %v2482_v1 = vsel %vm1104_vm8, %v2336_v32, 0.0  ;;  %v2479_v2 = vsel %vm1104_vm8, %v2335_v37, 0.0 }
 0x6fd   : > { %v2061_v19 = vpop.xlane.xlu1 %2060  ;;  %v2058_v18 = vpop.xlane.xlu0 %2057  ;;  %v2485_v56 = vsel %vm1104_vm8, %v2337_v55, 0.0 }
 0x6fe   : > { %v2064_v58 = vpop.xlane.xlu2 %2063  ;;  %v2187_v20 = vadd.f32 %v2186_v49, %v2058_v18  ;;  %v3058_v49 = vld [vmem:[%s5003_s5 + $0x648] sm:$0xff]  ;;  %v3310_v18 = vld [vmem:[#allocation3 + $0x110] sm:$0xff] }
 0x700   : > { %v2188_v35 = vadd.f32 %v2187_v20, %v2061_v19  ;;  %v3060_v19 = vld [vmem:[%s5003_s5 + $0x658] sm:$0xff] }
 0x701   : > { %v3311_v20 = vld [vmem:[#allocation3 + $0x108] sm:$0xff] }
 0x702   : > { %2456 = vadd.xlane.f32.xlu1 %v2455_v59  ;;  %2453 = vadd.xlane.f32.xlu0 %v2452_v21  ;;  %v2189_v0 = vadd.f32 %v2188_v35, %v2064_v58  ;;  %v2339_v58 = vmul.f32 %v3310_v18, %v3059_v10  ;;  %v2338_v59 = vmul.f32 %v3311_v20, %v3058_v49  ;;  %v3312_v21 = vld [vmem:[#allocation3 + $0x118] sm:$0xff] }
 0x703   : > { %2459 = vadd.xlane.f32.xlu2 %v2458_v22  ;;  %v2340_v22 = vmul.f32 %v3312_v21, %v3060_v19  ;;  %v3071_v21 = vld [vmem:[%s5003_s5 + $0x6b0] sm:$0xff] }
 0x704   : > { %v2491_v4 = vsel %vm1104_vm8, %v2339_v58, 0.0  ;;  %v2488_v5 = vsel %vm1104_vm8, %v2338_v59, 0.0 }
 0x705   : > { %v2070_v3 = vpop.xlane.xlu1 %2069  ;;  %v2067_v15 = vpop.xlane.xlu0 %2066  ;;  %v2494_v50 = vsel %vm1104_vm8, %v2340_v22, 0.0 }
 0x706   : > { %v2073_v44 = vpop.xlane.xlu2 %2072  ;;  %v2190_v46 = vadd.f32 %v2189_v0, %v2067_v15  ;;  %v3061_v0 = vld [vmem:[%s5003_s5 + $0x660] sm:$0xff]  ;;  %v3313_v15 = vld [vmem:[#allocation3 + $0x128] sm:$0xff] }
 0x708   : > { %v2191_v33 = vadd.f32 %v2190_v46, %v2070_v3  ;;  %v3063_v3 = vld [vmem:[%s5003_s5 + $0x670] sm:$0xff] }
 0x709   : > { %v3314_v46 = vld [vmem:[#allocation3 + $0x120] sm:$0xff] }
 0x70a   : > { %2465 = vadd.xlane.f32.xlu1 %v2464_v6  ;;  %2462 = vadd.xlane.f32.xlu0 %v2461_v7  ;;  %v2192_v8 = vadd.f32 %v2191_v33, %v2073_v44  ;;  %v2342_v44 = vmul.f32 %v3313_v15, %v3062_v62  ;;  %v2341_v6 = vmul.f32 %v3314_v46, %v3061_v0  ;;  %v3315_v7 = vld [vmem:[#allocation3 + $0x130] sm:$0xff] }
 0x70b   : > { %2468 = vadd.xlane.f32.xlu2 %v2467_v9  ;;  %v2343_v9 = vmul.f32 %v3315_v7, %v3063_v3 }
 0x70c   : > { %v2500_v45 = vsel %vm1104_vm8, %v2342_v44, 0.0  ;;  %v2497_v47 = vsel %vm1104_vm8, %v2341_v6, 0.0 }
 0x70d   : > { %v2079_v13 = vpop.xlane.xlu1 %2078  ;;  %v2076_v25 = vpop.xlane.xlu0 %2075  ;;  %v2503_v48 = vsel %vm1104_vm8, %v2343_v9, 0.0  ;;  %v3074_v9 = vld [vmem:[%s5003_s5 + $0x6c8] sm:$0xff] }
 0x70e   : > { %v2082_v12 = vpop.xlane.xlu2 %2081  ;;  %v2193_v14 = vadd.f32 %v2192_v8, %v2076_v25  ;;  %v3064_v8 = vld [vmem:[%s5003_s5 + $0x678] sm:$0xff]  ;;  %v3316_v25 = vld [vmem:[#allocation3 + $0x140] sm:$0xff] }
 0x710   : > { %v2194_v28 = vadd.f32 %v2193_v14, %v2079_v13  ;;  %v3066_v13 = vld [vmem:[%s5003_s5 + $0x688] sm:$0xff] }
 0x711   : > { %v3317_v14 = vld [vmem:[#allocation3 + $0x138] sm:$0xff] }
 0x712   : > { %2474 = vadd.xlane.f32.xlu1 %v2473_v16  ;;  %2471 = vadd.xlane.f32.xlu0 %v2470_v23  ;;  %v2195_v36 = vadd.f32 %v2194_v28, %v2082_v12  ;;  %v2345_v12 = vmul.f32 %v3316_v25, %v3065_v51  ;;  %v2344_v16 = vmul.f32 %v3317_v14, %v3064_v8  ;;  %v3318_v23 = vld [vmem:[#allocation3 + $0x148] sm:$0xff] }
 0x713   : > { %2477 = vadd.xlane.f32.xlu2 %v2476_v26  ;;  %v2346_v26 = vmul.f32 %v3318_v23, %v3066_v13 }
 0x714   : > { %v2509_v32 = vsel %vm1104_vm8, %v2345_v12, 0.0  ;;  %v2506_v34 = vsel %vm1104_vm8, %v2344_v16, 0.0 }
 0x715   : > { %v2088_v39 = vpop.xlane.xlu1 %2087  ;;  %v2085_v54 = vpop.xlane.xlu0 %2084  ;;  %v2512_v37 = vsel %vm1104_vm8, %v2346_v26, 0.0 }
 0x716   : > { %v2091_v57 = vpop.xlane.xlu2 %2090  ;;  %v2196_v61 = vadd.f32 %v2195_v36, %v2085_v54  ;;  %v3067_v36 = vld [vmem:[%s5003_s5 + $0x690] sm:$0xff]  ;;  %v3319_v54 = vld [vmem:[#allocation3 + $0x158] sm:$0xff] }
 0x718   : > { %v2197_v17 = vadd.f32 %v2196_v61, %v2088_v39  ;;  %v3069_v39 = vld [vmem:[%s5003_s5 + $0x6a0] sm:$0xff] }
 0x719   : > { %v3320_v61 = vld [vmem:[#allocation3 + $0x150] sm:$0xff] }
 0x71a   : > { %2483 = vadd.xlane.f32.xlu1 %v2482_v1  ;;  %2480 = vadd.xlane.f32.xlu0 %v2479_v2  ;;  %v2198_v24 = vadd.f32 %v2197_v17, %v2091_v57  ;;  %v2348_v57 = vmul.f32 %v3319_v54, %v3068_v53  ;;  %v2347_v1 = vmul.f32 %v3320_v61, %v3067_v36  ;;  %v3321_v2 = vld [vmem:[#allocation3 + $0x160] sm:$0xff]  ;;  %v3078_v53 = vld [vmem:[%s5003_s5 + $0x6e8] sm:$0xff] }
 0x71b   : > { %2486 = vadd.xlane.f32.xlu2 %v2485_v56  ;;  %v2349_v56 = vmul.f32 %v3321_v2, %v3069_v39  ;;  %v3330_v39 = vld [vmem:[#allocation3 + $0x198] sm:$0xff] }
 0x71c   : > { %v2518_v58 = vsel %vm1104_vm8, %v2348_v57, 0.0  ;;  %v2515_v20 = vsel %vm1104_vm8, %v2347_v1, 0.0  ;;  %v3331_v57 = vld [vmem:[#allocation3 + $0x1a8] sm:$0xff] }
 0x71d   : > { %v2097_v35 = vpop.xlane.xlu1 %2096  ;;  %v2094_v60 = vpop.xlane.xlu0 %2093  ;;  %v2521_v59 = vsel %vm1104_vm8, %v2349_v56, 0.0  ;;  %v2358_v61 = vmul.f32 %v3331_v57, %v3078_v53 }
 0x71e   : > { %v2100_v38 = vpop.xlane.xlu2 %2099  ;;  %v2199_v40 = vadd.f32 %v2198_v24, %v2094_v60  ;;  %v3070_v24 = vld [vmem:[%s5003_s5 + $0x6a8] sm:$0xff] }
 0x720   : > { %v2200_v63 = vadd.f32 %v2199_v40, %v2097_v35  ;;  %v3072_v35 = vld [vmem:[%s5003_s5 + $0x6b8] sm:$0xff] }
 0x722   : > { %2492 = vadd.xlane.f32.xlu1 %v2491_v4  ;;  %2489 = vadd.xlane.f32.xlu0 %v2488_v5  ;;  %v2201_v11 = vadd.f32 %v2200_v63, %v2100_v38  ;;  %v3322_v38 = vld [vmem:[#allocation3 + $0x170] sm:$0xff]  ;;  %v3323_v4 = vld [vmem:[#allocation3 + $0x168] sm:$0xff] }
 0x723   : > { %2495 = vadd.xlane.f32.xlu2 %v2494_v50  ;;  %v2351_v40 = vmul.f32 %v3322_v38, %v3071_v21  ;;  %v2350_v5 = vmul.f32 %v3323_v4, %v3070_v24  ;;  %v3324_v50 = vld [vmem:[#allocation3 + $0x178] sm:$0xff]  ;;  %v3081_v21 = vld [vmem:[%s5003_s5 + $0x700] sm:$0xff]  ;;  %v3334_v38 = vld [vmem:[#allocation3 + $0x1c0] sm:$0xff] }
 0x724   : > { %v2352_v62 = vmul.f32 %v3324_v50, %v3072_v35  ;;  %v3333_v35 = vld [vmem:[#allocation3 + $0x1b0] sm:$0xff] }
 0x725   : > { %v2106_v33 = vpop.xlane.xlu1 %2105  ;;  %v2103_v42 = vpop.xlane.xlu0 %2102  ;;  %v2527_v46 = vsel %vm1104_vm8, %v2351_v40, 0.0  ;;  %v2524_v6 = vsel %vm1104_vm8, %v2350_v5, 0.0  ;;  %v2361_v40 = vmul.f32 %v3334_v38, %v3081_v21 }
 0x726   : > { %v2109_v41 = vpop.xlane.xlu2 %2108  ;;  %v2202_v43 = vadd.f32 %v2201_v11, %v2103_v42  ;;  %v2530_v7 = vsel %vm1104_vm8, %v2352_v62, 0.0  ;;  %v3073_v42 = vld [vmem:[%s5003_s5 + $0x6c0] sm:$0xff] }
 0x728   : > { %v2203_v52 = vadd.f32 %v2202_v43, %v2106_v33 }
 0x72a   : > { %2501 = vadd.xlane.f32.xlu1 %v2500_v45  ;;  %2498 = vadd.xlane.f32.xlu0 %v2497_v47  ;;  %v2204_v27 = vadd.f32 %v2203_v52, %v2109_v41  ;;  %v3075_v41 = vld [vmem:[%s5003_s5 + $0x6d0] sm:$0xff]  ;;  %v3325_v45 = vld [vmem:[#allocation3 + $0x188] sm:$0xff]  ;;  %v3327_v52 = vld [vmem:[#allocation3 + $0x190] sm:$0xff] }
 0x72b   : > { %2504 = vadd.xlane.f32.xlu2 %v2503_v48  ;;  %v2354_v47 = vmul.f32 %v3325_v45, %v3074_v9  ;;  %v3326_v48 = vld [vmem:[#allocation3 + $0x180] sm:$0xff]  ;;  %v2355_v8 = vmul.f32 %v3327_v52, %v3075_v41  ;;  %v3335_v9 = vld [vmem:[#allocation3 + $0x1d0] sm:$0xff]  ;;  %v3337_v41 = vld [vmem:[#allocation3 + $0x1d8] sm:$0xff] }
 0x72c   : > { %v2353_v51 = vmul.f32 %v3326_v48, %v3073_v42 }
 0x72d   : > { %v2115_v28 = vpop.xlane.xlu1 %2114  ;;  %v2112_v29 = vpop.xlane.xlu0 %2111 }
 0x72e   : > { %v2118_v30 = vpop.xlane.xlu2 %2117  ;;  %v2205_v31 = vadd.f32 %v2204_v27, %v2112_v29  ;;  %v2536_v27 = vsel %vm1104_vm8, %v2354_v47, 0.0  ;;  %v2539_v29 = vsel %vm1104_vm8, %v2355_v8, 0.0 }
 0x730   : > { %v2206_v55 = vadd.f32 %v2205_v31, %v2115_v28  ;;  %v2533_v28 = vsel %vm1104_vm8, %v2353_v51, 0.0  ;;  %v4829_v31 = vld [vmem:[%s5004_s6] sm:$0x1] }
 0x732   : > { %2510 = vadd.xlane.f32.xlu1 %v2509_v32  ;;  %2507 = vadd.xlane.f32.xlu0 %v2506_v34  ;;  %v2207_v10 = vadd.f32 %v2206_v55, %v2118_v30  ;;  %v3077_v30 = vld [vmem:[%s5003_s5 + $0x6e0] sm:$0xff]  ;;  %v3329_v55 = vld [vmem:[#allocation3 + $0x1a0] sm:$0xff] }
 0x733   : > { %2513 = vadd.xlane.f32.xlu2 %v2512_v37  ;;  %v3076_v37 = vld [vmem:[%s5003_s5 + $0x6d8] sm:$0xff]  ;;  %v2357_v36 = vmul.f32 %v3329_v55, %v3077_v30  ;;  %v3340_v30 = vld [vmem:[#allocation3 + $0x1f0] sm:$0xff] }
 0x734   : > { %v2356_v54 = vmul.f32 %v3330_v39, %v3076_v37 }
 0x735   : > { %v2124_v17 = vpop.xlane.xlu1 %2123  ;;  %v2121_v49 = vpop.xlane.xlu0 %2120 }
 0x736   : > { %v2127_v19 = vpop.xlane.xlu2 %2126  ;;  %v2208_v18 = vadd.f32 %v2207_v10, %v2121_v49  ;;  %v2545_v49 = vsel %vm1104_vm8, %v2357_v36, 0.0 }
 0x738   : > { %v2209_v22 = vadd.f32 %v2208_v18, %v2124_v17  ;;  %v2548_v18 = vsel %vm1104_vm8, %v2358_v61, 0.0  ;;  %v3089_v61 = vld [vmem:[%s5003_s5 + $0x740] sm:$0xff] }
 0x73a   : > { %2519 = vadd.xlane.f32.xlu1 %v2518_v58  ;;  %v2210_v60 = vadd.f32 %v2209_v22, %v2127_v19  ;;  %2516 = vadd.xlane.f32.xlu0 %v2515_v20  ;;  %v2542_v19 = vsel %vm1104_vm8, %v2356_v54, 0.0  ;;  %v3080_v58 = vld [vmem:[%s5003_s5 + $0x6f8] sm:$0xff]  ;;  %v3332_v22 = vld [vmem:[#allocation3 + $0x1b8] sm:$0xff] }
 0x73b   : > { %2522 = vadd.xlane.f32.xlu2 %v2521_v59  ;;  %v3079_v59 = vld [vmem:[%s5003_s5 + $0x6f0] sm:$0xff]  ;;  %v2360_v24 = vmul.f32 %v3332_v22, %v3080_v58 }
 0x73c   : > { %v2211_v63 = vrot.slane %v2210_v60, 4 }
 0x73d   : > { %v2394_v0 = vpop.xlane.xlu1 %2393  ;;  %v2391_v3 = vpop.xlane.xlu0 %2390 }
 0x73e   : > { %v2397_v15 = vpop.xlane.xlu2 %2396  ;;  %v2212_v44 = vadd.f32 %v2211_v63, %v2210_v60  ;;  %v2641_v33 = vadd.f32 %v2394_v0, %v2391_v3  ;;  %v2359_v60 = vmul.f32 %v3333_v35, %v3079_v59  ;;  %v2554_v0 = vsel %vm1104_vm8, %v2360_v24, 0.0 }
 0x740   : > { %v2213_v11 = vrot.slane %v2212_v44, 2  ;;  %v2642_v25 = vadd.f32 %v2641_v33, %v2397_v15  ;;  %v2551_v3 = vsel %vm1104_vm8, %v2359_v60, 0.0  ;;  %v2557_v15 = vsel %vm1104_vm8, %v2361_v40, 0.0  ;;  %v3336_v33 = vld [vmem:[#allocation3 + $0x1c8] sm:$0xff] }
 0x741   : > { %v3092_v40 = vld [vmem:[%s5003_s5 + $0x758] sm:$0xff] }
 0x742   : > { %2528 = vadd.xlane.f32.xlu1 %v2527_v46  ;;  %v2214_v43 = vadd.f32 %v2213_v11, %v2212_v44  ;;  %2525 = vadd.xlane.f32.xlu0 %v2524_v6  ;;  %v3083_v44 = vld [vmem:[%s5003_s5 + $0x710] sm:$0xff]  ;;  %v3082_v6 = vld [vmem:[%s5003_s5 + $0x708] sm:$0xff] }
 0x743   : > { %2531 = vadd.xlane.f32.xlu2 %v2530_v7  ;;  %v3084_v7 = vld [vmem:[%s5003_s5 + $0x718] sm:$0xff]  ;;  %v2363_v11 = vmul.f32 %v3335_v9, %v3083_v44  ;;  %v2362_v42 = vmul.f32 %v3336_v33, %v3082_v6 }
 0x744   : > { %v2215_v13 = vrot.slane %v2214_v43, 1 }
 0x745   : > { %v2403_v12 = vpop.xlane.xlu1 %2402  ;;  %v2400_v14 = vpop.xlane.xlu0 %2399  ;;  %v2563_v8 = vsel %vm1104_vm8, %v2363_v11, 0.0 }
 0x746   : > { %v2406_v16 = vpop.xlane.xlu2 %2405  ;;  %v2216_v23 = vadd.f32 %v2215_v13, %v2214_v43  ;;  %v2643_v26 = vadd.f32 %v2642_v25, %v2400_v14  ;;  %v2364_v43 = vmul.f32 %v3337_v41, %v3084_v7  ;;  %v2560_v13 = vsel %vm1104_vm8, %v2362_v42, 0.0 }
 0x748   : > { %v2217_v32 = vadd.f32 %v4829_v31, %v2216_v23  ;;  %v2644_v34 = vadd.f32 %v2643_v26, %v2403_v12  ;;  %v2566_v25 = vsel %vm1104_vm8, %v2364_v43, 0.0  ;;  %v3086_v12 = vld [vmem:[%s5003_s5 + $0x728] sm:$0xff]  ;;  %v3087_v23 = vld [vmem:[%s5003_s5 + $0x730] sm:$0xff]  ;;  %v3338_v26 = vld [vmem:[#allocation3 + $0x1e8] sm:$0xff] }
 0x749   : > { %v3095_v43 = vld [vmem:[%s5003_s5 + $0x770] sm:$0xff] }
 0x74a   : > { %2537 = vadd.xlane.f32.xlu1 %v2536_v27  ;;  %2534 = vadd.xlane.f32.xlu0 %v2533_v28  ;;  %2219 = vst.msk [vmem:[%s3699_s13] sm:$0x1] %vm2218_vm1, %v2217_v32  ;;  %v2645_v1 = vadd.f32 %v2644_v34, %v2406_v16  ;;  %v3085_v16 = vld [vmem:[%s5003_s5 + $0x720] sm:$0xff]  ;;  %v2366_v27 = vmul.f32 %v3338_v26, %v3086_v12  ;;  %v3339_v28 = vld [vmem:[#allocation3 + $0x1e0] sm:$0xff] }
 0x74b   : > { %2540 = vadd.xlane.f32.xlu2 %v2539_v29  ;;  %v2365_v29 = vmul.f32 %v3339_v28, %v3085_v16  ;;  %v2367_v32 = vmul.f32 %v3340_v30, %v3087_v23 }
 0x74c   : > { %v2572_v39 = vsel %vm1104_vm8, %v2366_v27, 0.0 }
 0x74d   : > { %v2412_v2 = vpop.xlane.xlu1 %2411  ;;  %v2409_v56 = vpop.xlane.xlu0 %2408  ;;  %v2569_v54 = vsel %vm1104_vm8, %v2365_v29, 0.0  ;;  %v2575_v57 = vsel %vm1104_vm8, %v2367_v32, 0.0  ;;  %v3098_v32 = vld [vmem:[%s5003_s5 + $0x788] sm:$0xff] }
 0x74e   : > { %v2415_v10 = vpop.xlane.xlu2 %2414  ;;  %v2646_v17 = vadd.f32 %v2645_v1, %v2409_v56  ;;  %v3090_v56 = vld [vmem:[%s5003_s5 + $0x748] sm:$0xff] }
 0x750   : > { %v2647_v20 = vadd.f32 %v2646_v17, %v2412_v2  ;;  %v3088_v2 = vld [vmem:[%s5003_s5 + $0x738] sm:$0xff] }
 0x752   : > { %2546 = vadd.xlane.f32.xlu1 %v2545_v49  ;;  %2543 = vadd.xlane.f32.xlu0 %v2542_v19  ;;  %v2648_v4 = vadd.f32 %v2647_v20, %v2415_v10  ;;  %v3341_v10 = vld [vmem:[#allocation3 + $0x200] sm:$0xff]  ;;  %v3342_v49 = vld [vmem:[#allocation3 + $0x1f8] sm:$0xff] }
 0x753   : > { %2549 = vadd.xlane.f32.xlu2 %v2548_v18  ;;  %v2369_v17 = vmul.f32 %v3341_v10, %v3089_v61  ;;  %v2368_v19 = vmul.f32 %v3342_v49, %v3088_v2  ;;  %v3343_v18 = vld [vmem:[#allocation3 + $0x208] sm:$0xff] }
 0x754   : > { %v2370_v58 = vmul.f32 %v3343_v18, %v3090_v56 }
 0x755   : > { %v2421_v5 = vpop.xlane.xlu1 %2420  ;;  %v2418_v50 = vpop.xlane.xlu0 %2417  ;;  %v2581_v35 = vsel %vm1104_vm8, %v2369_v17, 0.0  ;;  %v2578_v60 = vsel %vm1104_vm8, %v2368_v19, 0.0 }
 0x756   : > { %v2424_v62 = vpop.xlane.xlu2 %2423  ;;  %v2649_v63 = vadd.f32 %v2648_v4, %v2418_v50  ;;  %v2584_v38 = vsel %vm1104_vm8, %v2370_v58, 0.0  ;;  %v3093_v50 = vld [vmem:[%s5003_s5 + $0x760] sm:$0xff] }
 0x757   : > { %v3101_v58 = vld [vmem:[%s5003_s5 + $0x7a0] sm:$0xff] }
 0x758   : > { %v2650_v46 = vadd.f32 %v2649_v63, %v2421_v5  ;;  %v3091_v5 = vld [vmem:[%s5003_s5 + $0x750] sm:$0xff] }
 0x75a   : > { %2555 = vadd.xlane.f32.xlu1 %v2554_v0  ;;  %2552 = vadd.xlane.f32.xlu0 %v2551_v3  ;;  %v2651_v45 = vadd.f32 %v2650_v46, %v2424_v62  ;;  %v3344_v62 = vld [vmem:[#allocation3 + $0x218] sm:$0xff]  ;;  %v3345_v0 = vld [vmem:[#allocation3 + $0x210] sm:$0xff] }
 0x75b   : > { %2558 = vadd.xlane.f32.xlu2 %v2557_v15  ;;  %v2372_v63 = vmul.f32 %v3344_v62, %v3092_v40  ;;  %v2371_v3 = vmul.f32 %v3345_v0, %v3091_v5  ;;  %v3346_v15 = vld [vmem:[#allocation3 + $0x220] sm:$0xff] }
 0x75c   : > { %v2373_v44 = vmul.f32 %v3346_v15, %v3093_v50 }
 0x75d   : > { %v2430_v47 = vpop.xlane.xlu1 %2429  ;;  %v2427_v48 = vpop.xlane.xlu0 %2426  ;;  %v2590_v33 = vsel %vm1104_vm8, %v2372_v63, 0.0  ;;  %v2587_v42 = vsel %vm1104_vm8, %v2371_v3, 0.0 }
 0x75e   : > { %v2433_v51 = vpop.xlane.xlu2 %2432  ;;  %v2652_v52 = vadd.f32 %v2651_v45, %v2427_v48  ;;  %v2593_v41 = vsel %vm1104_vm8, %v2373_v44, 0.0  ;;  %v3096_v48 = vld [vmem:[%s5003_s5 + $0x778] sm:$0xff] }
 0x75f   : > { %v3104_v44 = vld [vmem:[%s5003_s5 + $0x7b8] sm:$0xff] }
 0x760   : > { %v2653_v14 = vadd.f32 %v2652_v52, %v2430_v47  ;;  %v3094_v47 = vld [vmem:[%s5003_s5 + $0x768] sm:$0xff] }
 0x762   : > { %2564 = vadd.xlane.f32.xlu1 %v2563_v8  ;;  %2561 = vadd.xlane.f32.xlu0 %v2560_v13  ;;  %v2654_v34 = vadd.f32 %v2653_v14, %v2433_v51  ;;  %v3347_v51 = vld [vmem:[#allocation3 + $0x230] sm:$0xff]  ;;  %v3348_v8 = vld [vmem:[#allocation3 + $0x228] sm:$0xff] }
 0x763   : > { %2567 = vadd.xlane.f32.xlu2 %v2566_v25  ;;  %v2375_v52 = vmul.f32 %v3347_v51, %v3095_v43  ;;  %v2374_v13 = vmul.f32 %v3348_v8, %v3094_v47  ;;  %v3349_v25 = vld [vmem:[#allocation3 + $0x238] sm:$0xff] }
 0x764   : > { %v2376_v12 = vmul.f32 %v3349_v25, %v3096_v48 }
 0x765   : > { %v2439_v37 = vpop.xlane.xlu1 %2438  ;;  %v2436_v53 = vpop.xlane.xlu0 %2435  ;;  %v2599_v28 = vsel %vm1104_vm8, %v2375_v52, 0.0  ;;  %v2596_v29 = vsel %vm1104_vm8, %v2374_v13, 0.0 }
 0x766   : > { %v2442_v55 = vpop.xlane.xlu2 %2441  ;;  %v2655_v36 = vadd.f32 %v2654_v34, %v2436_v53  ;;  %v2602_v30 = vsel %vm1104_vm8, %v2376_v12, 0.0  ;;  %v3099_v53 = vld [vmem:[%s5003_s5 + $0x790] sm:$0xff] }
 0x767   : > { %v3107_v12 = vld [vmem:[%s5003_s5 + $0x7d0] sm:$0xff] }
 0x768   : > { %v2656_v1 = vadd.f32 %v2655_v36, %v2439_v37  ;;  %v3097_v37 = vld [vmem:[%s5003_s5 + $0x780] sm:$0xff] }
 0x76a   : > { %2573 = vadd.xlane.f32.xlu1 %v2572_v39  ;;  %2570 = vadd.xlane.f32.xlu0 %v2569_v54  ;;  %v2657_v20 = vadd.f32 %v2656_v1, %v2442_v55  ;;  %v3350_v55 = vld [vmem:[#allocation3 + $0x248] sm:$0xff]  ;;  %v3351_v39 = vld [vmem:[#allocation3 + $0x240] sm:$0xff] }
 0x76b   : > { %2576 = vadd.xlane.f32.xlu2 %v2575_v57  ;;  %v2378_v36 = vmul.f32 %v3350_v55, %v3098_v32  ;;  %v2377_v54 = vmul.f32 %v3351_v39, %v3097_v37  ;;  %v3352_v57 = vld [vmem:[#allocation3 + $0x250] sm:$0xff] }
 0x76c   : > { %v2379_v61 = vmul.f32 %v3352_v57, %v3099_v53 }
 0x76d   : > { %v2448_v59 = vpop.xlane.xlu1 %2447  ;;  %v2445_v21 = vpop.xlane.xlu0 %2444  ;;  %v2608_v49 = vsel %vm1104_vm8, %v2378_v36, 0.0  ;;  %v2605_v19 = vsel %vm1104_vm8, %v2377_v54, 0.0 }
 0x76e   : > { %v2451_v22 = vpop.xlane.xlu2 %2450  ;;  %v2658_v24 = vadd.f32 %v2657_v20, %v2445_v21  ;;  %v2611_v18 = vsel %vm1104_vm8, %v2379_v61, 0.0  ;;  %v3102_v21 = vld [vmem:[%s5003_s5 + $0x7a8] sm:$0xff] }
 0x770   : > { %v2659_v4 = vadd.f32 %v2658_v24, %v2448_v59  ;;  %v3100_v59 = vld [vmem:[%s5003_s5 + $0x798] sm:$0xff] }
 0x772   : > { %2582 = vadd.xlane.f32.xlu1 %v2581_v35  ;;  %2579 = vadd.xlane.f32.xlu0 %v2578_v60  ;;  %v2660_v46 = vadd.f32 %v2659_v4, %v2451_v22  ;;  %v3353_v22 = vld [vmem:[#allocation3 + $0x260] sm:$0xff]  ;;  %v3354_v35 = vld [vmem:[#allocation3 + $0x258] sm:$0xff] }
 0x773   : > { %2585 = vadd.xlane.f32.xlu2 %v2584_v38  ;;  %v2381_v24 = vmul.f32 %v3353_v22, %v3101_v58  ;;  %v2380_v60 = vmul.f32 %v3354_v35, %v3100_v59  ;;  %v3355_v38 = vld [vmem:[#allocation3 + $0x268] sm:$0xff] }
 0x774   : > { %v2382_v40 = vmul.f32 %v3355_v38, %v3102_v21 }
 0x775   : > { %v2457_v6 = vpop.xlane.xlu1 %2456  ;;  %v2454_v7 = vpop.xlane.xlu0 %2453  ;;  %v2617_v0 = vsel %vm1104_vm8, %v2381_v24, 0.0  ;;  %v2614_v3 = vsel %vm1104_vm8, %v2380_v60, 0.0 }
 0x776   : > { %v2460_v9 = vpop.xlane.xlu2 %2459  ;;  %v2661_v11 = vadd.f32 %v2660_v46, %v2454_v7  ;;  %v2620_v15 = vsel %vm1104_vm8, %v2382_v40, 0.0  ;;  %v3105_v7 = vld [vmem:[%s5003_s5 + $0x7c0] sm:$0xff] }
 0x778   : > { %v2662_v45 = vadd.f32 %v2661_v11, %v2457_v6  ;;  %v3103_v6 = vld [vmem:[%s5003_s5 + $0x7b0] sm:$0xff] }
 0x77a   : > { %2591 = vadd.xlane.f32.xlu1 %v2590_v33  ;;  %2588 = vadd.xlane.f32.xlu0 %v2587_v42  ;;  %v2663_v14 = vadd.f32 %v2662_v45, %v2460_v9  ;;  %v3356_v9 = vld [vmem:[#allocation3 + $0x278] sm:$0xff]  ;;  %v3357_v33 = vld [vmem:[#allocation3 + $0x270] sm:$0xff] }
 0x77b   : > { %2594 = vadd.xlane.f32.xlu2 %v2593_v41  ;;  %v2384_v11 = vmul.f32 %v3356_v9, %v3104_v44  ;;  %v2383_v42 = vmul.f32 %v3357_v33, %v3103_v6  ;;  %v3358_v41 = vld [vmem:[#allocation3 + $0x280] sm:$0xff] }
 0x77c   : > { %v2385_v43 = vmul.f32 %v3358_v41, %v3105_v7 }
 0x77d   : > { %v2466_v16 = vpop.xlane.xlu1 %2465  ;;  %v2463_v23 = vpop.xlane.xlu0 %2462  ;;  %v2626_v8 = vsel %vm1104_vm8, %v2384_v11, 0.0  ;;  %v2623_v13 = vsel %vm1104_vm8, %v2383_v42, 0.0 }
 0x77e   : > { %v2469_v26 = vpop.xlane.xlu2 %2468  ;;  %v2664_v27 = vadd.f32 %v2663_v14, %v2463_v23  ;;  %v2629_v25 = vsel %vm1104_vm8, %v2385_v43, 0.0  ;;  %v3108_v23 = vld [vmem:[%s5003_s5 + $0x7d8] sm:$0xff] }
 0x780   : > { %v2665_v34 = vadd.f32 %v2664_v27, %v2466_v16  ;;  %v3106_v16 = vld [vmem:[%s5003_s5 + $0x7c8] sm:$0xff] }
 0x782   : > { %2600 = vadd.xlane.f32.xlu1 %v2599_v28  ;;  %2597 = vadd.xlane.f32.xlu0 %v2596_v29  ;;  %v2666_v1 = vadd.f32 %v2665_v34, %v2469_v26  ;;  %v3359_v26 = vld [vmem:[#allocation3 + $0x290] sm:$0xff]  ;;  %v3360_v28 = vld [vmem:[#allocation3 + $0x288] sm:$0xff] }
 0x783   : > { %2603 = vadd.xlane.f32.xlu2 %v2602_v30  ;;  %v2387_v27 = vmul.f32 %v3359_v26, %v3107_v12  ;;  %v2386_v29 = vmul.f32 %v3360_v28, %v3106_v16  ;;  %v3361_v30 = vld [vmem:[#allocation3 + $0x298] sm:$0xff] }
 0x784   : > { %v2388_v32 = vmul.f32 %v3361_v30, %v3108_v23 }
 0x785   : > { %v2475_v2 = vpop.xlane.xlu1 %2474  ;;  %v2472_v56 = vpop.xlane.xlu0 %2471  ;;  %v2635_v39 = vsel %vm1104_vm8, %v2387_v27, 0.0  ;;  %v2632_v54 = vsel %vm1104_vm8, %v2386_v29, 0.0 }
 0x786   : > { %v2478_v10 = vpop.xlane.xlu2 %2477  ;;  %v2667_v17 = vadd.f32 %v2666_v1, %v2472_v56  ;;  %v2638_v57 = vsel %vm1104_vm8, %v2388_v32, 0.0 }
 0x788   : > { %v2668_v20 = vadd.f32 %v2667_v17, %v2475_v2 }
 0x78a   : > { %2609 = vadd.xlane.f32.xlu1 %v2608_v49  ;;  %2606 = vadd.xlane.f32.xlu0 %v2605_v19  ;;  %v2669_v4 = vadd.f32 %v2668_v20, %v2478_v10 }
 0x78b   : > { %2612 = vadd.xlane.f32.xlu2 %v2611_v18 }
 0x78d   : > { %v2484_v5 = vpop.xlane.xlu1 %2483  ;;  %v2481_v50 = vpop.xlane.xlu0 %2480 }
 0x78e   : > { %v2487_v62 = vpop.xlane.xlu2 %2486  ;;  %v2670_v63 = vadd.f32 %v2669_v4, %v2481_v50 }
 0x790   : > { %v2671_v46 = vadd.f32 %v2670_v63, %v2484_v5 }
 0x792   : > { %2618 = vadd.xlane.f32.xlu1 %v2617_v0  ;;  %2615 = vadd.xlane.f32.xlu0 %v2614_v3  ;;  %v2672_v45 = vadd.f32 %v2671_v46, %v2487_v62 }
 0x793   : > { %2621 = vadd.xlane.f32.xlu2 %v2620_v15 }
 0x795   : > { %v2493_v47 = vpop.xlane.xlu1 %2492  ;;  %v2490_v48 = vpop.xlane.xlu0 %2489 }
 0x796   : > { %v2496_v51 = vpop.xlane.xlu2 %2495  ;;  %v2673_v52 = vadd.f32 %v2672_v45, %v2490_v48 }
 0x798   : > { %v2674_v14 = vadd.f32 %v2673_v52, %v2493_v47 }
 0x79a   : > { %2627 = vadd.xlane.f32.xlu1 %v2626_v8  ;;  %2624 = vadd.xlane.f32.xlu0 %v2623_v13  ;;  %v2675_v34 = vadd.f32 %v2674_v14, %v2496_v51 }
 0x79b   : > { %2630 = vadd.xlane.f32.xlu2 %v2629_v25 }
 0x79d   : > { %v2502_v37 = vpop.xlane.xlu1 %2501  ;;  %v2499_v53 = vpop.xlane.xlu0 %2498 }
 0x79e   : > { %v2505_v55 = vpop.xlane.xlu2 %2504  ;;  %v2676_v36 = vadd.f32 %v2675_v34, %v2499_v53 }
 0x7a0   : > { %v2677_v61 = vadd.f32 %v2676_v36, %v2502_v37 }
 0x7a2   : > { %2636 = vadd.xlane.f32.xlu1 %v2635_v39  ;;  %2633 = vadd.xlane.f32.xlu0 %v2632_v54  ;;  %v2678_v1 = vadd.f32 %v2677_v61, %v2505_v55 }
 0x7a3   : > { %2639 = vadd.xlane.f32.xlu2 %v2638_v57 }
 0x7a5   : > { %v2511_v2 = vpop.xlane.xlu1 %2510  ;;  %v2508_v56 = vpop.xlane.xlu0 %2507 }
 0x7a6   : > { %v2514_v10 = vpop.xlane.xlu2 %2513  ;;  %v2679_v17 = vadd.f32 %v2678_v1, %v2508_v56 }
 0x7a8   : > { %v2680_v49 = vadd.f32 %v2679_v17, %v2511_v2 }
 0x7aa   : > { %v2681_v19 = vadd.f32 %v2680_v49, %v2514_v10 }
 0x7ad   : > { %v2520_v18 = vpop.xlane.xlu1 %2519  ;;  %v2517_v58 = vpop.xlane.xlu0 %2516 }
 0x7ae   : > { %v2523_v20 = vpop.xlane.xlu2 %2522  ;;  %v2682_v59 = vadd.f32 %v2681_v19, %v2517_v58 }
 0x7b0   : > { %v2683_v21 = vadd.f32 %v2682_v59, %v2520_v18 }
 0x7b2   : > { %v2684_v22 = vadd.f32 %v2683_v21, %v2523_v20 }
 0x7b5   : > { %v2529_v24 = vpop.xlane.xlu1 %2528  ;;  %v2526_v35 = vpop.xlane.xlu0 %2525 }
 0x7b6   : > { %v2532_v60 = vpop.xlane.xlu2 %2531  ;;  %v2685_v38 = vadd.f32 %v2684_v22, %v2526_v35 }
 0x7b8   : > { %v2686_v40 = vadd.f32 %v2685_v38, %v2529_v24 }
 0x7ba   : > { %v2687_v4 = vadd.f32 %v2686_v40, %v2532_v60 }
 0x7bd   : > { %v2538_v5 = vpop.xlane.xlu1 %2537  ;;  %v2535_v50 = vpop.xlane.xlu0 %2534 }
 0x7be   : > { %v2541_v62 = vpop.xlane.xlu2 %2540  ;;  %v2688_v63 = vadd.f32 %v2687_v4, %v2535_v50 }
 0x7c0   : > { %v2689_v0 = vadd.f32 %v2688_v63, %v2538_v5 }
 0x7c2   : > { %v2690_v3 = vadd.f32 %v2689_v0, %v2541_v62 }
 0x7c5   : > { %v2547_v15 = vpop.xlane.xlu1 %2546  ;;  %v2544_v44 = vpop.xlane.xlu0 %2543 }
 0x7c6   : > { %v2550_v46 = vpop.xlane.xlu2 %2549  ;;  %v2691_v6 = vadd.f32 %v2690_v3, %v2544_v44 }
 0x7c8   : > { %v2692_v7 = vadd.f32 %v2691_v6, %v2547_v15 }
 0x7ca   : > { %v2693_v9 = vadd.f32 %v2692_v7, %v2550_v46 }
 0x7cd   : > { %v2556_v11 = vpop.xlane.xlu1 %2555  ;;  %v2553_v33 = vpop.xlane.xlu0 %2552 }
 0x7ce   : > { %v2559_v42 = vpop.xlane.xlu2 %2558  ;;  %v2694_v41 = vadd.f32 %v2693_v9, %v2553_v33 }
 0x7d0   : > { %v2695_v43 = vadd.f32 %v2694_v41, %v2556_v11 }
 0x7d2   : > { %v2696_v45 = vadd.f32 %v2695_v43, %v2559_v42 }
 0x7d5   : > { %v2565_v47 = vpop.xlane.xlu1 %2564  ;;  %v2562_v48 = vpop.xlane.xlu0 %2561 }
 0x7d6   : > { %v2568_v51 = vpop.xlane.xlu2 %2567  ;;  %v2697_v52 = vadd.f32 %v2696_v45, %v2562_v48 }
 0x7d8   : > { %v2698_v8 = vadd.f32 %v2697_v52, %v2565_v47 }
 0x7da   : > { %v2699_v13 = vadd.f32 %v2698_v8, %v2568_v51 }
 0x7dd   : > { %v2574_v25 = vpop.xlane.xlu1 %2573  ;;  %v2571_v12 = vpop.xlane.xlu0 %2570 }
 0x7de   : > { %v2577_v14 = vpop.xlane.xlu2 %2576  ;;  %v2700_v16 = vadd.f32 %v2699_v13, %v2571_v12 }
 0x7e0   : > { %v2701_v23 = vadd.f32 %v2700_v16, %v2574_v25 }
 0x7e2   : > { %v2702_v26 = vadd.f32 %v2701_v23, %v2577_v14 }
 0x7e5   : > { %v2583_v27 = vpop.xlane.xlu1 %2582  ;;  %v2580_v28 = vpop.xlane.xlu0 %2579 }
 0x7e6   : > { %v2586_v29 = vpop.xlane.xlu2 %2585  ;;  %v2703_v30 = vadd.f32 %v2702_v26, %v2580_v28 }
 0x7e8   : > { %v2704_v32 = vadd.f32 %v2703_v30, %v2583_v27 }
 0x7ea   : > { %v2705_v34 = vadd.f32 %v2704_v32, %v2586_v29 }
 0x7ed   : > { %v2592_v37 = vpop.xlane.xlu1 %2591  ;;  %v2589_v53 = vpop.xlane.xlu0 %2588 }
 0x7ee   : > { %v2595_v55 = vpop.xlane.xlu2 %2594  ;;  %v2706_v36 = vadd.f32 %v2705_v34, %v2589_v53 }
 0x7f0   : > { %v2707_v39 = vadd.f32 %v2706_v36, %v2592_v37 }
 0x7f2   : > { %v2708_v54 = vadd.f32 %v2707_v39, %v2595_v55 }
 0x7f5   : > { %v2601_v57 = vpop.xlane.xlu1 %2600  ;;  %v2598_v61 = vpop.xlane.xlu0 %2597 }
 0x7f6   : > { %v2604_v1 = vpop.xlane.xlu2 %2603  ;;  %v2709_v2 = vadd.f32 %v2708_v54, %v2598_v61 }
 0x7f8   : > { %v2710_v56 = vadd.f32 %v2709_v2, %v2601_v57 }
 0x7fa   : > { %v2711_v10 = vadd.f32 %v2710_v56, %v2604_v1 }
 0x7fd   : > { %v2610_v17 = vpop.xlane.xlu1 %2609  ;;  %v2607_v49 = vpop.xlane.xlu0 %2606 }
 0x7fe   : > { %v2613_v19 = vpop.xlane.xlu2 %2612  ;;  %v2712_v18 = vadd.f32 %v2711_v10, %v2607_v49 }
 0x800   : > { %v2713_v58 = vadd.f32 %v2712_v18, %v2610_v17 }
 0x802   : > { %v2714_v20 = vadd.f32 %v2713_v58, %v2613_v19 }
 0x805   : > { %v2619_v59 = vpop.xlane.xlu1 %2618  ;;  %v2616_v21 = vpop.xlane.xlu0 %2615 }
 0x806   : > { %v2622_v22 = vpop.xlane.xlu2 %2621  ;;  %v2715_v24 = vadd.f32 %v2714_v20, %v2616_v21 }
 0x808   : > { %v2716_v35 = vadd.f32 %v2715_v24, %v2619_v59 }
 0x80a   : > { %v2717_v60 = vadd.f32 %v2716_v35, %v2622_v22 }
 0x80d   : > { %v2628_v38 = vpop.xlane.xlu1 %2627  ;;  %v2625_v40 = vpop.xlane.xlu0 %2624 }
 0x80e   : > { %v2631_v4 = vpop.xlane.xlu2 %2630  ;;  %v2718_v5 = vadd.f32 %v2717_v60, %v2625_v40 }
 0x810   : > { %v2719_v50 = vadd.f32 %v2718_v5, %v2628_v38 }
 0x812   : > { %v2720_v62 = vadd.f32 %v2719_v50, %v2631_v4 }
 0x815   : > { %v2634_v63 = vpop.xlane.xlu0 %2633  ;;  %v2637_v0 = vpop.xlane.xlu1 %2636 }
 0x816   : > { %v2721_v3 = vadd.f32 %v2720_v62, %v2634_v63  ;;  %v2640_v15 = vpop.xlane.xlu2 %2639 }
 0x818   : > { %v2722_v44 = vadd.f32 %v2721_v3, %v2637_v0 }
 0x81a   : > { %v2723_v46 = vadd.f32 %v2722_v44, %v2640_v15 }
 0x81c   : > { %v2724_v6 = vrot.slane %v2723_v46, 4 }
 0x81e   : > { %v2725_v7 = vadd.f32 %v2724_v6, %v2723_v46 }
 0x820   : > { %v2726_v9 = vrot.slane %v2725_v7, 2 }
 0x822   : > { %v2727_v11 = vadd.f32 %v2726_v9, %v2725_v7 }
 0x824   : > { %v2728_v33 = vrot.slane %v2727_v11, 1 }
 0x826   : > { %v2729_v42 = vadd.f32 %v2728_v33, %v2727_v11 }
 0x828   : > { %v2730_v41 = vadd.f32 %v4829_v31, %v2729_v42 }
 0x82a   : > { %2732 = vst.msk [vmem:[%s3699_s13] sm:$0x1] %vm2731_vm2, %v2730_v41 }
 0x82b   : > { %3389 = shalt.err (!%p3386_p7)
}
 0x82c   : > { %3132 = dma.vmem_to_hbm [thread:$0]  (%p3534_p5), %s2745_s23, 16, %s2747_s14, %s2734_s29  }
 0x82d PF: > { %p3138_p8 = scmp.ge.s32.totalorder %s3432_s27, 2  ;;  %s2758_s17 = sand.u32 1, %s3420_s24  }
 0x82e   : > { %s2759_s13 = scalar_lea.sflag [#allocation5], %s2758_s17 }
 0x82f   : > { %p3135_p9 = pnand %p3138_p8, %p3538_p6 }
 0x831   : > { %p3136_p10 = pneg %p3135_p9 }
 0x833   : > { %3415 = dma.done.wait (%p3136_p10), %s2759_s13, 16  }
 0x834   : > { %3417 = vsyncadd (%p3136_p10), %s2759_s13, 4294967280  ;;  %p17_p11 = scmp.ge.s32.totalorder %s3521_s30, 4   ;;  %s5008_s24 = smov %s3424_s25 }
 0x835   : > { %s5009_s25 = smov %s3428_s26  ;;  %s5010_s26 = smov %s3532_s10 }
 0x836   : > { %s5011_s27 = smov %s3521_s30  ;;  %19 = sbr.rel (!%p17_p11) target bundleno = 3 (0x3), region = 125 }
 0x83b   :  { %2764 = vsyncpa [#allocation5], 1 }
 0x83c   :  { %2766 = vsyncpa [#allocation5 + $0x1], 1 }

</bundles_post_ra>
